<compile_context>
chip_gen: v5e
topology: v5e:2x2
jax: 0.10.0
libtpu: 0.0.40
codegen_flags: <defaults>
</compile_context>

<pallas_src>
import jax
import jax.numpy as jnp
from jax.experimental import pallas as pl
from jax.experimental.pallas import tpu as pltpu

_BN_EPS = 0.8  # nn.BatchNorm1d(out_feat, 0.8): the positional 0.8 is eps.


def _leaky_relu(x, slope=0.2):
    # Identical to where(x>0, x, slope*x) for slope in (0,1); one less VALU op.
    return jnp.maximum(x, slope * x)


def gen_mlp_kernel(lab_ref, x_ref, cbt_ref,
                   w1_ref,
                   w2_ref, b2_ref,
                   w3_ref, b3_ref,
                   w4_ref, b4_ref,
                   w5_ref, b5_ref,
                   o_ref):
    """Fused 5-layer generator MLP; one batch tile per grid step.

    lab_ref: (TB, 1)         int32 labels tile
    x_ref  : (TB, d_lat)     bf16 noise tile (unpadded last dim)
    cbt_ref: (nc_pad, 128)   f32 per-class layer-1 bias table (emb@W1[:nc] + b1)
    w*     : bf16 weights (eval-mode BatchNorm folded into w2..w4 / b2..b4)
    b*     : (1, N) f32 biases
    o_ref  : (TB, output_dim) f32
    """
    f32 = jnp.float32
    bf16 = jnp.bfloat16

    tb = x_ref.shape[0]
    nc_pad = cbt_ref.shape[0]

    # Rebuild the per-row layer-1 bias from labels via a tiny one-hot matmul
    # against the VMEM-resident class-bias table (exact: one-hot is 0/1).
    lab = lab_ref[...]                                              # (TB, 1) i32
    iota = jax.lax.broadcasted_iota(jnp.int32, (tb, nc_pad), 1)
    onehot = (iota == lab).astype(f32)                              # (TB, nc_pad)
    cb = jnp.dot(onehot, cbt_ref[...], preferred_element_type=f32)  # (TB, 128)

    h = jnp.dot(x_ref[...], w1_ref[...], preferred_element_type=f32) + cb
    h = _leaky_relu(h)

    h = jnp.dot(h.astype(bf16), w2_ref[...], preferred_element_type=f32) + b2_ref[...]
    h = _leaky_relu(h)

    h = jnp.dot(h.astype(bf16), w3_ref[...], preferred_element_type=f32) + b3_ref[...]
    h = _leaky_relu(h)

    h = jnp.dot(h.astype(bf16), w4_ref[...], preferred_element_type=f32) + b4_ref[...]
    h = _leaky_relu(h)

    z = jnp.dot(h.astype(bf16), w5_ref[...], preferred_element_type=f32) + b5_ref[...]
    o_ref[...] = jnp.tanh(z)


def init_generator_params(key, input_dim, output_dim, n_classes):
    """Deterministic synthetic parameter init (shapes match nn.Module.__init__)."""
    d_in = input_dim + n_classes
    keys = jax.random.split(key, 24)

    def linear(kw, kb, fan_in, fan_out):
        bound = 1.0 / jnp.sqrt(jnp.float32(fan_in))
        w = jax.random.uniform(kw, (fan_in, fan_out), jnp.float32, -bound, bound)
        b = jax.random.uniform(kb, (1, fan_out), jnp.float32, -bound, bound)
        return w, b

    def batchnorm(k0, k1, k2, k3, n):
        # Synthetic "trained" stats so the eval-mode BN path is actually exercised.
        return {
            "gamma": jax.random.uniform(k0, (n,), jnp.float32, 0.5, 1.5),
            "beta": 0.1 * jax.random.normal(k1, (n,), jnp.float32),
            "mean": 0.1 * jax.random.normal(k2, (n,), jnp.float32),
            "var": jax.random.uniform(k3, (n,), jnp.float32, 0.5, 1.5),
        }

    params = {}
    params["emb"] = jax.random.normal(keys[0], (n_classes, n_classes), jnp.float32)
    params["w1"], params["b1"] = linear(keys[1], keys[2], d_in, 128)
    params["w2"], params["b2"] = linear(keys[3], keys[4], 128, 256)
    params["w3"], params["b3"] = linear(keys[5], keys[6], 256, 512)
    params["w4"], params["b4"] = linear(keys[7], keys[8], 512, 1024)
    params["w5"], params["b5"] = linear(keys[9], keys[10], 1024, output_dim)
    params["bn2"] = batchnorm(keys[11], keys[12], keys[13], keys[14], 256)
    params["bn3"] = batchnorm(keys[15], keys[16], keys[17], keys[18], 512)
    params["bn4"] = batchnorm(keys[19], keys[20], keys[21], keys[22], 1024)
    return params


def _fold_bn(w, b, bn):
    """Fold eval-mode BatchNorm1d into the preceding Linear (w: (in,out), b: (1,out))."""
    s = bn["gamma"] / jnp.sqrt(bn["var"] + _BN_EPS)                    # (out,)
    return w * s[None, :], (b - bn["mean"][None, :]) * s[None, :] + bn["beta"][None, :]


def _round_up(n, m):
    return (n + m - 1) // m * m


def _cdiv(a, b):
    return -(-a // b)


@jax.jit
def generator_forward(params, noise, labels):
    """noise: (B, latent) float32; labels: (B,) int32 -> img (B, output_dim) float32."""
    B, d_lat = noise.shape
    n_classes = params["emb"].shape[0]
    d_out = params["w5"].shape[1]
    bf16 = jnp.bfloat16

    # --- Fold label embedding + b1 into a per-class layer-1 bias table --------
    nc_pad = _round_up(n_classes, 8)
    w1_emb = params["w1"][:n_classes, :]                      # (n_classes, 128)
    w1_noise = params["w1"][n_classes:, :]                    # (d_lat, 128)
    class_bias = params["emb"] @ w1_emb + params["b1"]        # (n_classes, 128)
    cbt = jnp.pad(class_bias, ((0, nc_pad - n_classes), (0, 0)))  # f32, resident

    # --- Fold eval-mode BatchNorm into the preceding Linear --------------------
    w2, b2 = _fold_bn(params["w2"], params["b2"], params["bn2"])
    w3, b3 = _fold_bn(params["w3"], params["b3"], params["bn3"])
    w4, b4 = _fold_bn(params["w4"], params["b4"], params["bn4"])
    w5, b5 = params["w5"], params["b5"]

    # --- bf16 MXU operands, f32 biases / accumulation ---------------------------
    w1n = w1_noise.astype(bf16)                                # (d_lat, 128), no lane pad
    w2, w3, w4, w5 = (w.astype(bf16) for w in (w2, w3, w4, w5))

    # --- Divisor-aware batch tiling (cap 512; >=2 tiles when >=512 rows) -------
    b_sub = _round_up(B, 8)
    cap = 512
    n_tiles = _cdiv(b_sub, cap)
    if b_sub >= 2 * 256:
        n_tiles = max(n_tiles, 2)          # v7x: keep both TensorCores busy
    tile_b = _round_up(_cdiv(b_sub, n_tiles), 8)
    b_pad = n_tiles * tile_b

    x = jnp.pad(noise.astype(bf16), ((0, b_pad - B), (0, 0)))            # (b_pad, d_lat)
    lab = jnp.pad(labels.reshape(B, 1).astype(jnp.int32),
                  ((0, b_pad - B), (0, 0)))                               # (b_pad, 1)

    h1 = w1n.shape[1]
    h2, h3, h4 = w2.shape[1], w3.shape[1], w4.shape[1]

    def row_spec(shape):   # batch-tiled operands / output
        return pl.BlockSpec(shape, lambda i: (i, 0))

    def res_spec(shape):   # VMEM-resident weights & biases (fetched once)
        return pl.BlockSpec(shape, lambda i: (0, 0))

    grid = (n_tiles,)

    # Advisory cost estimate for XLA scheduling around the custom call.
    flops = 2 * b_pad * (nc_pad * h1 + d_lat * h1 + h1 * h2 + h2 * h3 + h3 * h4 + h4 * d_out)
    transcendentals = b_pad * d_out                             # tanh
    bytes_accessed = (
        2 * (d_lat * h1 + h1 * h2 + h2 * h3 + h3 * h4 + h4 * d_out)   # bf16 weights
        + 4 * (h2 + h3 + h4 + d_out)                                  # f32 biases
        + 4 * nc_pad * h1                                             # f32 class-bias table
        + b_pad * (2 * d_lat + 4)                                     # bf16 noise + i32 labels
        + b_pad * d_out * 4                                           # f32 output
    )

    out = pl.pallas_call(
        gen_mlp_kernel,
        out_shape=jax.ShapeDtypeStruct((b_pad, d_out), jnp.float32),
        grid=grid,
        in_specs=[
            row_spec((tile_b, 1)),                        # labels tile
            row_spec((tile_b, d_lat)),                    # noise tile (full last dim)
            res_spec((nc_pad, h1)),                       # class-bias table
            res_spec((d_lat, h1)),                        # w1 (noise part)
            res_spec((h1, h2)), res_spec((1, h2)),        # w2, b2 (BN folded)
            res_spec((h2, h3)), res_spec((1, h3)),        # w3, b3 (BN folded)
            res_spec((h3, h4)), res_spec((1, h4)),        # w4, b4 (BN folded)
            res_spec((h4, d_out)), res_spec((1, d_out)),  # w5, b5
        ],
        out_specs=row_spec((tile_b, d_out)),
        compiler_params=pltpu.CompilerParams(
            dimension_semantics=("parallel",)),
        cost_estimate=pl.CostEstimate(
            flops=flops,
            transcendentals=transcendentals,
            bytes_accessed=bytes_accessed),
    )(lab, x, cbt, w1n, w2, b2, w3, b3, w4, b4, w5, b5)
    return out[:B]


def _reference_forward(params, noise, labels):
    """Pure-JAX f32 reference (PyTorch eval-mode semantics)."""
    emb = jnp.take(params["emb"], labels, axis=0)
    x = jnp.concatenate([emb, noise], axis=-1)

    def bn(h, p):
        inv = 1.0 / jnp.sqrt(p["var"] + _BN_EPS)
        return (h - p["mean"]) * inv * p["gamma"] + p["beta"]

    def lrelu(x):
        return jnp.where(x > 0, x, 0.2 * x)

    h = lrelu(x @ params["w1"] + params["b1"])
    h = lrelu(bn(h @ params["w2"] + params["b2"], params["bn2"]))
    h = lrelu(bn(h @ params["w3"] + params["b3"], params["bn3"]))
    h = lrelu(bn(h @ params["w4"] + params["b4"], params["bn4"]))
    return jnp.tanh(h @ params["w5"] + params["b5"])


if __name__ == "__main__":
    latent_dim = 100              # Generator input_dim (noise)
    n_classes = 10
    output_dim = 1 * 16 * 16      # flattened (1, 16, 16) image -> 256, lane-dense
    batch = 8

    key = jax.random.PRNGKey(0)
    k_params, k_noise, k_lbl = jax.random.split(key, 3)

    params = init_generator_params(k_params, latent_dim, output_dim, n_classes)
    noise = jax.random.normal(k_noise, (batch, latent_dim), jnp.float32)
    labels = jax.random.randint(k_lbl, (batch,), 0, n_classes, jnp.int32)

    out = generator_forward(params, noise, labels)
    out = jax.block_until_ready(out)

    ref = _reference_forward(params, noise, labels)
    assert out.shape == (batch, output_dim), out.shape
    err = float(jnp.max(jnp.abs(out - ref)))
    assert err < 3e-2, err   # bf16 weights -> loosened tolerance per review

    print("KERNEL_OK")
</pallas_src>

<mosaic_0001>
module attributes {stable_mosaic.version = 11 : i64} {
  func.func @gen_mlp_kernel(%arg0: i32, %arg1: memref<8x1xi32, #tpu.memory_space<vmem>>, %arg2: memref<8x100xbf16, #tpu.memory_space<vmem>>, %arg3: memref<16x128xf32, #tpu.memory_space<vmem>>, %arg4: memref<100x128xbf16, #tpu.memory_space<vmem>>, %arg5: memref<128x256xbf16, #tpu.memory_space<vmem>>, %arg6: memref<1x256xf32, #tpu.memory_space<vmem>>, %arg7: memref<256x512xbf16, #tpu.memory_space<vmem>>, %arg8: memref<1x512xf32, #tpu.memory_space<vmem>>, %arg9: memref<512x1024xbf16, #tpu.memory_space<vmem>>, %arg10: memref<1x1024xf32, #tpu.memory_space<vmem>>, %arg11: memref<1024x256xbf16, #tpu.memory_space<vmem>>, %arg12: memref<1x256xf32, #tpu.memory_space<vmem>>, %arg13: memref<8x256xf32, #tpu.memory_space<vmem>>) attributes {dimension_semantics = [#tpu.dimension_semantics<parallel>], iteration_bounds = array<i64: 1>, scalar_prefetch = 0 : i64, scratch_operands = 0 : i64, tpu.core_type = #tpu.core_type<tc>, window_params = [{transform_indices = @transform_0, window_bounds = array<i64: 8, 1>}, {transform_indices = @transform_1, window_bounds = array<i64: 8, 100>}, {pipeline_mode = #tpu.pipeline_mode<synchronous>, transform_indices = @transform_2, window_bounds = array<i64: 16, 128>}, {pipeline_mode = #tpu.pipeline_mode<synchronous>, transform_indices = @transform_3, window_bounds = array<i64: 100, 128>}, {pipeline_mode = #tpu.pipeline_mode<synchronous>, transform_indices = @transform_4, window_bounds = array<i64: 128, 256>}, {pipeline_mode = #tpu.pipeline_mode<synchronous>, transform_indices = @transform_5, window_bounds = array<i64: 1, 256>}, {pipeline_mode = #tpu.pipeline_mode<synchronous>, transform_indices = @transform_6, window_bounds = array<i64: 256, 512>}, {pipeline_mode = #tpu.pipeline_mode<synchronous>, transform_indices = @transform_7, window_bounds = array<i64: 1, 512>}, {pipeline_mode = #tpu.pipeline_mode<synchronous>, transform_indices = @transform_8, window_bounds = array<i64: 512, 1024>}, {pipeline_mode = #tpu.pipeline_mode<synchronous>, transform_indices = @transform_9, window_bounds = array<i64: 1, 1024>}, {pipeline_mode = #tpu.pipeline_mode<synchronous>, transform_indices = @transform_10, window_bounds = array<i64: 1024, 256>}, {pipeline_mode = #tpu.pipeline_mode<synchronous>, transform_indices = @transform_11, window_bounds = array<i64: 1, 256>}, {transform_indices = @transform_12, window_bounds = array<i64: 8, 256>}]} {
    %c0 = arith.constant 0 : index
    %c0_0 = arith.constant 0 : index
    %0 = vector.load %arg1[%c0, %c0_0] : memref<8x1xi32, #tpu.memory_space<vmem>>, vector<8x1xi32>
    %1 = tpu.iota {dimensions = array<i32: 1>} : vector<8x16xi32>
    %2 = vector.broadcast %0 : vector<8x1xi32> to vector<8x16xi32>
    %3 = arith.cmpi eq, %1, %2 : vector<8x16xi32>
    %4 = arith.extui %3 : vector<8x16xi1> to vector<8x16xi32>
    %5 = arith.sitofp %4 : vector<8x16xi32> to vector<8x16xf32>
    %c0_1 = arith.constant 0 : index
    %c0_2 = arith.constant 0 : index
    %6 = vector.load %arg3[%c0_1, %c0_2] : memref<16x128xf32, #tpu.memory_space<vmem>>, vector<16x128xf32>
    %cst = arith.constant dense<0.000000e+00> : vector<8x128xf32>
    %7 = tpu.matmul %5, %6, %cst {dimension_numbers = #tpu.dot_dimension_numbers<[1], [0], [0], [1], [0, 0, 1, 1], [], []>} : vector<8x16xf32>, vector<16x128xf32>, vector<8x128xf32> -> vector<8x128xf32>
    %c0_3 = arith.constant 0 : index
    %c0_4 = arith.constant 0 : index
    %8 = vector.load %arg2[%c0_3, %c0_4] : memref<8x100xbf16, #tpu.memory_space<vmem>>, vector<8x100xbf16>
    %c0_5 = arith.constant 0 : index
    %c0_6 = arith.constant 0 : index
    %9 = vector.load %arg4[%c0_5, %c0_6] : memref<100x128xbf16, #tpu.memory_space<vmem>>, vector<100x128xbf16>
    %cst_7 = arith.constant dense<0.000000e+00> : vector<8x128xf32>
    %10 = tpu.matmul %8, %9, %cst_7 {dimension_numbers = #tpu.dot_dimension_numbers<[1], [0], [0], [1], [0, 0, 1, 1], [], []>} : vector<8x100xbf16>, vector<100x128xbf16>, vector<8x128xf32> -> vector<8x128xf32>
    %11 = arith.addf %10, %7 : vector<8x128xf32>
    %cst_8 = arith.constant 2.000000e-01 : f32
    %12 = vector.broadcast %cst_8 : f32 to vector<8x128xf32>
    %13 = arith.mulf %12, %11 : vector<8x128xf32>
    %14 = arith.maximumf %11, %13 : vector<8x128xf32>
    %15 = arith.truncf %14 : vector<8x128xf32> to vector<8x128xbf16>
    %c0_9 = arith.constant 0 : index
    %c0_10 = arith.constant 0 : index
    %16 = vector.load %arg5[%c0_9, %c0_10] : memref<128x256xbf16, #tpu.memory_space<vmem>>, vector<128x256xbf16>
    %cst_11 = arith.constant dense<0.000000e+00> : vector<8x256xf32>
    %17 = tpu.matmul %15, %16, %cst_11 {dimension_numbers = #tpu.dot_dimension_numbers<[1], [0], [0], [1], [0, 0, 1, 1], [], []>} : vector<8x128xbf16>, vector<128x256xbf16>, vector<8x256xf32> -> vector<8x256xf32>
    %c0_12 = arith.constant 0 : index
    %c0_13 = arith.constant 0 : index
    %18 = vector.load %arg6[%c0_12, %c0_13] : memref<1x256xf32, #tpu.memory_space<vmem>>, vector<1x256xf32>
    %19 = vector.broadcast %18 : vector<1x256xf32> to vector<8x256xf32>
    %20 = arith.addf %17, %19 : vector<8x256xf32>
    %cst_14 = arith.constant 2.000000e-01 : f32
    %21 = vector.broadcast %cst_14 : f32 to vector<8x256xf32>
    %22 = arith.mulf %21, %20 : vector<8x256xf32>
    %23 = arith.maximumf %20, %22 : vector<8x256xf32>
    %24 = arith.truncf %23 : vector<8x256xf32> to vector<8x256xbf16>
    %c0_15 = arith.constant 0 : index
    %c0_16 = arith.constant 0 : index
    %25 = vector.load %arg7[%c0_15, %c0_16] : memref<256x512xbf16, #tpu.memory_space<vmem>>, vector<256x512xbf16>
    %cst_17 = arith.constant dense<0.000000e+00> : vector<8x512xf32>
    %26 = tpu.matmul %24, %25, %cst_17 {dimension_numbers = #tpu.dot_dimension_numbers<[1], [0], [0], [1], [0, 0, 1, 1], [], []>} : vector<8x256xbf16>, vector<256x512xbf16>, vector<8x512xf32> -> vector<8x512xf32>
    %c0_18 = arith.constant 0 : index
    %c0_19 = arith.constant 0 : index
    %27 = vector.load %arg8[%c0_18, %c0_19] : memref<1x512xf32, #tpu.memory_space<vmem>>, vector<1x512xf32>
    %28 = vector.broadcast %27 : vector<1x512xf32> to vector<8x512xf32>
    %29 = arith.addf %26, %28 : vector<8x512xf32>
    %cst_20 = arith.constant 2.000000e-01 : f32
    %30 = vector.broadcast %cst_20 : f32 to vector<8x512xf32>
    %31 = arith.mulf %30, %29 : vector<8x512xf32>
    %32 = arith.maximumf %29, %31 : vector<8x512xf32>
    %33 = arith.truncf %32 : vector<8x512xf32> to vector<8x512xbf16>
    %c0_21 = arith.constant 0 : index
    %c0_22 = arith.constant 0 : index
    %34 = vector.load %arg9[%c0_21, %c0_22] : memref<512x1024xbf16, #tpu.memory_space<vmem>>, vector<512x1024xbf16>
    %cst_23 = arith.constant dense<0.000000e+00> : vector<8x1024xf32>
    %35 = tpu.matmul %33, %34, %cst_23 {dimension_numbers = #tpu.dot_dimension_numbers<[1], [0], [0], [1], [0, 0, 1, 1], [], []>} : vector<8x512xbf16>, vector<512x1024xbf16>, vector<8x1024xf32> -> vector<8x1024xf32>
    %c0_24 = arith.constant 0 : index
    %c0_25 = arith.constant 0 : index
    %36 = vector.load %arg10[%c0_24, %c0_25] : memref<1x1024xf32, #tpu.memory_space<vmem>>, vector<1x1024xf32>
    %37 = vector.broadcast %36 : vector<1x1024xf32> to vector<8x1024xf32>
    %38 = arith.addf %35, %37 : vector<8x1024xf32>
    %cst_26 = arith.constant 2.000000e-01 : f32
    %39 = vector.broadcast %cst_26 : f32 to vector<8x1024xf32>
    %40 = arith.mulf %39, %38 : vector<8x1024xf32>
    %41 = arith.maximumf %38, %40 : vector<8x1024xf32>
    %42 = arith.truncf %41 : vector<8x1024xf32> to vector<8x1024xbf16>
    %c0_27 = arith.constant 0 : index
    %c0_28 = arith.constant 0 : index
    %43 = vector.load %arg11[%c0_27, %c0_28] : memref<1024x256xbf16, #tpu.memory_space<vmem>>, vector<1024x256xbf16>
    %cst_29 = arith.constant dense<0.000000e+00> : vector<8x256xf32>
    %44 = tpu.matmul %42, %43, %cst_29 {dimension_numbers = #tpu.dot_dimension_numbers<[1], [0], [0], [1], [0, 0, 1, 1], [], []>} : vector<8x1024xbf16>, vector<1024x256xbf16>, vector<8x256xf32> -> vector<8x256xf32>
    %c0_30 = arith.constant 0 : index
    %c0_31 = arith.constant 0 : index
    %45 = vector.load %arg12[%c0_30, %c0_31] : memref<1x256xf32, #tpu.memory_space<vmem>>, vector<1x256xf32>
    %46 = vector.broadcast %45 : vector<1x256xf32> to vector<8x256xf32>
    %47 = arith.addf %44, %46 : vector<8x256xf32>
    %48 = math.tanh %47 : vector<8x256xf32>
    %c0_32 = arith.constant 0 : index
    %c0_33 = arith.constant 0 : index
    %49 = vector.load %arg13[%c0_32, %c0_33] : memref<8x256xf32, #tpu.memory_space<vmem>>, vector<8x256xf32>
    tpu.vector_store %arg13[%c0_32, %c0_33], %48 {strides = array<i32>} : memref<8x256xf32, #tpu.memory_space<vmem>>, vector<8x256xf32>,
    return
  }
  func.func @transform_0(%arg0: i32) -> (i32, i32) {
    %c0_i32 = arith.constant 0 : i32
    %c0_i32_0 = arith.constant 0 : i32
    return %arg0, %c0_i32 : i32, i32
  }
  func.func @transform_1(%arg0: i32) -> (i32, i32) {
    %c0_i32 = arith.constant 0 : i32
    %c0_i32_0 = arith.constant 0 : i32
    return %arg0, %c0_i32 : i32, i32
  }
  func.func @transform_2(%arg0: i32) -> (i32, i32) {
    %c0_i32 = arith.constant 0 : i32
    %c0_i32_0 = arith.constant 0 : i32
    %c0_i32_1 = arith.constant 0 : i32
    return %c0_i32, %c0_i32_0 : i32, i32
  }
  func.func @transform_3(%arg0: i32) -> (i32, i32) {
    %c0_i32 = arith.constant 0 : i32
    %c0_i32_0 = arith.constant 0 : i32
    %c0_i32_1 = arith.constant 0 : i32
    return %c0_i32, %c0_i32_0 : i32, i32
  }
  func.func @transform_4(%arg0: i32) -> (i32, i32) {
    %c0_i32 = arith.constant 0 : i32
    %c0_i32_0 = arith.constant 0 : i32
    %c0_i32_1 = arith.constant 0 : i32
    return %c0_i32, %c0_i32_0 : i32, i32
  }
  func.func @transform_5(%arg0: i32) -> (i32, i32) {
    %c0_i32 = arith.constant 0 : i32
    %c0_i32_0 = arith.constant 0 : i32
    %c0_i32_1 = arith.constant 0 : i32
    return %c0_i32, %c0_i32_0 : i32, i32
  }
  func.func @transform_6(%arg0: i32) -> (i32, i32) {
    %c0_i32 = arith.constant 0 : i32
    %c0_i32_0 = arith.constant 0 : i32
    %c0_i32_1 = arith.constant 0 : i32
    return %c0_i32, %c0_i32_0 : i32, i32
  }
  func.func @transform_7(%arg0: i32) -> (i32, i32) {
    %c0_i32 = arith.constant 0 : i32
    %c0_i32_0 = arith.constant 0 : i32
    %c0_i32_1 = arith.constant 0 : i32
    return %c0_i32, %c0_i32_0 : i32, i32
  }
  func.func @transform_8(%arg0: i32) -> (i32, i32) {
    %c0_i32 = arith.constant 0 : i32
    %c0_i32_0 = arith.constant 0 : i32
    %c0_i32_1 = arith.constant 0 : i32
    return %c0_i32, %c0_i32_0 : i32, i32
  }
  func.func @transform_9(%arg0: i32) -> (i32, i32) {
    %c0_i32 = arith.constant 0 : i32
    %c0_i32_0 = arith.constant 0 : i32
    %c0_i32_1 = arith.constant 0 : i32
    return %c0_i32, %c0_i32_0 : i32, i32
  }
  func.func @transform_10(%arg0: i32) -> (i32, i32) {
    %c0_i32 = arith.constant 0 : i32
    %c0_i32_0 = arith.constant 0 : i32
    %c0_i32_1 = arith.constant 0 : i32
    return %c0_i32, %c0_i32_0 : i32, i32
  }
  func.func @transform_11(%arg0: i32) -> (i32, i32) {
    %c0_i32 = arith.constant 0 : i32
    %c0_i32_0 = arith.constant 0 : i32
    %c0_i32_1 = arith.constant 0 : i32
    return %c0_i32, %c0_i32_0 : i32, i32
  }
  func.func @transform_12(%arg0: i32) -> (i32, i32) {
    %c0_i32 = arith.constant 0 : i32
    %c0_i32_0 = arith.constant 0 : i32
    return %arg0, %c0_i32 : i32, i32
  }
}

</mosaic_0001>

<bundles_post_ra>
// kernel: generator_forward.1
= control target key start
LH: loop header
LB: loop body
LE: loop exit
PB: predicated region body
PF: predicated region fallthrough
CT: control target
= control target key end

     0   :  { %v6183_v2 = vmov 0   ;;  %vm135_vm0 = vcmask 1041408   ;;  %s9248_s0 = inlined_call_operand.vmem [shape: s32[8,1], index: 0, kind: input, shape index: {}]   ;;  %s9249_s1 = inlined_call_operand.vmem [shape: bf16[8,100], index: 1, kind: input, shape index: {}]   ;;  %s9250_s2 = inlined_call_operand.vmem [shape: f32[16,128], index: 2, kind: input, shape index: {}]   ;;  %s9251_s3 = inlined_call_operand.vmem [shape: bf16[100,128], index: 3, kind: input, shape index: {}]   ;;  %s9252_s4 = inlined_call_operand.vmem [shape: bf16[128,256], index: 4, kind: input, shape index: {}]   ;;  %s9253_s5 = inlined_call_operand.vmem [shape: f32[1,256], index: 5, kind: input, shape index: {}]   ;;  %s9254_s6 = inlined_call_operand.vmem [shape: bf16[256,512], index: 6, kind: input, shape index: {}]   ;;  %s9255_s7 = inlined_call_operand.vmem [shape: f32[1,512], index: 7, kind: input, shape index: {}]   ;;  %s9256_s8 = inlined_call_operand.vmem [shape: bf16[512,1024], index: 8, kind: input, shape index: {}]   ;;  %s9257_s9 = inlined_call_operand.vmem [shape: f32[1,1024], index: 9, kind: input, shape index: {}]   ;;  %s9258_s10 = inlined_call_operand.vmem [shape: bf16[1024,256], index: 10, kind: input, shape index: {}]   ;;  %s9259_s11 = inlined_call_operand.vmem [shape: f32[1,256], index: 11, kind: input, shape index: {}]   ;;  %s9260_s12 = inlined_call_operand.hbm [shape: f32[8,256], index: 12, kind: output, shape index: {}]  }
   0x1   :  { %v43_v0 = vld [vmem:[%s9248_s0] sm:$0xff]  ;;  %v91_v1 = vld [vmem:[%s9251_s3 + $0x30] sm:$0x3]  ;;  %6151 = vset.pattern.permute.xlu0 %v6183_v2  ;;  %v53_v5 = vld [vmem:[%s9250_s2 + $0x8] sm:$0xff] }
   0x2   :  { %v117_v3 = vunpack.c.l.b16 %v91_v1  ;;  %47 = vperm.xlu0 %6151, %v43_v0  }
   0x4   :  { %v124_v4 = vpack.c.b16 %v117_v3, %v117_v3 }
   0x5   :  { %17 = vsyncpa [#allocation3], 0  ;;  %72 = vmatpush.msra.mxu0 %v53_v5  ;;  %v5683_v7 = vld [vmem:[%s9251_s3 + $0x28] sm:$0xff]  ;;  %v5682_v8 = vld [vmem:[%s9251_s3 + $0x20] sm:$0xff]  ;;  %vm131_vm1 = vcmask 818176   ;;  %v44_v39 = vlaneseq  ;;  %vm54_vm2 = vcmask 130048  }
   0x6   :  { %v137_v6 = vsel %vm135_vm0, %v124_v4, 0  ;;  %v5681_v9 = vld [vmem:[%s9251_s3 + $0x18] sm:$0xff]  ;;  %v5680_v10 = vld [vmem:[%s9251_s3 + $0x10] sm:$0xff]  ;;  %v5679_v11 = vld [vmem:[%s9251_s3 + $0x8] sm:$0xff]  ;;  %v6184_v42 = vmov 0.0   ;;  %s3786_s20 = sshll.u32 %s9260_s12, 4  ;;  %s3787_s20 = int_to_ptr.hbm [resolvable:$true] %s3786_s20 }
   0x7   :  { %140 = vmatpush.bf16.msra.mxu1 %v137_v6  ;;  %v5678_v12 = vld [vmem:[%s9251_s3] sm:$0xff]  ;;  %v3880_v15 = vld [vmem:[%s9252_s4 + $0x70] sm:$0xf]  ;;  %v5699_v16 = vld [vmem:[%s9252_s4 + $0x74] sm:$0xf0]  ;;  %v45_v40 = vand.u32 127, %v44_v39 }
   0x8   :  { %v78_v13 = vld [vmem:[%s9249_s1] sm:$0xf]  ;;  %v5698_v17 = vld [vmem:[%s9252_s4 + $0x74] sm:$0xf]  ;;  %v3881_v18 = vor.u32 %v5699_v16, %v3880_v15  ;;  %v3882_v19 = vld [vmem:[%s9252_s4 + $0x78] sm:$0xf0] }
   0x9   :  { %v52_v14 = vld [vmem:[%s9250_s2] sm:$0xff]  ;;  %v5697_v21 = vld [vmem:[%s9252_s4 + $0x64] sm:$0xf0]  ;;  %v3885_v22 = vor.u32 %v5698_v17, %v3882_v19  ;;  %v3874_v24 = vld [vmem:[%s9252_s4 + $0x68] sm:$0xf0] }
   0xa   :  { %73 = vmatpush.msra.mxu0 %v52_v14  ;;  %v3872_v20 = vld [vmem:[%s9252_s4 + $0x60] sm:$0xf]  ;;  %v5696_v23 = vld [vmem:[%s9252_s4 + $0x64] sm:$0xf]  ;;  %257 = vmatpush.bf16.msra.mxu2 %v3881_v18  ;;  %v3864_v27 = vld [vmem:[%s9252_s4 + $0x50] sm:$0xf] }
   0xb   :  { %141 = vmatpush.bf16.msra.mxu1 %v5683_v7  ;;  %v3873_v25 = vor.u32 %v5697_v21, %v3872_v20  ;;  %270 = vmatpush.bf16.msra.mxu3 %v3885_v22  ;;  %v3877_v26 = vor.u32 %v5696_v23, %v3874_v24  ;;  %v5695_v28 = vld [vmem:[%s9252_s4 + $0x54] sm:$0xf0]  ;;  %v5694_v29 = vld [vmem:[%s9252_s4 + $0x54] sm:$0xf]  ;;  %v3866_v30 = vld [vmem:[%s9252_s4 + $0x58] sm:$0xf0] }
   0xc   :  { %v3865_v31 = vor.u32 %v5695_v28, %v3864_v27  ;;  %v3869_v32 = vor.u32 %v5694_v29, %v3866_v30  ;;  %v3856_v33 = vld [vmem:[%s9252_s4 + $0x40] sm:$0xf]  ;;  %v5693_v34 = vld [vmem:[%s9252_s4 + $0x44] sm:$0xf0]  ;;  %v5692_v35 = vld [vmem:[%s9252_s4 + $0x44] sm:$0xf] }
   0xd   :  { %v3858_v36 = vld [vmem:[%s9252_s4 + $0x48] sm:$0xf0]  ;;  %v3857_v37 = vor.u32 %v5693_v34, %v3856_v33  ;;  %v3848_v44 = vld [vmem:[%s9252_s4 + $0x30] sm:$0xf]  ;;  %v5691_v45 = vld [vmem:[%s9252_s4 + $0x34] sm:$0xf0] }
   0xe   :  { %258 = vmatpush.bf16.msra.mxu2 %v3873_v25  ;;  %v3861_v38 = vor.u32 %v5692_v35, %v3858_v36  ;;  %v5690_v46 = vld [vmem:[%s9252_s4 + $0x34] sm:$0xf]  ;;  %v3849_v47 = vor.u32 %v5691_v45, %v3848_v44  ;;  %v3850_v48 = vld [vmem:[%s9252_s4 + $0x38] sm:$0xf0]  ;;  %v3840_v49 = vld [vmem:[%s9252_s4 + $0x20] sm:$0xf] }
   0xf   :  { %142 = vmatpush.bf16.msra.mxu1 %v5682_v8  ;;  %271 = vmatpush.bf16.msra.mxu3 %v3877_v26  ;;  %v5689_v50 = vld [vmem:[%s9252_s4 + $0x24] sm:$0xf0]  ;;  %v3853_v51 = vor.u32 %v5690_v46, %v3850_v48  ;;  %v5688_v52 = vld [vmem:[%s9252_s4 + $0x24] sm:$0xf]  ;;  %v3842_v53 = vld [vmem:[%s9252_s4 + $0x28] sm:$0xf0] }
  0x10   :  { %v3841_v54 = vor.u32 %v5689_v50, %v3840_v49  ;;  %v3845_v55 = vor.u32 %v5688_v52, %v3842_v53  ;;  %v3832_v58 = vld [vmem:[%s9252_s4 + $0x10] sm:$0xf]  ;;  %v5687_v59 = vld [vmem:[%s9252_s4 + $0x14] sm:$0xf0]  ;;  %v5686_v60 = vld [vmem:[%s9252_s4 + $0x14] sm:$0xf] }
  0x11   :  { %v3833_v61 = vor.u32 %v5687_v59, %v3832_v58  ;;  %v3834_v62 = vld [vmem:[%s9252_s4 + $0x18] sm:$0xf0]  ;;  %v3824_v0 = vld [vmem:[%s9252_s4] sm:$0xf]  ;;  %v5685_v1 = vld [vmem:[%s9252_s4 + $0x4] sm:$0xf0] }
  0x12   :  { %259 = vmatpush.bf16.msra.mxu2 %v3865_v31  ;;  %v3837_v63 = vor.u32 %v5686_v60, %v3834_v62  ;;  %v5684_v2 = vld [vmem:[%s9252_s4 + $0x4] sm:$0xf]  ;;  %v3825_v3 = vor.u32 %v5685_v1, %v3824_v0  ;;  %v3826_v4 = vld [vmem:[%s9252_s4 + $0x8] sm:$0xf0]  ;;  %v4000_v6 = vld [vmem:[%s9254_s6 + $0xe0] sm:$0xf] }
  0x13   :  { %143 = vmatpush.bf16.msra.mxu1 %v5681_v9  ;;  %272 = vmatpush.bf16.msra.mxu3 %v3869_v32  ;;  %v3829_v5 = vor.u32 %v5684_v2, %v3826_v4  ;;  %v5730_v7 = vld [vmem:[%s9254_s6 + $0xec] sm:$0xf0]  ;;  %v4128_v8 = vld [vmem:[%s9254_s6 + $0x1e0] sm:$0xf]  ;;  %v5760_v15 = vld [vmem:[%s9254_s6 + $0x1e4] sm:$0xf] }
  0x14   :  { %v4001_v9 = vor.u32 %v5730_v7, %v4000_v6  ;;  %v4130_v16 = vld [vmem:[%s9254_s6 + $0x1f0] sm:$0xf0]  ;;  %v3984_v17 = vld [vmem:[%s9254_s6 + $0xc0] sm:$0xf]  ;;  %v5726_v19 = vld [vmem:[%s9254_s6 + $0xcc] sm:$0xf0] }
  0x15   :  { %v4133_v18 = vor.u32 %v5760_v15, %v4130_v16  ;;  %v4112_v20 = vld [vmem:[%s9254_s6 + $0x1c0] sm:$0xf]  ;;  %v5758_v21 = vld [vmem:[%s9254_s6 + $0x1cc] sm:$0xf0]  ;;  %v3985_v22 = vor.u32 %v5726_v19, %v3984_v17  ;;  %v5724_v24 = vld [vmem:[%s9254_s6 + $0xc4] sm:$0xf] }
  0x16   :  { %260 = vmatpush.bf16.msra.mxu2 %v3857_v37  ;;  %683 = vmatpush.bf16.msrb.mxu0 %v4001_v9  ;;  %v4113_v23 = vor.u32 %v5758_v21, %v4112_v20  ;;  %v3986_v25 = vld [vmem:[%s9254_s6 + $0xd0] sm:$0xf0]  ;;  %v5756_v26 = vld [vmem:[%s9254_s6 + $0x1c4] sm:$0xf]  ;;  %v3968_v29 = vld [vmem:[%s9254_s6 + $0xa0] sm:$0xf] }
  0x17   :  { %144 = vmatpush.bf16.msra.mxu1 %v5680_v10  ;;  %273 = vmatpush.bf16.msra.mxu3 %v3861_v38  ;;  %v5762_v10 = vld [vmem:[%s9254_s6 + $0x1ec] sm:$0xf0]  ;;  %v3989_v27 = vor.u32 %v5724_v24, %v3986_v25  ;;  %v4114_v28 = vld [vmem:[%s9254_s6 + $0x1d0] sm:$0xf0]  ;;  %v4096_v32 = vld [vmem:[%s9254_s6 + $0x1a0] sm:$0xf] }
  0x18   :  { %v5722_v30 = vld [vmem:[%s9254_s6 + $0xac] sm:$0xf0]  ;;  %v4117_v31 = vor.u32 %v5756_v26, %v4114_v28  ;;  %v5720_v34 = vld [vmem:[%s9254_s6 + $0xa4] sm:$0xf]  ;;  %v3970_v36 = vld [vmem:[%s9254_s6 + $0xb0] sm:$0xf0] }
  0x19   :  { %v5754_v33 = vld [vmem:[%s9254_s6 + $0x1ac] sm:$0xf0]  ;;  %v3969_v35 = vor.u32 %v5722_v30, %v3968_v29  ;;  %v5752_v37 = vld [vmem:[%s9254_s6 + $0x1a4] sm:$0xf]  ;;  %v4098_v38 = vld [vmem:[%s9254_s6 + $0x1b0] sm:$0xf0] }
  0x1a   :  { %261 = vmatpush.bf16.msra.mxu2 %v3849_v47  ;;  %684 = vmatpush.bf16.msrb.mxu0 %v3985_v22  ;;  %v4097_v39 = vor.u32 %v5754_v33, %v4096_v32  ;;  %v4101_v44 = vor.u32 %v5752_v37, %v4098_v38  ;;  %v5750_v45 = vld [vmem:[%s9254_s6 + $0x18c] sm:$0xf0]  ;;  %v5716_v46 = vld [vmem:[%s9254_s6 + $0x84] sm:$0xf]  ;;  %v3954_v47 = vld [vmem:[%s9254_s6 + $0x90] sm:$0xf0] }
  0x1b   :  { %145 = vmatpush.bf16.msra.mxu1 %v5679_v11  ;;  %274 = vmatpush.bf16.msra.mxu3 %v3853_v51  ;;  %v5728_v11 = vld [vmem:[%s9254_s6 + $0xe4] sm:$0xf]  ;;  %v4082_v49 = vld [vmem:[%s9254_s6 + $0x190] sm:$0xf0]  ;;  %v3957_v52 = vor.u32 %v5716_v46, %v3954_v47  ;;  %v3936_v53 = vld [vmem:[%s9254_s6 + $0x60] sm:$0xf] }
  0x1c   :  { %v5748_v48 = vld [vmem:[%s9254_s6 + $0x184] sm:$0xf]  ;;  %v5746_v58 = vld [vmem:[%s9254_s6 + $0x16c] sm:$0xf0]  ;;  %v3938_v60 = vld [vmem:[%s9254_s6 + $0x70] sm:$0xf0] }
  0x1d   :  { %v5712_v59 = vld [vmem:[%s9254_s6 + $0x64] sm:$0xf]  ;;  %v4066_v62 = vld [vmem:[%s9254_s6 + $0x170] sm:$0xf0]  ;;  %v3920_v2 = vld [vmem:[%s9254_s6 + $0x40] sm:$0xf] }
  0x1e   :  { %262 = vmatpush.bf16.msra.mxu2 %v3841_v54  ;;  %685 = vmatpush.bf16.msrb.mxu0 %v3969_v35  ;;  %v5714_v54 = vld [vmem:[%s9254_s6 + $0x6c] sm:$0xf0]  ;;  %v3941_v1 = vor.u32 %v5712_v59, %v3938_v60  ;;  %v4048_v4 = vld [vmem:[%s9254_s6 + $0x140] sm:$0xf]  ;;  %v5708_v7 = vld [vmem:[%s9254_s6 + $0x44] sm:$0xf] }
  0x1f   :  { %146 = vmatpush.bf16.msra.mxu1 %v5678_v12  ;;  %275 = vmatpush.bf16.msra.mxu3 %v3845_v55  ;;  %v4002_v12 = vld [vmem:[%s9254_s6 + $0xf0] sm:$0xf0]  ;;  %v4064_v55 = vld [vmem:[%s9254_s6 + $0x160] sm:$0xf]  ;;  %v5742_v6 = vld [vmem:[%s9254_s6 + $0x14c] sm:$0xf0] }
  0x20   :  { %v4005_v14 = vor.u32 %v5728_v11, %v4002_v12  ;;  %v4065_v0 = vor.u32 %v5746_v58, %v4064_v55  ;;  %v5740_v9 = vld [vmem:[%s9254_s6 + $0x144] sm:$0xf]  ;;  %v4049_v12 = vor.u32 %v5742_v6, %v4048_v4  ;;  %v5706_v15 = vld [vmem:[%s9254_s6 + $0x2c] sm:$0xf0]  ;;  %v4032_v16 = vld [vmem:[%s9254_s6 + $0x120] sm:$0xf] }
  0x21   :  { %v5704_v19 = vld [vmem:[%s9254_s6 + $0x24] sm:$0xf]  ;;  %v3906_v20 = vld [vmem:[%s9254_s6 + $0x30] sm:$0xf0]  ;;  %v3888_v28 = vld [vmem:[%s9254_s6] sm:$0xf] }
  0x22   :  { %3821 = vmatmul.msk.bf16.vlgmr.msra.gmra.mxu1 %vm131_vm1, %v78_v13  ;;  %263 = vmatpush.bf16.msra.mxu2 %v3833_v61  ;;  %v4129_v13 = vor.u32 %v5762_v10, %v4128_v8  ;;  %v5744_v61 = vld [vmem:[%s9254_s6 + $0x164] sm:$0xf]  ;;  %v3922_v8 = vld [vmem:[%s9254_s6 + $0x50] sm:$0xf0]  ;;  %v5702_v29 = vld [vmem:[%s9254_s6 + $0xc] sm:$0xf0] }
  0x23   :  { %276 = vmatpush.bf16.msra.mxu3 %v3837_v63  ;;  %v3937_v63 = vor.u32 %v5714_v54, %v3936_v53  ;;  %v4050_v10 = vld [vmem:[%s9254_s6 + $0x150] sm:$0xf0]  ;;  %v5736_v21 = vld [vmem:[%s9254_s6 + $0x124] sm:$0xf]  ;;  %v4016_v30 = vld [vmem:[%s9254_s6 + $0x100] sm:$0xf]  ;;  %v3889_v37 = vor.u32 %v5702_v29, %v3888_v28 }
  0x24   :  { %696 = vmatpush.bf16.msrb.mxu1 %v4129_v13  ;;  %v3925_v13 = vor.u32 %v5708_v7, %v3922_v8  ;;  %v4053_v17 = vor.u32 %v5740_v9, %v4050_v10  ;;  %v4034_v22 = vld [vmem:[%s9254_s6 + $0x130] sm:$0xf0]  ;;  %v5700_v32 = vld [vmem:[%s9254_s6 + $0x4] sm:$0xf]  ;;  %v4008_v38 = vld [vmem:[%s9254_s6 + $0xe8] sm:$0xf] }
  0x25   :  { %v3890_v33 = vld [vmem:[%s9254_s6 + $0x10] sm:$0xf0]  ;;  %v5732_v35 = vld [vmem:[%s9254_s6 + $0x104] sm:$0xf]  ;;  %v5761_v47 = vld [vmem:[%s9254_s6 + $0x1ec] sm:$0xf] }
  0x26   :  { %264 = vmatpush.bf16.msra.mxu2 %v3825_v3  ;;  %v5710_v3 = vld [vmem:[%s9254_s6 + $0x4c] sm:$0xf0]  ;;  %v3893_v46 = vor.u32 %v5700_v32, %v3890_v33  ;;  %v3992_v54 = vld [vmem:[%s9254_s6 + $0xc8] sm:$0xf]  ;;  %v5727_v55 = vld [vmem:[%s9254_s6 + $0xd4] sm:$0xf0] }
  0x27   :  { %277 = vmatpush.bf16.msra.mxu3 %v3829_v5  ;;  %v4069_v5 = vor.u32 %v5744_v61, %v4066_v62  ;;  %v3921_v11 = vor.u32 %v5710_v3, %v3920_v2  ;;  %v5759_v59 = vld [vmem:[%s9254_s6 + $0x1d4] sm:$0xf0]  ;;  %v5725_v60 = vld [vmem:[%s9254_s6 + $0xcc] sm:$0xf]  ;;  %v3994_v61 = vld [vmem:[%s9254_s6 + $0xd8] sm:$0xf0] }
  0x28   :  { %697 = vmatpush.bf16.msrb.mxu1 %v4113_v23  ;;  %v5757_v62 = vld [vmem:[%s9254_s6 + $0x1cc] sm:$0xf]  ;;  %v3997_v2 = vor.u32 %v5725_v60, %v3994_v61  ;;  %v3976_v4 = vld [vmem:[%s9254_s6 + $0xa8] sm:$0xf]  ;;  %v5755_v8 = vld [vmem:[%s9254_s6 + $0x1b4] sm:$0xf0] }
  0x29   :  { %v4104_v7 = vld [vmem:[%s9254_s6 + $0x1a8] sm:$0xf]  ;;  %v5721_v9 = vld [vmem:[%s9254_s6 + $0xac] sm:$0xf]  ;;  %v5715_v29 = vld [vmem:[%s9254_s6 + $0x74] sm:$0xf0] }
  0x2a   :  { %709 = vmatpush.bf16.msrb.mxu2 %v4005_v14  ;;  %v3904_v14 = vld [vmem:[%s9254_s6 + $0x20] sm:$0xf]  ;;  %v4105_v10 = vor.u32 %v5755_v8, %v4104_v7  ;;  %v3944_v28 = vld [vmem:[%s9254_s6 + $0x68] sm:$0xf]  ;;  %v5713_v32 = vld [vmem:[%s9254_s6 + $0x6c] sm:$0xf] }
  0x2b   :  { %722 = vmatpush.bf16.msrb.mxu3 %v4133_v18  ;;  %v5738_v18 = vld [vmem:[%s9254_s6 + $0x12c] sm:$0xf0]  ;;  %v3905_v24 = vor.u32 %v5706_v15, %v3904_v14  ;;  %v3946_v33 = vld [vmem:[%s9254_s6 + $0x78] sm:$0xf0] }
  0x2c   :  { %698 = vmatpush.bf16.msrb.mxu1 %v4097_v39  ;;  %v4033_v26 = vor.u32 %v5738_v18, %v4032_v16  ;;  %v5731_v39 = vld [vmem:[%s9254_s6 + $0xf4] sm:$0xf0]  ;;  %v3960_v16 = vld [vmem:[%s9254_s6 + $0x88] sm:$0xf]  ;;  %v4042_v60 = vld [vmem:[%s9254_s6 + $0x138] sm:$0xf0] }
  0x2d   :  { %v4088_v18 = vld [vmem:[%s9254_s6 + $0x188] sm:$0xf]  ;;  %v4026_v7 = vld [vmem:[%s9254_s6 + $0x118] sm:$0xf0] }
  0x2e   :  { %710 = vmatpush.bf16.msrb.mxu2 %v3989_v27  ;;  %v3909_v27 = vor.u32 %v5704_v19, %v3906_v20  ;;  %v5751_v20 = vld [vmem:[%s9254_s6 + $0x194] sm:$0xf0] }
  0x2f   :  { %723 = vmatpush.bf16.msrb.mxu3 %v4117_v31  ;;  %v4037_v31 = vor.u32 %v5736_v21, %v4034_v22  ;;  %v5717_v21 = vld [vmem:[%s9254_s6 + $0x8c] sm:$0xf]  ;;  %v3962_v22 = vld [vmem:[%s9254_s6 + $0x98] sm:$0xf0] }
  0x33   :  { %724 = vmatpush.bf16.msrb.mxu3 %v4101_v44  ;;  %v4010_v44 = vld [vmem:[%s9254_s6 + $0xf8] sm:$0xf0] }
  0x74   :  { %v48_v41 = vpop.permute.xlu0 %47 }
  0x75   :  { %vm49_vm3 = vcmp.eq.s32.totalorder %v45_v40, %v48_v41  ;;  %v3973_v40 = vor.u32 %v5720_v34, %v3970_v36  ;;  %v3952_v41 = vld [vmem:[%s9254_s6 + $0x80] sm:$0xf]  ;;  %v4018_v36 = vld [vmem:[%s9254_s6 + $0x110] sm:$0xf0] }
  0x76   :  { %v3795_v43 = vsel %vm49_vm3, 1.0, %v6184_v42  ;;  %v5718_v42 = vld [vmem:[%s9254_s6 + $0x8c] sm:$0xf0] }
  0x77   :  { %3796 = vmatmul.msk.f32.vlgmr.msra.gmra.mxu0 %vm54_vm2, %v3795_v43  ;;  %v4080_v43 = vld [vmem:[%s9254_s6 + $0x180] sm:$0xf]  ;;  %v3953_v50 = vor.u32 %v5718_v42, %v3952_v41  ;;  %711 = vmatpush.bf16.msrb.mxu2 %v3973_v40  ;;  %v4136_v40 = vld [vmem:[%s9254_s6 + $0x1e8] sm:$0xf]  ;;  %v5763_v42 = vld [vmem:[%s9254_s6 + $0x1f4] sm:$0xf0] }
  0x78   :  { %v4081_v51 = vor.u32 %v5750_v45, %v4080_v43  ;;  %v5729_v43 = vld [vmem:[%s9254_s6 + $0xec] sm:$0xf] }
  0x79   :  { %686 = vmatpush.bf16.msrb.mxu0 %v3953_v50  ;;  %v4021_v50 = vor.u32 %v5732_v35, %v4018_v36  ;;  %v4013_v53 = vor.u32 %v5729_v43, %v4010_v44  ;;  %v3949_v35 = vor.u32 %v5713_v32, %v3946_v33  ;;  %v5745_v36 = vld [vmem:[%s9254_s6 + $0x16c] sm:$0xf]  ;;  %v4336_v33 = vld [vmem:[%s9256_s8 + $0x180] sm:$0xf] }
  0x7a   :  { %699 = vmatpush.bf16.msrb.mxu1 %v4081_v51  ;;  %v4009_v51 = vor.u32 %v5731_v39, %v4008_v38  ;;  %v3928_v38 = vld [vmem:[%s9254_s6 + $0x48] sm:$0xf] }
  0x7b   :  { %712 = vmatpush.bf16.msrb.mxu2 %v3957_v52  ;;  %v4137_v52 = vor.u32 %v5763_v42, %v4136_v40  ;;  %v5711_v40 = vld [vmem:[%s9254_s6 + $0x54] sm:$0xf0] }
  0x7c   :  { %v5743_v42 = vld [vmem:[%s9254_s6 + $0x154] sm:$0xf0]  ;;  %v3929_v43 = vor.u32 %v5711_v40, %v3928_v38  ;;  %v4592_v38 = vld [vmem:[%s9256_s8 + $0x380] sm:$0xf] }
  0x7d   :  { %687 = vmatpush.bf16.msrb.mxu0 %v3937_v63  ;;  %v4122_v63 = vld [vmem:[%s9254_s6 + $0x1d8] sm:$0xf0] }
  0x7e   :  { %700 = vmatpush.bf16.msrb.mxu1 %v4065_v0  ;;  %v3993_v0 = vor.u32 %v5727_v55, %v3992_v54  ;;  %v4125_v3 = vor.u32 %v5757_v62, %v4122_v63  ;;  %v5739_v54 = vld [vmem:[%s9254_s6 + $0x134] sm:$0xf0]  ;;  %v5705_v55 = vld [vmem:[%s9254_s6 + $0x2c] sm:$0xf]  ;;  %v3896_v63 = vld [vmem:[%s9254_s6 + $0x8] sm:$0xf] }
  0x7f   :  { %713 = vmatpush.bf16.msrb.mxu2 %v3941_v1 }
  0x81   :  { %688 = vmatpush.bf16.msrb.mxu0 %v3921_v11  ;;  %v3978_v11 = vld [vmem:[%s9254_s6 + $0xb8] sm:$0xf0] }
  0x82   :  { %701 = vmatpush.bf16.msrb.mxu1 %v4049_v12  ;;  %v5753_v12 = vld [vmem:[%s9254_s6 + $0x1ac] sm:$0xf]  ;;  %v3981_v14 = vor.u32 %v5721_v9, %v3978_v11 }
  0x83   :  { %714 = vmatpush.bf16.msrb.mxu2 %v3925_v13  ;;  %v4106_v13 = vld [vmem:[%s9254_s6 + $0x1b8] sm:$0xf0] }
  0x84   :  { %v4109_v15 = vor.u32 %v5753_v12, %v4106_v13  ;;  %v171_v12 = vld [vmem:[%s9253_s5] sm:$0x3] }
  0x85   :  { %689 = vmatpush.bf16.msrb.mxu0 %v3905_v24  ;;  %v3965_v24 = vor.u32 %v5717_v21, %v3962_v22  ;;  %v173_v13 = vperm.slane %v171_v12, 0  ;;  %v5824_v22 = vld [vmem:[%s9256_s8 + $0x1dc] sm:$0xf0] }
  0x86   :  { %702 = vmatpush.bf16.msrb.mxu1 %v4033_v26  ;;  %v4090_v26 = vld [vmem:[%s9254_s6 + $0x198] sm:$0xf0] }
  0x87   :  { %715 = vmatpush.bf16.msrb.mxu2 %v3909_v27 }
  0x89   :  { %690 = vmatpush.bf16.msrb.mxu0 %v3889_v37  ;;  %v4074_v37 = vld [vmem:[%s9254_s6 + $0x178] sm:$0xf0] }
  0x8a   :  { %v4077_v39 = vor.u32 %v5745_v36, %v4074_v37 }
  0x8b   :  { %716 = vmatpush.bf16.msrb.mxu2 %v3893_v46  ;;  %v3930_v46 = vld [vmem:[%s9254_s6 + $0x58] sm:$0xf0] }
  0x8d   :  { %735 = vmatpush.bf16.msra.mxu0 %v4009_v51  ;;  %v5707_v51 = vld [vmem:[%s9254_s6 + $0x34] sm:$0xf0] }
  0x91   :  { %736 = vmatpush.bf16.msra.mxu0 %v3993_v0  ;;  %v5703_v0 = vld [vmem:[%s9254_s6 + $0x14] sm:$0xf0] }
  0x92   :  { %v3897_v8 = vor.u32 %v5703_v0, %v3896_v63  ;;  %v4528_v63 = vld [vmem:[%s9256_s8 + $0x300] sm:$0xf] }
  0x93   :  { %v5864_v0 = vld [vmem:[%s9256_s8 + $0x31c] sm:$0xf0] }
  0x9f   :  { %v6356_v56 = vpop.f32.mrf.mxu1 }
  0xa7   :  { %v150_v57 = vpop.f32.mrf.mxu1 }
  0xa8   :  { %v4085_v57 = vor.u32 %v5748_v48, %v4082_v49  ;;  %v4138_v48 = vld [vmem:[%s9254_s6 + $0x1f8] sm:$0xf0] }
  0xa9   :  { %v4141_v58 = vor.u32 %v5761_v47, %v4138_v48  ;;  %v5741_v47 = vld [vmem:[%s9254_s6 + $0x14c] sm:$0xf] }
  0xaa   :  { %725 = vmatpush.bf16.msrb.mxu3 %v4085_v57  ;;  %v4120_v57 = vld [vmem:[%s9254_s6 + $0x1c8] sm:$0xf] }
  0xab   :  { %v4121_v1 = vor.u32 %v5759_v59, %v4120_v57  ;;  %v5737_v59 = vld [vmem:[%s9254_s6 + $0x12c] sm:$0xf] }
  0xae   :  { %726 = vmatpush.bf16.msrb.mxu3 %v4069_v5  ;;  %v5723_v5 = vld [vmem:[%s9254_s6 + $0xb4] sm:$0xf0] }
  0xaf   :  { %v3977_v6 = vor.u32 %v5723_v5, %v3976_v4  ;;  %v5701_v4 = vld [vmem:[%s9254_s6 + $0xc] sm:$0xf]  ;;  %v3898_v5 = vld [vmem:[%s9254_s6 + $0x18] sm:$0xf0] }
  0xb1   :  { %737 = vmatpush.bf16.msra.mxu0 %v3977_v6  ;;  %v5733_v6 = vld [vmem:[%s9254_s6 + $0x10c] sm:$0xf] }
  0xb2   :  { %727 = vmatpush.bf16.msrb.mxu3 %v4053_v17  ;;  %v5719_v17 = vld [vmem:[%s9254_s6 + $0x94] sm:$0xf0]  ;;  %v4029_v11 = vor.u32 %v5733_v6, %v4026_v7  ;;  %v5992_v6 = vld [vmem:[%s9256_s8 + $0x71c] sm:$0xf0] }
  0xb3   :  { %v3961_v19 = vor.u32 %v5719_v17, %v3960_v16 }
  0xb5   :  { %738 = vmatpush.bf16.msra.mxu0 %v3961_v19  ;;  %v4368_v19 = vld [vmem:[%s9256_s8 + $0x1c0] sm:$0xf] }
  0xb6   :  { %728 = vmatpush.bf16.msrb.mxu3 %v4037_v31  ;;  %v3945_v31 = vor.u32 %v5715_v29, %v3944_v28  ;;  %v5952_v28 = vld [vmem:[%s9256_s8 + $0x5dc] sm:$0xf0]  ;;  %v4369_v32 = vor.u32 %v5824_v22, %v4368_v19 }
  0xb7   :  { %v5136_v29 = vld [vmem:[%s9256_s8 + $0x7c0] sm:$0xf] }
  0xb9   :  { %739 = vmatpush.bf16.msra.mxu0 %v3945_v31 }
  0xba   :  { %729 = vmatpush.bf16.msrb.mxu3 %v4021_v50  ;;  %v3912_v50 = vld [vmem:[%s9254_s6 + $0x28] sm:$0xf] }
  0xbb   :  { %v3913_v57 = vor.u32 %v5707_v51, %v3912_v50  ;;  %v4560_v50 = vld [vmem:[%s9256_s8 + $0x340] sm:$0xf] }
  0xbc   :  { %v5872_v51 = vld [vmem:[%s9256_s8 + $0x35c] sm:$0xf0] }
  0xbd   :  { %740 = vmatpush.bf16.msra.mxu0 %v3929_v43  ;;  %v5944_v43 = vld [vmem:[%s9256_s8 + $0x59c] sm:$0xf0] }
  0xc1   :  { %741 = vmatpush.bf16.msra.mxu0 %v3913_v57  ;;  %v5072_v57 = vld [vmem:[%s9256_s8 + $0x740] sm:$0xf] }
  0xc5   :  { %742 = vmatpush.bf16.msra.mxu0 %v3897_v8  ;;  %v4240_v8 = vld [vmem:[%s9256_s8 + $0xc0] sm:$0xf] }
  0xf4   :  { %v75_v23 = vpop.f32.mrf.mxu0 }
  0xf5   :  { %v149_v25 = vadd.f32 %v6356_v56, %v75_v23  ;;  %v5734_v56 = vld [vmem:[%s9254_s6 + $0x10c] sm:$0xf0]  ;;  %v4089_v23 = vor.u32 %v5751_v20, %v4088_v18 }
  0xf6   :  { %v4017_v45 = vor.u32 %v5734_v56, %v4016_v30  ;;  %v4072_v30 = vld [vmem:[%s9254_s6 + $0x168] sm:$0xf]  ;;  %v5747_v56 = vld [vmem:[%s9254_s6 + $0x174] sm:$0xf0] }
  0xf7   :  { %v152_v34 = vmul.f32 0.2, %v149_v25 }
  0xf8   :  { %703 = vmatpush.bf16.msrb.mxu1 %v4017_v45  ;;  %v5709_v45 = vld [vmem:[%s9254_s6 + $0x4c] sm:$0xf] }
  0xf9   :  { %v153_v41 = vmax.f32 %v149_v25, %v152_v34  ;;  %v5749_v25 = vld [vmem:[%s9254_s6 + $0x18c] sm:$0xf]  ;;  %v4073_v34 = vor.u32 %v5747_v56, %v4072_v30  ;;  %v3933_v48 = vor.u32 %v5709_v45, %v3930_v46  ;;  %v6016_v30 = vld [vmem:[%s9256_s8 + $0x7dc] sm:$0xf0] }
  0xfa   :  { %v4093_v27 = vor.u32 %v5749_v25, %v4090_v26  ;;  %v4880_v25 = vld [vmem:[%s9256_s8 + $0x5c0] sm:$0xf] }
  0xfb   :  { %v154_v49 = vpack.c.bf16 %v153_v41, %v153_v41  ;;  %v4056_v41 = vld [vmem:[%s9254_s6 + $0x148] sm:$0xf]  ;;  %v4881_v40 = vor.u32 %v5952_v28, %v4880_v25  ;;  %v6008_v45 = vld [vmem:[%s9256_s8 + $0x79c] sm:$0xf0] }
  0xfc   :  { %748 = vmatpush.bf16.msra.mxu1 %v4137_v52  ;;  %v4057_v44 = vor.u32 %v5743_v42, %v4056_v41  ;;  %v4848_v41 = vld [vmem:[%s9256_s8 + $0x580] sm:$0xf]  ;;  %v5137_v42 = vor.u32 %v6016_v30, %v5136_v29 }
  0xfd   :  { %265 = vmatmul.bf16.vlgmr.msra.gmra.mxu2 %v154_v49  ;;  %278 = vmatmul.bf16.vlgmr.msra.gmra.mxu3 %v154_v49  ;;  %v4058_v49 = vld [vmem:[%s9254_s6 + $0x158] sm:$0xf0]  ;;  %v5912_v28 = vld [vmem:[%s9256_s8 + $0x49c] sm:$0xf0] }
  0xfe   :  { %761 = vmatpush.bf16.msra.mxu2 %v4013_v53  ;;  %774 = vmatpush.bf16.msra.mxu3 %v4141_v58  ;;  %v4061_v52 = vor.u32 %v5741_v47, %v4058_v49  ;;  %v4040_v53 = vld [vmem:[%s9254_s6 + $0x128] sm:$0xf]  ;;  %v3914_v58 = vld [vmem:[%s9254_s6 + $0x38] sm:$0xf0]  ;;  %v4304_v47 = vld [vmem:[%s9256_s8 + $0x140] sm:$0xf] }
  0xff   :  { %v4041_v61 = vor.u32 %v5739_v54, %v4040_v53  ;;  %v3917_v62 = vor.u32 %v5705_v55, %v3914_v58  ;;  %v4816_v53 = vld [vmem:[%s9256_s8 + $0x540] sm:$0xf] }
 0x100   :  { %749 = vmatpush.bf16.msra.mxu1 %v4121_v1  ;;  %v4024_v1 = vld [vmem:[%s9254_s6 + $0x108] sm:$0xf]  ;;  %v5936_v55 = vld [vmem:[%s9256_s8 + $0x55c] sm:$0xf0] }
 0x101   :  { %v6000_v58 = vld [vmem:[%s9256_s8 + $0x75c] sm:$0xf0] }
 0x102   :  { %762 = vmatpush.bf16.msra.mxu2 %v3997_v2  ;;  %775 = vmatpush.bf16.msra.mxu3 %v4125_v3  ;;  %v4045_v2 = vor.u32 %v5737_v59, %v4042_v60  ;;  %v5735_v3 = vld [vmem:[%s9254_s6 + $0x114] sm:$0xf0]  ;;  %v4272_v60 = vld [vmem:[%s9256_s8 + $0x100] sm:$0xf] }
 0x103   :  { %v4025_v9 = vor.u32 %v5735_v3, %v4024_v1  ;;  %v4817_v1 = vor.u32 %v5936_v55, %v4816_v53  ;;  %v5073_v3 = vor.u32 %v6000_v58, %v5072_v57  ;;  %v4976_v29 = vld [vmem:[%s9256_s8 + $0x680] sm:$0xf]  ;;  %v4626_v53 = vld [vmem:[%s9256_s8 + $0x3e0] sm:$0xf0] }
 0x104   :  { %750 = vmatpush.bf16.msra.mxu1 %v4105_v10  ;;  %v3901_v10 = vor.u32 %v5701_v4, %v3898_v5  ;;  %v5928_v4 = vld [vmem:[%s9256_s8 + $0x51c] sm:$0xf0] }
 0x105   :  { %v5040_v5 = vld [vmem:[%s9256_s8 + $0x700] sm:$0xf] }
 0x106   :  { %763 = vmatpush.bf16.msra.mxu2 %v3981_v14  ;;  %776 = vmatpush.bf16.msra.mxu3 %v4109_v15  ;;  %v174_v14 = vperm.slane %v171_v12, 1  ;;  %v5856_v12 = vld [vmem:[%s9256_s8 + $0x2dc] sm:$0xf0] }
 0x107   :  { %v5976_v30 = vld [vmem:[%s9256_s8 + $0x69c] sm:$0xf0] }
 0x108   :  { %751 = vmatpush.bf16.msra.mxu1 %v4089_v23  ;;  %v4624_v23 = vld [vmem:[%s9256_s8 + $0x3c0] sm:$0xf] }
 0x109   :  { %v5896_v55 = vld [vmem:[%s9256_s8 + $0x41c] sm:$0xf0] }
 0x10a   :  { %764 = vmatpush.bf16.msra.mxu2 %v3965_v24  ;;  %777 = vmatpush.bf16.msra.mxu3 %v4093_v27  ;;  %v5888_v24 = vld [vmem:[%s9256_s8 + $0x3dc] sm:$0xf0] }
 0x10c   :  { %752 = vmatpush.bf16.msra.mxu1 %v4073_v34  ;;  %v5816_v34 = vld [vmem:[%s9256_s8 + $0x19c] sm:$0xf0] }
 0x10d   :  { %v4337_v46 = vor.u32 %v5816_v34, %v4336_v33  ;;  %v4176_v33 = vld [vmem:[%s9256_s8 + $0x40] sm:$0xf] }
 0x10e   :  { %765 = vmatpush.bf16.msra.mxu2 %v3949_v35  ;;  %778 = vmatpush.bf16.msra.mxu3 %v4077_v39  ;;  %v4625_v35 = vor.u32 %v5888_v24, %v4624_v23  ;;  %v5880_v39 = vld [vmem:[%s9256_s8 + $0x39c] sm:$0xf0] }
 0x10f   :  { %v4593_v49 = vor.u32 %v5880_v39, %v4592_v38  ;;  %v4464_v23 = vld [vmem:[%s9256_s8 + $0x280] sm:$0xf]  ;;  %v4977_v38 = vor.u32 %v5976_v30, %v4976_v29 }
 0x110   :  { %753 = vmatpush.bf16.msra.mxu1 %v4057_v44  ;;  %v5104_v44 = vld [vmem:[%s9256_s8 + $0x780] sm:$0xf] }
 0x111   :  { %v5105_v54 = vor.u32 %v6008_v45, %v5104_v44  ;;  %v5848_v24 = vld [vmem:[%s9256_s8 + $0x29c] sm:$0xf0] }
 0x112   :  { %766 = vmatpush.bf16.msra.mxu2 %v3933_v48  ;;  %779 = vmatpush.bf16.msra.mxu3 %v4061_v52  ;;  %v5808_v48 = vld [vmem:[%s9256_s8 + $0x15c] sm:$0xf0]  ;;  %v4849_v52 = vor.u32 %v5944_v43, %v4848_v41 }
 0x113   :  { %v4305_v59 = vor.u32 %v5808_v48, %v4304_v47  ;;  %v5776_v34 = vld [vmem:[%s9256_s8 + $0x5c] sm:$0xf0] }
 0x114   :  { %754 = vmatpush.bf16.msra.mxu1 %v4041_v61  ;;  %v5800_v61 = vld [vmem:[%s9256_s8 + $0x11c] sm:$0xf0] }
 0x115   :  { %v4273_v7 = vor.u32 %v5800_v61, %v4272_v60  ;;  %v5904_v39 = vld [vmem:[%s9256_s8 + $0x45c] sm:$0xf0]  ;;  %v4882_v60 = vld [vmem:[%s9256_s8 + $0x5e0] sm:$0xf0] }
 0x116   :  { %767 = vmatpush.bf16.msra.mxu2 %v3917_v62  ;;  %780 = vmatpush.bf16.msra.mxu3 %v4045_v2  ;;  %v4561_v62 = vor.u32 %v5872_v51, %v4560_v50  ;;  %v4784_v2 = vld [vmem:[%s9256_s8 + $0x500] sm:$0xf]  ;;  %v4370_v51 = vld [vmem:[%s9256_s8 + $0x1e0] sm:$0xf0] }
 0x117   :  { %v5968_v41 = vld [vmem:[%s9256_s8 + $0x65c] sm:$0xf0] }
 0x118   :  { %755 = vmatpush.bf16.msra.mxu1 %v4025_v9  ;;  %v5792_v9 = vld [vmem:[%s9256_s8 + $0xdc] sm:$0xf0] }
 0x119   :  { %v4241_v19 = vor.u32 %v5792_v9, %v4240_v8  ;;  %v4144_v43 = vld [vmem:[%s9256_s8] sm:$0xf]  ;;  %v4306_v8 = vld [vmem:[%s9256_s8 + $0x160] sm:$0xf0] }
 0x11a   :  { %768 = vmatpush.bf16.msra.mxu2 %v3901_v10  ;;  %781 = vmatpush.bf16.msra.mxu3 %v4029_v11  ;;  %v4529_v10 = vor.u32 %v5864_v0, %v4528_v63  ;;  %v4496_v11 = vld [vmem:[%s9256_s8 + $0x2c0] sm:$0xf]  ;;  %v4338_v0 = vld [vmem:[%s9256_s8 + $0x1a0] sm:$0xf0] }
 0x11b   :  { %v4497_v22 = vor.u32 %v5856_v12, %v4496_v11  ;;  %v5768_v44 = vld [vmem:[%s9256_s8 + $0x1c] sm:$0xf0]  ;;  %v5868_v9 = vld [vmem:[%s9256_s8 + $0x344] sm:$0xf] }
 0x11c   :  { %v4400_v47 = vld [vmem:[%s9256_s8 + $0x200] sm:$0xf]  ;;  %v4145_v57 = vor.u32 %v5768_v44, %v4144_v43  ;;  %v4466_v43 = vld [vmem:[%s9256_s8 + $0x2a0] sm:$0xf0] }
 0x11d   :  { %v5832_v48 = vld [vmem:[%s9256_s8 + $0x21c] sm:$0xf0] }
 0x11e   :  { %v4401_v58 = vor.u32 %v5832_v48, %v4400_v47  ;;  %v5764_v48 = vld [vmem:[%s9256_s8 + $0x4] sm:$0xf] }
 0x180   :  { %v266_v15 = vpop.f32.mrf.mxu2  ;;  %v279_v16 = vpop.f32.mrf.mxu3 }
 0x181   :  { %v267_v17 = vadd.f32 %v266_v15, %v173_v13  ;;  %v280_v18 = vadd.f32 %v279_v16, %v174_v14  ;;  %v4785_v13 = vor.u32 %v5928_v4, %v4784_v2  ;;  %v4752_v14 = vld [vmem:[%s9256_s8 + $0x4c0] sm:$0xf]  ;;  %v5041_v15 = vor.u32 %v5992_v6, %v5040_v5  ;;  %v4594_v2 = vld [vmem:[%s9256_s8 + $0x3a0] sm:$0xf0] }
 0x182   :  { %v5920_v16 = vld [vmem:[%s9256_s8 + $0x4dc] sm:$0xf0]  ;;  %v5804_v6 = vld [vmem:[%s9256_s8 + $0x144] sm:$0xf] }
 0x183   :  { %v283_v20 = vmul.f32 0.2, %v267_v17  ;;  %v284_v21 = vmul.f32 0.2, %v280_v18  ;;  %v4753_v25 = vor.u32 %v5920_v16, %v4752_v14  ;;  %v4309_v11 = vor.u32 %v5804_v6, %v4306_v8  ;;  %v4274_v14 = vld [vmem:[%s9256_s8 + $0x120] sm:$0xf0] }
 0x184   :  { %v5788_v16 = vld [vmem:[%s9256_s8 + $0xc4] sm:$0xf] }
 0x185   :  { %v285_v26 = vmax.f32 %v267_v17, %v283_v20  ;;  %v286_v27 = vmax.f32 %v280_v18, %v284_v21  ;;  %v5008_v17 = vld [vmem:[%s9256_s8 + $0x6c0] sm:$0xf]  ;;  %v5908_v6 = vld [vmem:[%s9256_s8 + $0x484] sm:$0xf] }
 0x186   :  { %v5984_v18 = vld [vmem:[%s9256_s8 + $0x6dc] sm:$0xf0] }
 0x187   :  { %v6794_v31 = vpack.c.bf16 %v285_v26, %v285_v26  ;;  %v6796_v56 = vpack.c.bf16 %v286_v27, %v286_v27  ;;  %v4208_v20 = vld [vmem:[%s9256_s8 + $0x80] sm:$0xf]  ;;  %v5009_v27 = vor.u32 %v5984_v18, %v5008_v17  ;;  %v4242_v17 = vld [vmem:[%s9256_s8 + $0xe0] sm:$0xf0] }
 0x188   :  { %v268_v36 = vpop.f32.mrf.mxu2  ;;  %v281_v37 = vpop.f32.mrf.mxu3  ;;  %v5784_v21 = vld [vmem:[%s9256_s8 + $0x9c] sm:$0xf0]  ;;  %v4245_v18 = vor.u32 %v5788_v16, %v4242_v17  ;;  %v4978_v16 = vld [vmem:[%s9256_s8 + $0x6a0] sm:$0xf0] }
 0x189   :  { %691 = vmatmul.bf16.vlgmr.msrb.gmra.mxu0 %v6794_v31  ;;  %704 = vmatmul.bf16.vlgmr.msrb.gmra.mxu1 %v6796_v56  ;;  %v4720_v26 = vld [vmem:[%s9256_s8 + $0x480] sm:$0xf] }
 0x18a   :  { %717 = vmatmul.bf16.vlgmr.msrb.gmra.mxu2 %v6794_v31  ;;  %730 = vmatmul.bf16.vlgmr.msrb.gmra.mxu3 %v6796_v56  ;;  %v4432_v36 = vld [vmem:[%s9256_s8 + $0x240] sm:$0xf] }
 0x18b   :  { %2353 = vmatpush.bf16.msrb.mxu0 %v4369_v32  ;;  %2366 = vmatpush.bf16.msrb.mxu1 %v4625_v35  ;;  %v4209_v32 = vor.u32 %v5784_v21, %v4208_v20  ;;  %v4465_v35 = vor.u32 %v5848_v24, %v4464_v23  ;;  %v4688_v37 = vld [vmem:[%s9256_s8 + $0x440] sm:$0xf]  ;;  %v4530_v20 = vld [vmem:[%s9256_s8 + $0x320] sm:$0xf0] }
 0x18c   :  { %2379 = vmatpush.bf16.msrb.mxu2 %v4881_v40  ;;  %2392 = vmatpush.bf16.msrb.mxu3 %v5137_v42  ;;  %v4944_v40 = vld [vmem:[%s9256_s8 + $0x640] sm:$0xf]  ;;  %v4177_v42 = vor.u32 %v5776_v34, %v4176_v33  ;;  %v4210_v23 = vld [vmem:[%s9256_s8 + $0xa0] sm:$0xf0] }
 0x18d   :  { %v4945_v50 = vor.u32 %v5968_v41, %v4944_v40  ;;  %v5940_v24 = vld [vmem:[%s9256_s8 + $0x584] sm:$0xf] }
 0x18e   :  { %v4498_v33 = vld [vmem:[%s9256_s8 + $0x2e0] sm:$0xf0] }
 0x18f   :  { %2354 = vmatpush.bf16.msrb.mxu0 %v4337_v46  ;;  %2367 = vmatpush.bf16.msrb.mxu1 %v4593_v49  ;;  %v5820_v46 = vld [vmem:[%s9256_s8 + $0x1c4] sm:$0xf]  ;;  %v4689_v49 = vor.u32 %v5904_v39, %v4688_v37 }
 0x190   :  { %2380 = vmatpush.bf16.msrb.mxu2 %v4849_v52  ;;  %2393 = vmatpush.bf16.msrb.mxu3 %v5105_v54  ;;  %v5884_v52 = vld [vmem:[%s9256_s8 + $0x3c4] sm:$0xf]  ;;  %v4656_v54 = vld [vmem:[%s9256_s8 + $0x400] sm:$0xf]  ;;  %v4373_v61 = vor.u32 %v5820_v46, %v4370_v51 }
 0x191   :  { %v4629_v63 = vor.u32 %v5884_v52, %v4626_v53  ;;  %v6012_v34 = vld [vmem:[%s9256_s8 + $0x7c4] sm:$0xf] }
 0x192   :  { %v4178_v37 = vld [vmem:[%s9256_s8 + $0x60] sm:$0xf0] }
 0x193   :  { %2355 = vmatpush.bf16.msrb.mxu0 %v4305_v59  ;;  %2368 = vmatpush.bf16.msrb.mxu1 %v4561_v62  ;;  %v5948_v59 = vld [vmem:[%s9256_s8 + $0x5c4] sm:$0xf] }
 0x194   :  { %2381 = vmatpush.bf16.msrb.mxu2 %v4817_v1  ;;  %2394 = vmatpush.bf16.msrb.mxu3 %v5073_v3  ;;  %v5812_v62 = vld [vmem:[%s9256_s8 + $0x184] sm:$0xf]  ;;  %v4657_v3 = vor.u32 %v5896_v55, %v4656_v54  ;;  %v4885_v4 = vor.u32 %v5948_v59, %v4882_v60 }
 0x195   :  { %v5876_v1 = vld [vmem:[%s9256_s8 + $0x384] sm:$0xf]  ;;  %v4341_v5 = vor.u32 %v5812_v62, %v4338_v0 }
 0x196   :  { %v4818_v40 = vld [vmem:[%s9256_s8 + $0x560] sm:$0xf0] }
 0x197   :  { %2356 = vmatpush.bf16.msrb.mxu0 %v4273_v7  ;;  %2369 = vmatpush.bf16.msrb.mxu1 %v4529_v10  ;;  %v4597_v7 = vor.u32 %v5876_v1, %v4594_v2  ;;  %v4562_v10 = vld [vmem:[%s9256_s8 + $0x360] sm:$0xf0] }
 0x198   :  { %2382 = vmatpush.bf16.msrb.mxu2 %v4785_v13  ;;  %2395 = vmatpush.bf16.msrb.mxu3 %v5041_v15  ;;  %v4565_v12 = vor.u32 %v5868_v9, %v4562_v10  ;;  %v5796_v13 = vld [vmem:[%s9256_s8 + $0x104] sm:$0xf] }
 0x199   :  { %743 = vmatmul.bf16.vlgmr.msra.gmra.mxu0 %v6794_v31  ;;  %756 = vmatmul.bf16.vlgmr.msra.gmra.mxu1 %v6796_v56  ;;  %v4277_v15 = vor.u32 %v5796_v13, %v4274_v14  ;;  %v5106_v46 = vld [vmem:[%s9256_s8 + $0x7a0] sm:$0xf0] }
 0x19a   :  { %769 = vmatmul.bf16.vlgmr.msra.gmra.mxu2 %v6794_v31  ;;  %782 = vmatmul.bf16.vlgmr.msra.gmra.mxu3 %v6796_v56  ;;  %v5840_v31 = vld [vmem:[%s9256_s8 + $0x25c] sm:$0xf0]  ;;  %v4721_v56 = vor.u32 %v5912_v28, %v4720_v26  ;;  %v4850_v26 = vld [vmem:[%s9256_s8 + $0x5a0] sm:$0xf0] }
 0x19b   :  { %2357 = vmatpush.bf16.msrb.mxu0 %v4241_v19  ;;  %2370 = vmatpush.bf16.msrb.mxu1 %v4497_v22  ;;  %v4433_v45 = vor.u32 %v5840_v31, %v4432_v36  ;;  %v5860_v19 = vld [vmem:[%s9256_s8 + $0x304] sm:$0xf]  ;;  %v5960_v28 = vld [vmem:[%s9256_s8 + $0x61c] sm:$0xf0]  ;;  %v4853_v29 = vor.u32 %v5940_v24, %v4850_v26 }
 0x19c   :  { %2383 = vmatpush.bf16.msrb.mxu2 %v4753_v25  ;;  %2396 = vmatpush.bf16.msrb.mxu3 %v5009_v27  ;;  %v4533_v21 = vor.u32 %v5860_v19, %v4530_v20  ;;  %v5780_v22 = vld [vmem:[%s9256_s8 + $0x84] sm:$0xf]  ;;  %v4912_v27 = vld [vmem:[%s9256_s8 + $0x600] sm:$0xf] }
 0x19d   :  { %v4213_v25 = vor.u32 %v5780_v22, %v4210_v23  ;;  %v4913_v30 = vor.u32 %v5960_v28, %v4912_v27  ;;  %v5138_v36 = vld [vmem:[%s9256_s8 + $0x7e0] sm:$0xf0]  ;;  %v7157_v20 = vld [vmem:[%s9255_s7] sm:$0xf] }
 0x19e   :  { %v5141_v31 = vor.u32 %v6012_v34, %v5138_v36  ;;  %v4786_v52 = vld [vmem:[%s9256_s8 + $0x520] sm:$0xf0]  ;;  %v356_v34 = vperm.slane %v7157_v20, 1  ;;  %v4376_v36 = vld [vmem:[%s9256_s8 + $0x1c8] sm:$0xf] }
 0x19f   :  { %2358 = vmatpush.bf16.msrb.mxu0 %v4209_v32  ;;  %2371 = vmatpush.bf16.msrb.mxu1 %v4465_v35  ;;  %v5852_v32 = vld [vmem:[%s9256_s8 + $0x2c4] sm:$0xf] }
 0x1a0   :  { %2384 = vmatpush.bf16.msrb.mxu2 %v4721_v56  ;;  %2397 = vmatpush.bf16.msrb.mxu3 %v4977_v38  ;;  %v4501_v35 = vor.u32 %v5852_v32, %v4498_v33  ;;  %v5772_v56 = vld [vmem:[%s9256_s8 + $0x44] sm:$0xf] }
 0x1a1   :  { %v5932_v38 = vld [vmem:[%s9256_s8 + $0x544] sm:$0xf]  ;;  %v4181_v39 = vor.u32 %v5772_v56, %v4178_v37 }
 0x1a2   :  { %v4821_v41 = vor.u32 %v5932_v38, %v4818_v40  ;;  %v5836_v54 = vld [vmem:[%s9256_s8 + $0x244] sm:$0xf] }
 0x1a3   :  { %2359 = vmatpush.bf16.msrb.mxu0 %v4177_v42  ;;  %2372 = vmatpush.bf16.msrb.mxu1 %v4433_v45  ;;  %v5844_v42 = vld [vmem:[%s9256_s8 + $0x284] sm:$0xf] }
 0x1a4   :  { %2385 = vmatpush.bf16.msrb.mxu2 %v4689_v49  ;;  %2398 = vmatpush.bf16.msrb.mxu3 %v4945_v50  ;;  %v4469_v44 = vor.u32 %v5844_v42, %v4466_v43  ;;  %v6004_v45 = vld [vmem:[%s9256_s8 + $0x784] sm:$0xf] }
 0x1a5   :  { %v5109_v47 = vor.u32 %v6004_v45, %v5106_v46  ;;  %v4146_v49 = vld [vmem:[%s9256_s8 + $0x20] sm:$0xf0]  ;;  %v5817_v45 = vld [vmem:[%s9256_s8 + $0x1a4] sm:$0xf0] }
 0x1a6   :  { %v5924_v50 = vld [vmem:[%s9256_s8 + $0x504] sm:$0xf]  ;;  %v4149_v51 = vor.u32 %v5764_v48, %v4146_v49  ;;  %v4632_v49 = vld [vmem:[%s9256_s8 + $0x3c8] sm:$0xf] }
 0x1a7   :  { %2360 = vmatpush.bf16.msrb.mxu0 %v4145_v57  ;;  %2373 = vmatpush.bf16.msrb.mxu1 %v4401_v58  ;;  %v4789_v53 = vor.u32 %v5924_v50, %v4786_v52  ;;  %v4434_v55 = vld [vmem:[%s9256_s8 + $0x260] sm:$0xf0]  ;;  %v5889_v50 = vld [vmem:[%s9256_s8 + $0x3e4] sm:$0xf0] }
 0x1a8   :  { %2386 = vmatpush.bf16.msrb.mxu2 %v4657_v3  ;;  %2399 = vmatpush.bf16.msrb.mxu3 %v4913_v30  ;;  %v5996_v57 = vld [vmem:[%s9256_s8 + $0x744] sm:$0xf]  ;;  %v4437_v58 = vor.u32 %v5836_v54, %v4434_v55  ;;  %v4312_v52 = vld [vmem:[%s9256_s8 + $0x148] sm:$0xf] }
 0x1a9   :  { %v5074_v59 = vld [vmem:[%s9256_s8 + $0x760] sm:$0xf0] }
 0x1aa   :  { %v5077_v60 = vor.u32 %v5996_v57, %v5074_v59  ;;  %v4754_v62 = vld [vmem:[%s9256_s8 + $0x4e0] sm:$0xf0] }
 0x1ab   :  { %2405 = vmatpush.bf16.msra.mxu0 %v4373_v61  ;;  %2418 = vmatpush.bf16.msra.mxu1 %v4629_v63  ;;  %v5916_v61 = vld [vmem:[%s9256_s8 + $0x4c4] sm:$0xf] }
 0x1ac   :  { %2431 = vmatpush.bf16.msra.mxu2 %v4885_v4  ;;  %2444 = vmatpush.bf16.msra.mxu3 %v5141_v31  ;;  %v4757_v63 = vor.u32 %v5916_v61, %v4754_v62  ;;  %v5828_v0 = vld [vmem:[%s9256_s8 + $0x204] sm:$0xf]  ;;  %v5825_v31 = vld [vmem:[%s9256_s8 + $0x1e4] sm:$0xf0] }
 0x1ad   :  { %v4402_v1 = vld [vmem:[%s9256_s8 + $0x220] sm:$0xf0]  ;;  %v4377_v42 = vor.u32 %v5825_v31, %v4376_v36 }
 0x1ae   :  { %v5988_v2 = vld [vmem:[%s9256_s8 + $0x704] sm:$0xf]  ;;  %v4405_v3 = vor.u32 %v5828_v0, %v4402_v1  ;;  %v5881_v0 = vld [vmem:[%s9256_s8 + $0x3a4] sm:$0xf0] }
 0x1af   :  { %2406 = vmatpush.bf16.msra.mxu0 %v4341_v5  ;;  %2419 = vmatpush.bf16.msra.mxu1 %v4597_v7  ;;  %v5042_v4 = vld [vmem:[%s9256_s8 + $0x720] sm:$0xf0] }
 0x1b0   :  { %2432 = vmatpush.bf16.msra.mxu2 %v4853_v29  ;;  %2445 = vmatpush.bf16.msra.mxu3 %v5109_v47  ;;  %v5045_v5 = vor.u32 %v5988_v2, %v5042_v4  ;;  %v4722_v7 = vld [vmem:[%s9256_s8 + $0x4a0] sm:$0xf0]  ;;  %v4280_v2 = vld [vmem:[%s9256_s8 + $0x108] sm:$0xf] }
 0x1b1   :  { %v4725_v8 = vor.u32 %v5908_v6, %v4722_v7  ;;  %v5980_v9 = vld [vmem:[%s9256_s8 + $0x6c4] sm:$0xf]  ;;  %v358_v6 = vperm.slane %v7157_v20, 3 }
 0x1b2   :  { %v5010_v10 = vld [vmem:[%s9256_s8 + $0x6e0] sm:$0xf0] }
 0x1b3   :  { %2407 = vmatpush.bf16.msra.mxu0 %v4309_v11  ;;  %2420 = vmatpush.bf16.msra.mxu1 %v4565_v12  ;;  %v5013_v11 = vor.u32 %v5980_v9, %v5010_v10  ;;  %v5900_v12 = vld [vmem:[%s9256_s8 + $0x444] sm:$0xf]  ;;  %v5873_v9 = vld [vmem:[%s9256_s8 + $0x364] sm:$0xf0] }
 0x1b4   :  { %2433 = vmatpush.bf16.msra.mxu2 %v4821_v41  ;;  %2446 = vmatpush.bf16.msra.mxu3 %v5077_v60  ;;  %v4690_v13 = vld [vmem:[%s9256_s8 + $0x460] sm:$0xf0] }
 0x1b5   :  { %v4693_v14 = vor.u32 %v5900_v12, %v4690_v13  ;;  %v4658_v19 = vld [vmem:[%s9256_s8 + $0x420] sm:$0xf0]  ;;  %v5953_v12 = vld [vmem:[%s9256_s8 + $0x5e4] sm:$0xf0] }
 0x1b6   :  { %v5964_v22 = vld [vmem:[%s9256_s8 + $0x644] sm:$0xf]  ;;  %v4248_v13 = vld [vmem:[%s9256_s8 + $0xc8] sm:$0xf] }
 0x1b7   :  { %2408 = vmatpush.bf16.msra.mxu0 %v4277_v15  ;;  %2421 = vmatpush.bf16.msra.mxu1 %v4533_v21  ;;  %v5972_v15 = vld [vmem:[%s9256_s8 + $0x684] sm:$0xf] }
 0x1b8   :  { %2434 = vmatpush.bf16.msra.mxu2 %v4789_v53  ;;  %2447 = vmatpush.bf16.msra.mxu3 %v5045_v5  ;;  %v4981_v17 = vor.u32 %v5972_v15, %v4978_v16  ;;  %v4946_v23 = vld [vmem:[%s9256_s8 + $0x660] sm:$0xf0]  ;;  %v5809_v53 = vld [vmem:[%s9256_s8 + $0x164] sm:$0xf0] }
 0x1b9   :  { %v4949_v24 = vor.u32 %v5964_v22, %v4946_v23  ;;  %v5956_v26 = vld [vmem:[%s9256_s8 + $0x604] sm:$0xf]  ;;  %v4313_v62 = vor.u32 %v5809_v53, %v4312_v52  ;;  %v4536_v23 = vld [vmem:[%s9256_s8 + $0x308] sm:$0xf] }
 0x1ba   :  { %v4914_v27 = vld [vmem:[%s9256_s8 + $0x620] sm:$0xf0]  ;;  %v5849_v52 = vld [vmem:[%s9256_s8 + $0x2a4] sm:$0xf0] }
 0x1bb   :  { %2409 = vmatpush.bf16.msra.mxu0 %v4245_v18  ;;  %2422 = vmatpush.bf16.msra.mxu1 %v4501_v35  ;;  %v5892_v18 = vld [vmem:[%s9256_s8 + $0x404] sm:$0xf]  ;;  %v4917_v30 = vor.u32 %v5956_v26, %v4914_v27  ;;  %v4856_v27 = vld [vmem:[%s9256_s8 + $0x588] sm:$0xf] }
 0x1bc   :  { %2435 = vmatpush.bf16.msra.mxu2 %v4757_v63  ;;  %2448 = vmatpush.bf16.msra.mxu3 %v5013_v11  ;;  %v4661_v21 = vor.u32 %v5892_v18, %v4658_v19  ;;  %v4600_v63 = vld [vmem:[%s9256_s8 + $0x388] sm:$0xf] }
 0x1bd   :  { %v4601_v5 = vor.u32 %v5881_v0, %v4600_v63  ;;  %v4888_v11 = vld [vmem:[%s9256_s8 + $0x5c8] sm:$0xf]  ;;  %v5821_v0 = vld [vmem:[%s9256_s8 + $0x1cc] sm:$0xf] }
 0x1be   :  { %v4889_v22 = vor.u32 %v5953_v12, %v4888_v11  ;;  %v5112_v53 = vld [vmem:[%s9256_s8 + $0x788] sm:$0xf] }
 0x1bf   :  { %2410 = vmatpush.bf16.msra.mxu0 %v4213_v25  ;;  %2423 = vmatpush.bf16.msra.mxu1 %v4469_v44  ;;  %v355_v25 = vperm.slane %v7157_v20, 0  ;;  %v4344_v44 = vld [vmem:[%s9256_s8 + $0x188] sm:$0xf] }
 0x1c0   :  { %2436 = vmatpush.bf16.msra.mxu2 %v4725_v8  ;;  %2449 = vmatpush.bf16.msra.mxu3 %v4981_v17  ;;  %v4345_v48 = vor.u32 %v5817_v45, %v4344_v44  ;;  %v4568_v8 = vld [vmem:[%s9256_s8 + $0x348] sm:$0xf] }
 0x1c1   :  { %v4569_v18 = vor.u32 %v5873_v9, %v4568_v8  ;;  %v5777_v44 = vld [vmem:[%s9256_s8 + $0x64] sm:$0xf0] }
 0x1c2   :  { %v4760_v9 = vld [vmem:[%s9256_s8 + $0x4c8] sm:$0xf] }
 0x1c3   :  { %2411 = vmatpush.bf16.msra.mxu0 %v4181_v39  ;;  %2424 = vmatpush.bf16.msra.mxu1 %v4437_v58  ;;  %v4633_v58 = vor.u32 %v5889_v50, %v4632_v49  ;;  %v4472_v49 = vld [vmem:[%s9256_s8 + $0x288] sm:$0xf] }
 0x1c4   :  { %2437 = vmatpush.bf16.msra.mxu2 %v4693_v14  ;;  %2450 = vmatpush.bf16.msra.mxu3 %v4949_v24  ;;  %v5793_v14 = vld [vmem:[%s9256_s8 + $0xe4] sm:$0xf0] }
 0x1c5   :  { %v5865_v24 = vld [vmem:[%s9256_s8 + $0x324] sm:$0xf0]  ;;  %v4249_v26 = vor.u32 %v5793_v14, %v4248_v13  ;;  %v5813_v13 = vld [vmem:[%s9256_s8 + $0x18c] sm:$0xf] }
 0x1c6   :  { %v4346_v14 = vld [vmem:[%s9256_s8 + $0x1a8] sm:$0xf0] }
 0x1c7   :  { %2412 = vmatpush.bf16.msra.mxu0 %v4149_v51  ;;  %2425 = vmatpush.bf16.msra.mxu1 %v4405_v3  ;;  %v357_v51 = vperm.slane %v7157_v20, 2  ;;  %v5801_v3 = vld [vmem:[%s9256_s8 + $0x124] sm:$0xf0] }
 0x1c8   :  { %2438 = vmatpush.bf16.msra.mxu2 %v4661_v21  ;;  %2451 = vmatpush.bf16.msra.mxu3 %v4917_v30  ;;  %v4281_v7 = vor.u32 %v5801_v3, %v4280_v2  ;;  %v4216_v30 = vld [vmem:[%s9256_s8 + $0x88] sm:$0xf] }
 0x1c9   :  { %v4440_v2 = vld [vmem:[%s9256_s8 + $0x248] sm:$0xf] }
 0x206   :  { %v692_v28 = vpop.f32.mrf.mxu0  ;;  %v705_v29 = vpop.f32.mrf.mxu1 }
 0x207   :  { %v693_v32 = vadd.f32 %v692_v28, %v355_v25  ;;  %v5945_v28 = vld [vmem:[%s9256_s8 + $0x5a4] sm:$0xf0] }
 0x208   :  { %v4857_v31 = vor.u32 %v5945_v28, %v4856_v27  ;;  %v5805_v28 = vld [vmem:[%s9256_s8 + $0x14c] sm:$0xf] }
 0x209   :  { %v706_v33 = vadd.f32 %v705_v29, %v693_v32  ;;  %v5785_v32 = vld [vmem:[%s9256_s8 + $0xa4] sm:$0xf0] }
 0x20b   :  { %v787_v35 = vmul.f32 0.2, %v706_v33 }
 0x20d   :  { %v791_v56 = vmax.f32 %v706_v33, %v787_v35  ;;  %v718_v37 = vpop.f32.mrf.mxu2  ;;  %v731_v38 = vpop.f32.mrf.mxu3  ;;  %v4537_v33 = vor.u32 %v5865_v24, %v4536_v23  ;;  %v5857_v35 = vld [vmem:[%s9256_s8 + $0x2e4] sm:$0xf0] }
 0x20e   :  { %v719_v39 = vadd.f32 %v718_v37, %v356_v34  ;;  %v694_v40 = vpop.f32.mrf.mxu0  ;;  %v707_v41 = vpop.f32.mrf.mxu1  ;;  %v4504_v34 = vld [vmem:[%s9256_s8 + $0x2c8] sm:$0xf] }
 0x20f   :  { %v7179_v43 = vpack.c.bf16 %v791_v56, %v791_v56  ;;  %v5144_v56 = vld [vmem:[%s9256_s8 + $0x7c8] sm:$0xf] }
 0x210   :  { %v732_v46 = vadd.f32 %v731_v38, %v719_v39  ;;  %v6017_v37 = vld [vmem:[%s9256_s8 + $0x7e4] sm:$0xf0]  ;;  %v4217_v38 = vor.u32 %v5785_v32, %v4216_v30 }
 0x211   :  { %2361 = vmatmul.bf16.vlgmr.msrb.gmra.mxu0 %v7179_v43  ;;  %v4824_v39 = vld [vmem:[%s9256_s8 + $0x548] sm:$0xf] }
 0x212   :  { %v788_v47 = vmul.f32 0.2, %v732_v46  ;;  %2457 = vmatpush.bf16.msrb.mxu0 %v4377_v42  ;;  %v5937_v40 = vld [vmem:[%s9256_s8 + $0x564] sm:$0xf0] }
 0x213   :  { %v4184_v42 = vld [vmem:[%s9256_s8 + $0x48] sm:$0xf] }
 0x214   :  { %v792_v54 = vmax.f32 %v732_v46, %v788_v47  ;;  %v4505_v47 = vor.u32 %v5857_v35, %v4504_v34  ;;  %v4728_v23 = vld [vmem:[%s9256_s8 + $0x488] sm:$0xf]  ;;  %v5877_v35 = vld [vmem:[%s9256_s8 + $0x38c] sm:$0xf] }
 0x215   :  { %v720_v55 = vpop.f32.mrf.mxu2  ;;  %v733_v57 = vpop.f32.mrf.mxu3  ;;  %v5913_v24 = vld [vmem:[%s9256_s8 + $0x4a4] sm:$0xf0] }
 0x216   :  { %v7201_v59 = vpack.c.bf16 %v792_v54, %v792_v54  ;;  %2458 = vmatpush.bf16.msrb.mxu0 %v4345_v48  ;;  %v744_v60 = vpop.f32.mrf.mxu0  ;;  %v757_v61 = vpop.f32.mrf.mxu1  ;;  %v5145_v48 = vor.u32 %v6017_v37, %v5144_v56  ;;  %v6009_v54 = vld [vmem:[%s9256_s8 + $0x7a4] sm:$0xf0]  ;;  %v4185_v55 = vor.u32 %v5777_v44, %v4184_v42  ;;  %v4729_v34 = vor.u32 %v5913_v24, %v4728_v23  ;;  %v5845_v24 = vld [vmem:[%s9256_s8 + $0x28c] sm:$0xf] }
 0x217   :  { %v745_v1 = vadd.f32 %v744_v60, %v357_v51  ;;  %v4825_v51 = vor.u32 %v5937_v40, %v4824_v39  ;;  %v4792_v57 = vld [vmem:[%s9256_s8 + $0x508] sm:$0xf]  ;;  %v5113_v63 = vor.u32 %v6009_v54, %v5112_v53  ;;  %v5797_v39 = vld [vmem:[%s9256_s8 + $0x10c] sm:$0xf] }
 0x218   :  { %2374 = vmatmul.bf16.vlgmr.msrb.gmra.mxu1 %v7201_v59  ;;  %v4152_v60 = vld [vmem:[%s9256_s8 + $0x8] sm:$0xf]  ;;  %v4282_v40 = vld [vmem:[%s9256_s8 + $0x128] sm:$0xf0] }
 0x219   :  { %v758_v4 = vadd.f32 %v757_v61, %v745_v1  ;;  %2470 = vmatpush.bf16.msrb.mxu1 %v4633_v58  ;;  %v5929_v58 = vld [vmem:[%s9256_s8 + $0x524] sm:$0xf0]  ;;  %v4378_v1 = vld [vmem:[%s9256_s8 + $0x1e8] sm:$0xf0] }
 0x21a   :  { %2459 = vmatpush.bf16.msrb.mxu0 %v4313_v62  ;;  %v5769_v61 = vld [vmem:[%s9256_s8 + $0x24] sm:$0xf0]  ;;  %v4473_v62 = vor.u32 %v5849_v52, %v4472_v49  ;;  %v4793_v3 = vor.u32 %v5929_v58, %v4792_v57  ;;  %v4381_v8 = vor.u32 %v5821_v0, %v4378_v1  ;;  %v5789_v52 = vld [vmem:[%s9256_s8 + $0xcc] sm:$0xf] }
 0x21b   :  { %v789_v10 = vmul.f32 0.2, %v758_v4  ;;  %v5016_v32 = vld [vmem:[%s9256_s8 + $0x6c8] sm:$0xf]  ;;  %v4250_v54 = vld [vmem:[%s9256_s8 + $0xe8] sm:$0xf0] }
 0x21c   :  { %v4696_v56 = vld [vmem:[%s9256_s8 + $0x448] sm:$0xf]  ;;  %v4890_v57 = vld [vmem:[%s9256_s8 + $0x5e8] sm:$0xf0]  ;;  %v4253_v1 = vor.u32 %v5789_v52, %v4250_v54  ;;  %v5818_v52 = vld [vmem:[%s9256_s8 + $0x1ac] sm:$0xf0] }
 0x21d   :  { %v793_v15 = vmax.f32 %v758_v4, %v789_v10  ;;  %2471 = vmatpush.bf16.msrb.mxu1 %v4601_v5  ;;  %v770_v16 = vpop.f32.mrf.mxu2  ;;  %v783_v17 = vpop.f32.mrf.mxu3  ;;  %v5841_v4 = vld [vmem:[%s9256_s8 + $0x264] sm:$0xf0]  ;;  %v4538_v0 = vld [vmem:[%s9256_s8 + $0x328] sm:$0xf0] }
 0x21e   :  { %v771_v19 = vadd.f32 %v770_v16, %v358_v6  ;;  %2460 = vmatpush.bf16.msrb.mxu0 %v4281_v7  ;;  %v746_v20 = vpop.f32.mrf.mxu0  ;;  %v759_v21 = vpop.f32.mrf.mxu1  ;;  %v5080_v5 = vld [vmem:[%s9256_s8 + $0x748] sm:$0xf]  ;;  %v4153_v7 = vor.u32 %v5769_v61, %v4152_v60  ;;  %v4441_v11 = vor.u32 %v5841_v4, %v4440_v2  ;;  %v4410_v54 = vld [vmem:[%s9256_s8 + $0x228] sm:$0xf0] }
 0x21f   :  { %v7241_v25 = vpack.c.bf16 %v793_v15, %v793_v15  ;;  %v6001_v6 = vld [vmem:[%s9256_s8 + $0x764] sm:$0xf0]  ;;  %v5885_v20 = vld [vmem:[%s9256_s8 + $0x3cc] sm:$0xf] }
 0x220   :  { %v784_v29 = vadd.f32 %v783_v17, %v771_v19  ;;  %v5921_v10 = vld [vmem:[%s9256_s8 + $0x4e4] sm:$0xf0]  ;;  %v5081_v12 = vor.u32 %v6001_v6, %v5080_v5  ;;  %v4634_v21 = vld [vmem:[%s9256_s8 + $0x3e8] sm:$0xf0] }
 0x221   :  { %2472 = vmatpush.bf16.msrb.mxu1 %v4569_v18  ;;  %2387 = vmatmul.bf16.vlgmr.msrb.gmra.mxu2 %v7241_v25  ;;  %v4408_v15 = vld [vmem:[%s9256_s8 + $0x208] sm:$0xf]  ;;  %v4761_v19 = vor.u32 %v5921_v10, %v4760_v9  ;;  %v4637_v30 = vor.u32 %v5885_v20, %v4634_v21  ;;  %v4218_v5 = vld [vmem:[%s9256_s8 + $0xa8] sm:$0xf0] }
 0x222   :  { %v790_v36 = vmul.f32 0.2, %v784_v29  ;;  %2413 = vmatmul.bf16.vlgmr.msra.gmra.mxu0 %v7179_v43  ;;  %2483 = vmatpush.bf16.msrb.mxu2 %v4889_v22  ;;  %v5833_v16 = vld [vmem:[%s9256_s8 + $0x224] sm:$0xf0]  ;;  %v4349_v22 = vor.u32 %v5813_v13, %v4346_v14  ;;  %v5941_v6 = vld [vmem:[%s9256_s8 + $0x58c] sm:$0xf] }
 0x223   :  { %2461 = vmatpush.bf16.msrb.mxu0 %v4249_v26  ;;  %v5048_v17 = vld [vmem:[%s9256_s8 + $0x708] sm:$0xf]  ;;  %v4409_v26 = vor.u32 %v5833_v16, %v4408_v15  ;;  %v6013_v13 = vld [vmem:[%s9256_s8 + $0x7cc] sm:$0xf] }
 0x224   :  { %v794_v41 = vmax.f32 %v784_v29, %v790_v36  ;;  %v5993_v18 = vld [vmem:[%s9256_s8 + $0x724] sm:$0xf0]  ;;  %v4314_v29 = vld [vmem:[%s9256_s8 + $0x168] sm:$0xf0] }
 0x225   :  { %2473 = vmatpush.bf16.msrb.mxu1 %v4537_v33  ;;  %v772_v45 = vpop.f32.mrf.mxu2  ;;  %v785_v46 = vpop.f32.mrf.mxu3  ;;  %v5049_v27 = vor.u32 %v5993_v18, %v5048_v17  ;;  %v5985_v33 = vld [vmem:[%s9256_s8 + $0x6e4] sm:$0xf0]  ;;  %v4602_v36 = vld [vmem:[%s9256_s8 + $0x3a8] sm:$0xf0] }
 0x226   :  { %v7284_v50 = vpack.c.bf16 %v794_v41, %v794_v41  ;;  %2484 = vmatpush.bf16.msrb.mxu2 %v4857_v31  ;;  %v4317_v31 = vor.u32 %v5805_v28, %v4314_v29  ;;  %v5905_v37 = vld [vmem:[%s9256_s8 + $0x464] sm:$0xf0]  ;;  %v4605_v41 = vor.u32 %v5877_v35, %v4602_v36  ;;  %v5869_v46 = vld [vmem:[%s9256_s8 + $0x34c] sm:$0xf] }
 0x227   :  { %2462 = vmatpush.bf16.msrb.mxu0 %v4217_v38  ;;  %v5017_v38 = vor.u32 %v5985_v33, %v5016_v32  ;;  %v4984_v42 = vld [vmem:[%s9256_s8 + $0x688] sm:$0xf]  ;;  %v4697_v45 = vor.u32 %v5905_v37, %v4696_v56  ;;  %v5146_v14 = vld [vmem:[%s9256_s8 + $0x7e8] sm:$0xf0]  ;;  %v4384_v56 = vld [vmem:[%s9256_s8 + $0x1d0] sm:$0xf] }
 0x228   :  { %2400 = vmatmul.bf16.vlgmr.msrb.gmra.mxu3 %v7284_v50  ;;  %2426 = vmatmul.bf16.vlgmr.msra.gmra.mxu1 %v7201_v59  ;;  %v5977_v44 = vld [vmem:[%s9256_s8 + $0x6a4] sm:$0xf0]  ;;  %v5773_v17 = vld [vmem:[%s9256_s8 + $0x4c] sm:$0xf]  ;;  %v5149_v23 = vor.u32 %v6013_v13, %v5146_v14  ;;  %v5826_v37 = vld [vmem:[%s9256_s8 + $0x1ec] sm:$0xf0] }
 0x229   :  { %2474 = vmatpush.bf16.msrb.mxu1 %v4505_v47  ;;  %2496 = vmatpush.bf16.msrb.mxu3 %v5145_v48  ;;  %v4570_v47 = vld [vmem:[%s9256_s8 + $0x368] sm:$0xf0]  ;;  %v4285_v48 = vor.u32 %v5797_v39, %v4282_v40  ;;  %v4664_v49 = vld [vmem:[%s9256_s8 + $0x408] sm:$0xf]  ;;  %v4985_v53 = vor.u32 %v5977_v44, %v4984_v42 }
 0x22a   :  { %2485 = vmatpush.bf16.msrb.mxu2 %v4825_v51  ;;  %v5897_v51 = vld [vmem:[%s9256_s8 + $0x424] sm:$0xf0]  ;;  %v4573_v58 = vor.u32 %v5869_v46, %v4570_v47  ;;  %v5933_v20 = vld [vmem:[%s9256_s8 + $0x54c] sm:$0xf] }
 0x22b   :  { %2463 = vmatpush.bf16.msrb.mxu0 %v4185_v55  ;;  %v5949_v55 = vld [vmem:[%s9256_s8 + $0x5cc] sm:$0xf]  ;;  %v4952_v60 = vld [vmem:[%s9256_s8 + $0x648] sm:$0xf] }
 0x22c   :  { %v5969_v61 = vld [vmem:[%s9256_s8 + $0x664] sm:$0xf0]  ;;  %v4893_v2 = vor.u32 %v5949_v55, %v4890_v57  ;;  %v4826_v21 = vld [vmem:[%s9256_s8 + $0x568] sm:$0xf0] }
 0x22d   :  { %2475 = vmatpush.bf16.msrb.mxu1 %v4473_v62  ;;  %2497 = vmatpush.bf16.msrb.mxu3 %v5113_v63  ;;  %v4665_v62 = vor.u32 %v5897_v51, %v4664_v49  ;;  %v5861_v63 = vld [vmem:[%s9256_s8 + $0x30c] sm:$0xf]  ;;  %v4953_v4 = vor.u32 %v5969_v61, %v4952_v60  ;;  %v4920_v9 = vld [vmem:[%s9256_s8 + $0x608] sm:$0xf]  ;;  %v4352_v51 = vld [vmem:[%s9256_s8 + $0x190] sm:$0xf] }
 0x22e   :  { %2486 = vmatpush.bf16.msrb.mxu2 %v4793_v3  ;;  %v5781_v3 = vld [vmem:[%s9256_s8 + $0x8c] sm:$0xf]  ;;  %v5961_v10 = vld [vmem:[%s9256_s8 + $0x624] sm:$0xf0]  ;;  %v4640_v60 = vld [vmem:[%s9256_s8 + $0x3d0] sm:$0xf] }
 0x22f   :  { %2464 = vmatpush.bf16.msrb.mxu0 %v4153_v7  ;;  %v4858_v7 = vld [vmem:[%s9256_s8 + $0x5a8] sm:$0xf0]  ;;  %v4221_v15 = vor.u32 %v5781_v3, %v4218_v5  ;;  %v4921_v18 = vor.u32 %v5961_v10, %v4920_v9  ;;  %v5890_v61 = vld [vmem:[%s9256_s8 + $0x3ec] sm:$0xf0] }
 0x230   :  { %v4861_v16 = vor.u32 %v5941_v6, %v4858_v7  ;;  %v5114_v28 = vld [vmem:[%s9256_s8 + $0x7a8] sm:$0xf0]  ;;  %v4320_v3 = vld [vmem:[%s9256_s8 + $0x150] sm:$0xf]  ;;  %v4641_v5 = vor.u32 %v5890_v61, %v4640_v60 }
 0x231   :  { %2476 = vmatpush.bf16.msrb.mxu1 %v4441_v11  ;;  %2498 = vmatpush.bf16.msrb.mxu3 %v5081_v12  ;;  %v5853_v11 = vld [vmem:[%s9256_s8 + $0x2cc] sm:$0xf]  ;;  %v4608_v9 = vld [vmem:[%s9256_s8 + $0x390] sm:$0xf] }
 0x232   :  { %2439 = vmatmul.bf16.vlgmr.msra.gmra.mxu2 %v7241_v25  ;;  %2465 = vmatmul.bf16.vlgmr.msrb.gmra.mxu0 %v7179_v43  ;;  %v4506_v12 = vld [vmem:[%s9256_s8 + $0x2e8] sm:$0xf0]  ;;  %v5882_v10 = vld [vmem:[%s9256_s8 + $0x3ac] sm:$0xf0] }
 0x233   :  { %2509 = vmatpush.bf16.msra.mxu0 %v4381_v8  ;;  %2487 = vmatpush.bf16.msrb.mxu2 %v4761_v19  ;;  %v4541_v8 = vor.u32 %v5861_v63, %v4538_v0  ;;  %v4186_v19 = vld [vmem:[%s9256_s8 + $0x68] sm:$0xf0] }
 0x234   :  { %v4189_v29 = vor.u32 %v5773_v17, %v4186_v19  ;;  %v5765_v32 = vld [vmem:[%s9256_s8 + $0xc] sm:$0xf]  ;;  %v4609_v17 = vor.u32 %v5882_v10, %v4608_v9  ;;  %v5930_v9 = vld [vmem:[%s9256_s8 + $0x52c] sm:$0xf0] }
 0x235   :  { %2477 = vmatpush.bf16.msrb.mxu1 %v4409_v26  ;;  %2499 = vmatpush.bf16.msrb.mxu3 %v5049_v27  ;;  %v4474_v26 = vld [vmem:[%s9256_s8 + $0x2a8] sm:$0xf0] }
 0x236   :  { %v6005_v27 = vld [vmem:[%s9256_s8 + $0x78c] sm:$0xf]  ;;  %v4477_v36 = vor.u32 %v5845_v24, %v4474_v26 }
 0x237   :  { %2510 = vmatpush.bf16.msra.mxu0 %v4349_v22  ;;  %2488 = vmatpush.bf16.msrb.mxu2 %v4729_v34  ;;  %v4509_v22 = vor.u32 %v5853_v11, %v4506_v12  ;;  %v4154_v33 = vld [vmem:[%s9256_s8 + $0x28] sm:$0xf0] }
 0x238   :  { %2452 = vmatmul.bf16.vlgmr.msra.gmra.mxu3 %v7284_v50  ;;  %2478 = vmatmul.bf16.vlgmr.msrb.gmra.mxu1 %v7201_v59  ;;  %v5925_v34 = vld [vmem:[%s9256_s8 + $0x50c] sm:$0xf]  ;;  %v4157_v42 = vor.u32 %v5765_v32, %v4154_v33  ;;  %v5954_v32 = vld [vmem:[%s9256_s8 + $0x5ec] sm:$0xf0] }
 0x239   :  { %2522 = vmatpush.bf16.msra.mxu1 %v4637_v30  ;;  %2500 = vmatpush.bf16.msrb.mxu3 %v5017_v38  ;;  %v4829_v30 = vor.u32 %v5933_v20, %v4826_v21  ;;  %v4794_v35 = vld [vmem:[%s9256_s8 + $0x528] sm:$0xf0]  ;;  %v4576_v21 = vld [vmem:[%s9256_s8 + $0x350] sm:$0xf] }
 0x23a   :  { %v5837_v38 = vld [vmem:[%s9256_s8 + $0x24c] sm:$0xf]  ;;  %v4797_v44 = vor.u32 %v5925_v34, %v4794_v35 }
 0x23b   :  { %2511 = vmatpush.bf16.msra.mxu0 %v4317_v31  ;;  %2489 = vmatpush.bf16.msrb.mxu2 %v4697_v45  ;;  %v5117_v31 = vor.u32 %v6005_v27, %v5114_v28  ;;  %v4442_v39 = vld [vmem:[%s9256_s8 + $0x268] sm:$0xf0]  ;;  %v4385_v45 = vor.u32 %v5826_v37, %v4384_v56  ;;  %v4256_v27 = vld [vmem:[%s9256_s8 + $0xd0] sm:$0xf] }
 0x23c   :  { %v5997_v40 = vld [vmem:[%s9256_s8 + $0x74c] sm:$0xf]  ;;  %v5866_v56 = vld [vmem:[%s9256_s8 + $0x32c] sm:$0xf0] }
 0x23d   :  { %2523 = vmatpush.bf16.msra.mxu1 %v4605_v41  ;;  %2501 = vmatpush.bf16.msrb.mxu3 %v4985_v53  ;;  %v5082_v41 = vld [vmem:[%s9256_s8 + $0x768] sm:$0xf0] }
 0x23e   :  { %v5917_v46 = vld [vmem:[%s9256_s8 + $0x4cc] sm:$0xf]  ;;  %v5085_v49 = vor.u32 %v5997_v40, %v5082_v41  ;;  %v5786_v41 = vld [vmem:[%s9256_s8 + $0xac] sm:$0xf0] }
 0x23f   :  { %2512 = vmatpush.bf16.msra.mxu0 %v4285_v48  ;;  %2490 = vmatpush.bf16.msrb.mxu2 %v4665_v62  ;;  %v4762_v47 = vld [vmem:[%s9256_s8 + $0x4e8] sm:$0xf0]  ;;  %v4445_v48 = vor.u32 %v5837_v38, %v4442_v39  ;;  %v4353_v62 = vor.u32 %v5818_v52, %v4352_v51  ;;  %v4224_v39 = vld [vmem:[%s9256_s8 + $0x90] sm:$0xf] }
 0x240   :  { %v5829_v53 = vld [vmem:[%s9256_s8 + $0x20c] sm:$0xf]  ;;  %v5152_v51 = vld [vmem:[%s9256_s8 + $0x7d0] sm:$0xf] }
 0x241   :  { %2524 = vmatpush.bf16.msra.mxu1 %v4573_v58  ;;  %2502 = vmatpush.bf16.msrb.mxu3 %v4953_v4  ;;  %v5989_v55 = vld [vmem:[%s9256_s8 + $0x70c] sm:$0xf]  ;;  %v4765_v58 = vor.u32 %v5917_v46, %v4762_v47  ;;  %v5810_v4 = vld [vmem:[%s9256_s8 + $0x16c] sm:$0xf0] }
 0x242   :  { %2491 = vmatmul.bf16.vlgmr.msrb.gmra.mxu2 %v7241_v25  ;;  %v5050_v57 = vld [vmem:[%s9256_s8 + $0x728] sm:$0xf0]  ;;  %v4321_v11 = vor.u32 %v5810_v4, %v4320_v3  ;;  %v6018_v52 = vld [vmem:[%s9256_s8 + $0x7ec] sm:$0xf0] }
 0x243   :  { %2513 = vmatpush.bf16.msra.mxu0 %v4253_v1  ;;  %2535 = vmatpush.bf16.msra.mxu2 %v4893_v2  ;;  %v5909_v63 = vld [vmem:[%s9256_s8 + $0x48c] sm:$0xf]  ;;  %v4413_v1 = vor.u32 %v5829_v53, %v4410_v54  ;;  %v5053_v2 = vor.u32 %v5989_v55, %v5050_v57  ;;  %v4225_v53 = vor.u32 %v5786_v41, %v4224_v39  ;;  %v4192_v57 = vld [vmem:[%s9256_s8 + $0x50] sm:$0xf]  ;;  %v5806_v39 = vld [vmem:[%s9256_s8 + $0x154] sm:$0xf] }
 0x244   :  { %v4730_v0 = vld [vmem:[%s9256_s8 + $0x4a8] sm:$0xf0]  ;;  %v5153_v61 = vor.u32 %v6018_v52, %v5152_v51  ;;  %v6010_v3 = vld [vmem:[%s9256_s8 + $0x7ac] sm:$0xf0]  ;;  %v4322_v41 = vld [vmem:[%s9256_s8 + $0x170] sm:$0xf0] }
 0x245   :  { %2525 = vmatpush.bf16.msra.mxu1 %v4541_v8  ;;  %2503 = vmatpush.bf16.msrb.mxu3 %v4921_v18  ;;  %v5981_v6 = vld [vmem:[%s9256_s8 + $0x6cc] sm:$0xf]  ;;  %v4733_v8 = vor.u32 %v5909_v63, %v4730_v0  ;;  %v5938_v63 = vld [vmem:[%s9256_s8 + $0x56c] sm:$0xf0] }
 0x246   :  { %v5018_v7 = vld [vmem:[%s9256_s8 + $0x6e8] sm:$0xf0]  ;;  %v4480_v0 = vld [vmem:[%s9256_s8 + $0x290] sm:$0xf] }
 0x247   :  { %2514 = vmatpush.bf16.msra.mxu0 %v4221_v15  ;;  %2536 = vmatpush.bf16.msra.mxu2 %v4861_v16  ;;  %v5901_v12 = vld [vmem:[%s9256_s8 + $0x44c] sm:$0xf]  ;;  %v5021_v14 = vor.u32 %v5981_v6, %v5018_v7  ;;  %v4288_v15 = vld [vmem:[%s9256_s8 + $0x110] sm:$0xf] }
 0x248   :  { %2504 = vmatmul.bf16.vlgmr.msrb.gmra.mxu3 %v7284_v50  ;;  %v4698_v13 = vld [vmem:[%s9256_s8 + $0x468] sm:$0xf0]  ;;  %v5802_v16 = vld [vmem:[%s9256_s8 + $0x12c] sm:$0xf0] }
 0x249   :  { %2526 = vmatpush.bf16.msra.mxu1 %v4509_v22  ;;  %2548 = vmatpush.bf16.msra.mxu3 %v5149_v23  ;;  %v5973_v18 = vld [vmem:[%s9256_s8 + $0x68c] sm:$0xf]  ;;  %v4701_v20 = vor.u32 %v5901_v12, %v4698_v13  ;;  %v5874_v22 = vld [vmem:[%s9256_s8 + $0x36c] sm:$0xf0]  ;;  %v4289_v23 = vor.u32 %v5802_v16, %v4288_v15  ;;  %v5822_v12 = vld [vmem:[%s9256_s8 + $0x1d4] sm:$0xf] }
 0x24a   :  { %v4986_v19 = vld [vmem:[%s9256_s8 + $0x6a8] sm:$0xf0]  ;;  %v4577_v33 = vor.u32 %v5874_v22, %v4576_v21  ;;  %v5770_v7 = vld [vmem:[%s9256_s8 + $0x2c] sm:$0xf0]  ;;  %v4386_v13 = vld [vmem:[%s9256_s8 + $0x1f0] sm:$0xf0] }
 0x24b   :  { %2515 = vmatpush.bf16.msra.mxu0 %v4189_v29  ;;  %2537 = vmatpush.bf16.msra.mxu2 %v4829_v30  ;;  %v5893_v24 = vld [vmem:[%s9256_s8 + $0x40c] sm:$0xf]  ;;  %v4989_v28 = vor.u32 %v5973_v18, %v4986_v19  ;;  %v5794_v29 = vld [vmem:[%s9256_s8 + $0xec] sm:$0xf0] }
 0x24c   :  { %v4666_v26 = vld [vmem:[%s9256_s8 + $0x428] sm:$0xf0]  ;;  %v4896_v30 = vld [vmem:[%s9256_s8 + $0x5d0] sm:$0xf]  ;;  %v4257_v37 = vor.u32 %v5794_v29, %v4256_v27  ;;  %v4354_v27 = vld [vmem:[%s9256_s8 + $0x1b0] sm:$0xf0] }
 0x24d   :  { %2527 = vmatpush.bf16.msra.mxu1 %v4477_v36  ;;  %2549 = vmatpush.bf16.msra.mxu3 %v5117_v31  ;;  %v5965_v34 = vld [vmem:[%s9256_s8 + $0x64c] sm:$0xf]  ;;  %v4669_v36 = vor.u32 %v5893_v24, %v4666_v26  ;;  %v4544_v31 = vld [vmem:[%s9256_s8 + $0x310] sm:$0xf]  ;;  %v4897_v38 = vor.u32 %v5954_v32, %v4896_v30  ;;  %v5814_v26 = vld [vmem:[%s9256_s8 + $0x194] sm:$0xf] }
 0x24e   :  { %v4954_v35 = vld [vmem:[%s9256_s8 + $0x668] sm:$0xf0]  ;;  %v5842_v15 = vld [vmem:[%s9256_s8 + $0x26c] sm:$0xf0] }
 0x24f   :  { %2516 = vmatpush.bf16.msra.mxu0 %v4157_v42  ;;  %2538 = vmatpush.bf16.msra.mxu2 %v4797_v44  ;;  %v4957_v40 = vor.u32 %v5965_v34, %v4954_v35  ;;  %v4864_v42 = vld [vmem:[%s9256_s8 + $0x590] sm:$0xf]  ;;  %v5957_v46 = vld [vmem:[%s9256_s8 + $0x60c] sm:$0xf]  ;;  %v4642_v34 = vld [vmem:[%s9256_s8 + $0x3f0] sm:$0xf0] }
 0x250   :  { %v5946_v44 = vld [vmem:[%s9256_s8 + $0x5ac] sm:$0xf0]  ;;  %v4922_v47 = vld [vmem:[%s9256_s8 + $0x628] sm:$0xf0] }
 0x251   :  { %2528 = vmatpush.bf16.msra.mxu1 %v4445_v48  ;;  %2550 = vmatpush.bf16.msra.mxu3 %v5085_v49  ;;  %v4512_v48 = vld [vmem:[%s9256_s8 + $0x2d0] sm:$0xf]  ;;  %v4865_v54 = vor.u32 %v5946_v44, %v4864_v42  ;;  %v4925_v55 = vor.u32 %v5957_v46, %v4922_v47  ;;  %v4610_v46 = vld [vmem:[%s9256_s8 + $0x3b0] sm:$0xf0] }
 0x252   :  { %2517 = vmatmul.bf16.vlgmr.msra.gmra.mxu0 %v7179_v43  ;;  %v5858_v49 = vld [vmem:[%s9256_s8 + $0x2ec] sm:$0xf0] }
 0x253   :  { %2561 = vmatpush.bf16.msrb.mxu0 %v4385_v45  ;;  %2539 = vmatpush.bf16.msra.mxu2 %v4765_v58  ;;  %v4545_v45 = vor.u32 %v5866_v56, %v4544_v31  ;;  %v5778_v58 = vld [vmem:[%s9256_s8 + $0x6c] sm:$0xf0]  ;;  %v4513_v60 = vor.u32 %v5858_v49, %v4512_v48  ;;  %v4325_v48 = vor.u32 %v5806_v39, %v4322_v41  ;;  %v5122_v39 = vld [vmem:[%s9256_s8 + $0x7b0] sm:$0xf0] }
 0x254   :  { %v4193_v4 = vor.u32 %v5778_v58, %v4192_v57  ;;  %v5088_v16 = vld [vmem:[%s9256_s8 + $0x750] sm:$0xf]  ;;  %v5766_v41 = vld [vmem:[%s9256_s8 + $0x14] sm:$0xf] }
 0x255   :  { %2529 = vmatpush.bf16.msra.mxu1 %v4413_v1  ;;  %2551 = vmatpush.bf16.msra.mxu3 %v5053_v2  ;;  %v5850_v1 = vld [vmem:[%s9256_s8 + $0x2ac] sm:$0xf0] }
 0x256   :  { %v5120_v2 = vld [vmem:[%s9256_s8 + $0x790] sm:$0xf]  ;;  %v4481_v10 = vor.u32 %v5850_v1, %v4480_v0 }
 0x257   :  { %2562 = vmatpush.bf16.msrb.mxu0 %v4353_v62  ;;  %2540 = vmatpush.bf16.msra.mxu2 %v4733_v8  ;;  %v4832_v62 = vld [vmem:[%s9256_s8 + $0x550] sm:$0xf] }
 0x258   :  { %2530 = vmatmul.bf16.vlgmr.msra.gmra.mxu1 %v7201_v59  ;;  %v4833_v6 = vor.u32 %v5938_v63, %v4832_v62  ;;  %v4800_v8 = vld [vmem:[%s9256_s8 + $0x510] sm:$0xf] }
 0x259   :  { %2574 = vmatpush.bf16.msrb.mxu1 %v4641_v5  ;;  %2552 = vmatpush.bf16.msra.mxu3 %v5021_v14  ;;  %v4160_v5 = vld [vmem:[%s9256_s8 + $0x10] sm:$0xf]  ;;  %v4801_v19 = vor.u32 %v5930_v9, %v4800_v8 }
 0x25a   :  { %v4448_v14 = vld [vmem:[%s9256_s8 + $0x250] sm:$0xf]  ;;  %v4161_v18 = vor.u32 %v5770_v7, %v4160_v5  ;;  %v4898_v7 = vld [vmem:[%s9256_s8 + $0x5f0] sm:$0xf0] }
 0x25b   :  { %2563 = vmatpush.bf16.msrb.mxu0 %v4321_v11  ;;  %2541 = vmatpush.bf16.msra.mxu2 %v4701_v20  ;;  %v5121_v11 = vor.u32 %v6010_v3, %v5120_v2  ;;  %v4389_v20 = vor.u32 %v5822_v12, %v4386_v13  ;;  %v4768_v21 = vld [vmem:[%s9256_s8 + $0x4d0] sm:$0xf]  ;;  %v5790_v3 = vld [vmem:[%s9256_s8 + $0xd4] sm:$0xf] }
 0x25c   :  { %v5922_v22 = vld [vmem:[%s9256_s8 + $0x4ec] sm:$0xf0] }
 0x25d   :  { %2575 = vmatpush.bf16.msrb.mxu1 %v4609_v17  ;;  %2553 = vmatpush.bf16.msra.mxu3 %v4989_v28  ;;  %v6002_v17 = vld [vmem:[%s9256_s8 + $0x76c] sm:$0xf0]  ;;  %v4769_v35 = vor.u32 %v5922_v22, %v4768_v21 }
 0x25e   :  { %v5089_v24 = vor.u32 %v6002_v17, %v5088_v16  ;;  %v4416_v28 = vld [vmem:[%s9256_s8 + $0x210] sm:$0xf]  ;;  %v4226_v16 = vld [vmem:[%s9256_s8 + $0xb0] sm:$0xf0] }
 0x25f   :  { %2564 = vmatpush.bf16.msrb.mxu0 %v4289_v23  ;;  %2542 = vmatpush.bf16.msra.mxu2 %v4669_v36  ;;  %v4449_v23 = vor.u32 %v5842_v15, %v4448_v14  ;;  %v5834_v29 = vld [vmem:[%s9256_s8 + $0x22c] sm:$0xf0]  ;;  %v4357_v36 = vor.u32 %v5814_v26, %v4354_v27  ;;  %v5782_v15 = vld [vmem:[%s9256_s8 + $0x94] sm:$0xf] }
 0x260   :  { %v5056_v30 = vld [vmem:[%s9256_s8 + $0x710] sm:$0xf]  ;;  %v4417_v31 = vor.u32 %v5834_v29, %v4416_v28  ;;  %v6014_v26 = vld [vmem:[%s9256_s8 + $0x7d4] sm:$0xf]  ;;  %v4229_v28 = vor.u32 %v5782_v15, %v4226_v16  ;;  %v4328_v15 = vld [vmem:[%s9256_s8 + $0x158] sm:$0xf] }
 0x261   :  { %2576 = vmatpush.bf16.msrb.mxu1 %v4577_v33  ;;  %2554 = vmatpush.bf16.msra.mxu3 %v4957_v40  ;;  %v5994_v32 = vld [vmem:[%s9256_s8 + $0x72c] sm:$0xf0]  ;;  %v5886_v33 = vld [vmem:[%s9256_s8 + $0x3d4] sm:$0xf] }
 0x262   :  { %2543 = vmatmul.bf16.vlgmr.msra.gmra.mxu2 %v7241_v25  ;;  %v5057_v56 = vor.u32 %v5994_v32, %v5056_v30  ;;  %v4645_v40 = vor.u32 %v5886_v33, %v4642_v34  ;;  %v5024_v42 = vld [vmem:[%s9256_s8 + $0x6d0] sm:$0xf]  ;;  %v5154_v27 = vld [vmem:[%s9256_s8 + $0x7f0] sm:$0xf0] }
 0x263   :  { %2565 = vmatpush.bf16.msrb.mxu0 %v4257_v37  ;;  %2587 = vmatpush.bf16.msrb.mxu2 %v4897_v38  ;;  %v4736_v37 = vld [vmem:[%s9256_s8 + $0x490] sm:$0xf]  ;;  %v5774_v33 = vld [vmem:[%s9256_s8 + $0x54] sm:$0xf] }
 0x264   :  { %v5914_v38 = vld [vmem:[%s9256_s8 + $0x4ac] sm:$0xf0]  ;;  %v4194_v34 = vld [vmem:[%s9256_s8 + $0x70] sm:$0xf0] }
 0x265   :  { %2577 = vmatpush.bf16.msrb.mxu1 %v4545_v45  ;;  %2555 = vmatpush.bf16.msra.mxu3 %v4925_v55  ;;  %v5986_v44 = vld [vmem:[%s9256_s8 + $0x6ec] sm:$0xf0]  ;;  %v5878_v45 = vld [vmem:[%s9256_s8 + $0x394] sm:$0xf]  ;;  %v4737_v47 = vor.u32 %v5914_v38, %v4736_v37 }
 0x266   :  { %v5025_v49 = vor.u32 %v5986_v44, %v5024_v42  ;;  %v4704_v51 = vld [vmem:[%s9256_s8 + $0x450] sm:$0xf]  ;;  %v4290_v55 = vld [vmem:[%s9256_s8 + $0x130] sm:$0xf0] }
 0x267   :  { %2566 = vmatpush.bf16.msrb.mxu0 %v4225_v53  ;;  %2588 = vmatpush.bf16.msrb.mxu2 %v4865_v54  ;;  %v5906_v52 = vld [vmem:[%s9256_s8 + $0x46c] sm:$0xf0]  ;;  %v5798_v53 = vld [vmem:[%s9256_s8 + $0x114] sm:$0xf]  ;;  %v4613_v54 = vor.u32 %v5878_v45, %v4610_v46 }
 0x268   :  { %2556 = vmatmul.bf16.vlgmr.msra.gmra.mxu3 %v7284_v50  ;;  %v4992_v57 = vld [vmem:[%s9256_s8 + $0x690] sm:$0xf]  ;;  %v4705_v62 = vor.u32 %v5906_v52, %v4704_v51  ;;  %v4293_v0 = vor.u32 %v5798_v53, %v4290_v55  ;;  %v4482_v37 = vld [vmem:[%s9256_s8 + $0x2b0] sm:$0xf0]  ;;  %v5827_v51 = vld [vmem:[%s9256_s8 + $0x1f4] sm:$0xf0] }
 0x269   :  { %2578 = vmatpush.bf16.msrb.mxu1 %v4513_v60  ;;  %2600 = vmatpush.bf16.msrb.mxu3 %v5153_v61  ;;  %v5978_v58 = vld [vmem:[%s9256_s8 + $0x6ac] sm:$0xf0]  ;;  %v5870_v60 = vld [vmem:[%s9256_s8 + $0x354] sm:$0xf] }
 0x26a   :  { %v4578_v61 = vld [vmem:[%s9256_s8 + $0x370] sm:$0xf0]  ;;  %v4672_v63 = vld [vmem:[%s9256_s8 + $0x410] sm:$0xf]  ;;  %v4993_v1 = vor.u32 %v5978_v58, %v4992_v57 }
 0x26b   :  { %2567 = vmatpush.bf16.msrb.mxu0 %v4193_v4  ;;  %2589 = vmatpush.bf16.msrb.mxu2 %v4833_v6  ;;  %v5898_v2 = vld [vmem:[%s9256_s8 + $0x42c] sm:$0xf0]  ;;  %v4258_v4 = vld [vmem:[%s9256_s8 + $0xf0] sm:$0xf0]  ;;  %v4581_v5 = vor.u32 %v5870_v60, %v4578_v61 }
 0x26c   :  { %v5950_v6 = vld [vmem:[%s9256_s8 + $0x5d4] sm:$0xf]  ;;  %v4960_v8 = vld [vmem:[%s9256_s8 + $0x650] sm:$0xf]  ;;  %v4673_v12 = vor.u32 %v5898_v2, %v4672_v63  ;;  %v4261_v13 = vor.u32 %v5790_v3, %v4258_v4  ;;  %v5819_v2 = vld [vmem:[%s9256_s8 + $0x1b4] sm:$0xf0] }
 0x26d   :  { %2579 = vmatpush.bf16.msrb.mxu1 %v4481_v10  ;;  %2601 = vmatpush.bf16.msrb.mxu3 %v5121_v11  ;;  %v5970_v9 = vld [vmem:[%s9256_s8 + $0x66c] sm:$0xf0]  ;;  %v5862_v10 = vld [vmem:[%s9256_s8 + $0x314] sm:$0xf]  ;;  %v4901_v14 = vor.u32 %v5950_v6, %v4898_v7  ;;  %v4648_v7 = vld [vmem:[%s9256_s8 + $0x3d8] sm:$0xf] }
 0x26e   :  { %v4546_v11 = vld [vmem:[%s9256_s8 + $0x330] sm:$0xf0]  ;;  %v4961_v17 = vor.u32 %v5970_v9, %v4960_v8  ;;  %v4928_v21 = vld [vmem:[%s9256_s8 + $0x610] sm:$0xf]  ;;  %v5891_v8 = vld [vmem:[%s9256_s8 + $0x3f4] sm:$0xf0] }
 0x26f   :  { %2568 = vmatpush.bf16.msrb.mxu0 %v4161_v18  ;;  %2590 = vmatpush.bf16.msrb.mxu2 %v4801_v19  ;;  %v4549_v18 = vor.u32 %v5862_v10, %v4546_v11  ;;  %v5942_v19 = vld [vmem:[%s9256_s8 + $0x594] sm:$0xf]  ;;  %v5962_v22 = vld [vmem:[%s9256_s8 + $0x62c] sm:$0xf0]  ;;  %v4649_v16 = vor.u32 %v5891_v8, %v4648_v7  ;;  %v5859_v7 = vld [vmem:[%s9256_s8 + $0x2f4] sm:$0xf0] }
 0x270   :  { %v4929_v30 = vor.u32 %v5962_v22, %v4928_v21  ;;  %v6006_v38 = vld [vmem:[%s9256_s8 + $0x794] sm:$0xf]  ;;  %v5883_v21 = vld [vmem:[%s9256_s8 + $0x3b4] sm:$0xf0] }
 0x271   :  { %2580 = vmatpush.bf16.msrb.mxu1 %v4449_v23  ;;  %2602 = vmatpush.bf16.msrb.mxu3 %v5089_v24  ;;  %v5854_v23 = vld [vmem:[%s9256_s8 + $0x2d4] sm:$0xf]  ;;  %v5160_v8 = vld [vmem:[%s9256_s8 + $0x7d8] sm:$0xf] }
 0x272   :  { %2569 = vmatmul.bf16.vlgmr.msrb.gmra.mxu0 %v7179_v43  ;;  %v4514_v24 = vld [vmem:[%s9256_s8 + $0x2f0] sm:$0xf0] }
 0x273   :  { %2613 = vmatpush.bf16.msra.mxu0 %v4389_v20  ;;  %2591 = vmatpush.bf16.msrb.mxu2 %v4769_v35  ;;  %v4866_v20 = vld [vmem:[%s9256_s8 + $0x5b0] sm:$0xf0]  ;;  %v4517_v32 = vor.u32 %v5854_v23, %v4514_v24  ;;  %v7975_v23 = vld [vmem:[%s9257_s9] sm:$0xff] }
 0x274   :  { %v4869_v29 = vor.u32 %v5942_v19, %v4866_v20  ;;  %v5934_v35 = vld [vmem:[%s9256_s8 + $0x554] sm:$0xf]  ;;  %v4616_v20 = vld [vmem:[%s9256_s8 + $0x398] sm:$0xf] }
 0x275   :  { %2581 = vmatpush.bf16.msrb.mxu1 %v4417_v31  ;;  %2603 = vmatpush.bf16.msrb.mxu3 %v5057_v56  ;;  %v4834_v31 = vld [vmem:[%s9256_s8 + $0x570] sm:$0xf0] }
 0x276   :  { %v5846_v56 = vld [vmem:[%s9256_s8 + $0x294] sm:$0xf]  ;;  %v4837_v42 = vor.u32 %v5934_v35, %v4834_v31  ;;  %v5875_v31 = vld [vmem:[%s9256_s8 + $0x374] sm:$0xf0] }
 0x277   :  { %2614 = vmatpush.bf16.msra.mxu0 %v4357_v36  ;;  %2592 = vmatpush.bf16.msrb.mxu2 %v4737_v47  ;;  %v5157_v36 = vor.u32 %v6014_v26, %v5154_v27  ;;  %v4485_v44 = vor.u32 %v5846_v56, %v4482_v37  ;;  %v4162_v45 = vld [vmem:[%s9256_s8 + $0x30] sm:$0xf0]  ;;  %v1057_v56 = vperm.slane %v7975_v23, 0 }
 0x278   :  { %2582 = vmatmul.bf16.vlgmr.msrb.gmra.mxu1 %v7201_v59  ;;  %v5926_v46 = vld [vmem:[%s9256_s8 + $0x514] sm:$0xf]  ;;  %v4165_v57 = vor.u32 %v5766_v41, %v4162_v45 }
 0x279   :  { %2626 = vmatpush.bf16.msra.mxu1 %v4645_v40  ;;  %2604 = vmatpush.bf16.msrb.mxu3 %v5025_v49  ;;  %v4197_v40 = vor.u32 %v5774_v33, %v4194_v34  ;;  %v4802_v47 = vld [vmem:[%s9256_s8 + $0x530] sm:$0xf0]  ;;  %v4392_v49 = vld [vmem:[%s9256_s8 + $0x1d8] sm:$0xf] }
 0x27a   :  { %v5838_v52 = vld [vmem:[%s9256_s8 + $0x254] sm:$0xf]  ;;  %v4805_v58 = vor.u32 %v5926_v46, %v4802_v47  ;;  %v4393_v60 = vor.u32 %v5827_v51, %v4392_v49  ;;  %v5803_v33 = vld [vmem:[%s9256_s8 + $0x134] sm:$0xf0] }
 0x27b   :  { %2615 = vmatpush.bf16.msra.mxu0 %v4325_v48  ;;  %2593 = vmatpush.bf16.msrb.mxu2 %v4705_v62  ;;  %v5125_v48 = vor.u32 %v6006_v38, %v5122_v39  ;;  %v4450_v53 = vld [vmem:[%s9256_s8 + $0x270] sm:$0xf0]  ;;  %v4904_v46 = vld [vmem:[%s9256_s8 + $0x5d8] sm:$0xf] }
 0x27c   :  { %v5090_v55 = vld [vmem:[%s9256_s8 + $0x770] sm:$0xf0]  ;;  %v4453_v63 = vor.u32 %v5838_v52, %v4450_v53  ;;  %v5955_v47 = vld [vmem:[%s9256_s8 + $0x5f4] sm:$0xf0] }
 0x27d   :  { %2627 = vmatpush.bf16.msra.mxu1 %v4613_v54  ;;  %2605 = vmatpush.bf16.msrb.mxu3 %v4993_v1  ;;  %v5998_v54 = vld [vmem:[%s9256_s8 + $0x754] sm:$0xf]  ;;  %v4360_v1 = vld [vmem:[%s9256_s8 + $0x198] sm:$0xf] }
 0x27e   :  { %v5918_v61 = vld [vmem:[%s9256_s8 + $0x4d4] sm:$0xf]  ;;  %v4361_v10 = vor.u32 %v5819_v2, %v4360_v1  ;;  %v4552_v51 = vld [vmem:[%s9256_s8 + $0x318] sm:$0xf] }
 0x27f   :  { %2616 = vmatpush.bf16.msra.mxu0 %v4293_v0  ;;  %2594 = vmatpush.bf16.msrb.mxu2 %v4673_v12  ;;  %v4770_v62 = vld [vmem:[%s9256_s8 + $0x4f0] sm:$0xf0]  ;;  %v5093_v0 = vor.u32 %v5998_v54, %v5090_v55  ;;  %v5867_v52 = vld [vmem:[%s9256_s8 + $0x334] sm:$0xf0] }
 0x280   :  { %v5830_v3 = vld [vmem:[%s9256_s8 + $0x214] sm:$0xf]  ;;  %v4773_v9 = vor.u32 %v5918_v61, %v4770_v62  ;;  %v5787_v61 = vld [vmem:[%s9256_s8 + $0xb4] sm:$0xf0]  ;;  %v4553_v1 = vor.u32 %v5867_v52, %v4552_v51 }
 0x281   :  { %2628 = vmatpush.bf16.msra.mxu1 %v4581_v5  ;;  %2606 = vmatpush.bf16.msrb.mxu3 %v4961_v17  ;;  %v4418_v4 = vld [vmem:[%s9256_s8 + $0x230] sm:$0xf0]  ;;  %v5811_v17 = vld [vmem:[%s9256_s8 + $0x174] sm:$0xf0] }
 0x282   :  { %2595 = vmatmul.bf16.vlgmr.msrb.gmra.mxu2 %v7241_v25  ;;  %v5990_v5 = vld [vmem:[%s9256_s8 + $0x714] sm:$0xf]  ;;  %v4421_v11 = vor.u32 %v5830_v3, %v4418_v4  ;;  %v4329_v24 = vor.u32 %v5811_v17, %v4328_v15  ;;  %v4872_v2 = vld [vmem:[%s9256_s8 + $0x598] sm:$0xf] }
 0x283   :  { %2617 = vmatpush.bf16.msra.mxu0 %v4261_v13  ;;  %2639 = vmatpush.bf16.msra.mxu2 %v4901_v14  ;;  %v5058_v6 = vld [vmem:[%s9256_s8 + $0x730] sm:$0xf0]  ;;  %v5947_v3 = vld [vmem:[%s9256_s8 + $0x5b4] sm:$0xf0] }
 0x284   :  { %v5061_v12 = vor.u32 %v5990_v5, %v5058_v6  ;;  %v5910_v13 = vld [vmem:[%s9256_s8 + $0x494] sm:$0xf]  ;;  %v4520_v6 = vld [vmem:[%s9256_s8 + $0x2d8] sm:$0xf] }
 0x285   :  { %2629 = vmatpush.bf16.msra.mxu1 %v4549_v18  ;;  %2607 = vmatpush.bf16.msrb.mxu3 %v4929_v30  ;;  %v4738_v14 = vld [vmem:[%s9256_s8 + $0x4b0] sm:$0xf0]  ;;  %v5779_v15 = vld [vmem:[%s9256_s8 + $0x74] sm:$0xf0] }
 0x286   :  { %v5982_v18 = vld [vmem:[%s9256_s8 + $0x6d4] sm:$0xf]  ;;  %v4741_v22 = vor.u32 %v5910_v13, %v4738_v14  ;;  %v4521_v13 = vor.u32 %v5859_v7, %v4520_v6  ;;  %v4200_v14 = vld [vmem:[%s9256_s8 + $0x58] sm:$0xf]  ;;  %v4330_v7 = vld [vmem:[%s9256_s8 + $0x178] sm:$0xf0] }
 0x287   :  { %2618 = vmatpush.bf16.msra.mxu0 %v4229_v28  ;;  %2640 = vmatpush.bf16.msra.mxu2 %v4869_v29  ;;  %v5026_v19 = vld [vmem:[%s9256_s8 + $0x6f0] sm:$0xf0]  ;;  %v4296_v29 = vld [vmem:[%s9256_s8 + $0x118] sm:$0xf] }
 0x288   :  { %2608 = vmatmul.bf16.vlgmr.msrb.gmra.mxu3 %v7284_v50  ;;  %v5029_v26 = vor.u32 %v5982_v18, %v5026_v19  ;;  %v5902_v27 = vld [vmem:[%s9256_s8 + $0x454] sm:$0xf]  ;;  %v4297_v39 = vor.u32 %v5803_v33, %v4296_v29  ;;  %v5939_v18 = vld [vmem:[%s9256_s8 + $0x574] sm:$0xf0] }
 0x289   :  { %2630 = vmatpush.bf16.msra.mxu1 %v4517_v32  ;;  %2652 = vmatpush.bf16.msra.mxu3 %v5157_v36  ;;  %v4706_v28 = vld [vmem:[%s9256_s8 + $0x470] sm:$0xf0]  ;;  %v4617_v32 = vor.u32 %v5883_v21, %v4616_v20  ;;  %v4584_v36 = vld [vmem:[%s9256_s8 + $0x358] sm:$0xf] }
 0x28a   :  { %v5974_v34 = vld [vmem:[%s9256_s8 + $0x694] sm:$0xf]  ;;  %v4709_v37 = vor.u32 %v5902_v27, %v4706_v28  ;;  %v4585_v45 = vor.u32 %v5875_v31, %v4584_v36  ;;  %v4488_v19 = vld [vmem:[%s9256_s8 + $0x298] sm:$0xf]  ;;  %v5823_v36 = vld [vmem:[%s9256_s8 + $0x1dc] sm:$0xf] }
 0x28b   :  { %2619 = vmatpush.bf16.msra.mxu0 %v4197_v40  ;;  %2641 = vmatpush.bf16.msra.mxu2 %v4837_v42  ;;  %v4994_v35 = vld [vmem:[%s9256_s8 + $0x6b0] sm:$0xf0]  ;;  %v4264_v42 = vld [vmem:[%s9256_s8 + $0xd8] sm:$0xf]  ;;  %v4394_v31 = vld [vmem:[%s9256_s8 + $0x1f8] sm:$0xf0] }
 0x28c   :  { %v5894_v38 = vld [vmem:[%s9256_s8 + $0x414] sm:$0xf]  ;;  %v4997_v40 = vor.u32 %v5974_v34, %v4994_v35  ;;  %v5851_v20 = vld [vmem:[%s9256_s8 + $0x2b4] sm:$0xf0] }
 0x28d   :  { %2631 = vmatpush.bf16.msra.mxu1 %v4485_v44  ;;  %2653 = vmatpush.bf16.msra.mxu3 %v5125_v48  ;;  %v4674_v41 = vld [vmem:[%s9256_s8 + $0x430] sm:$0xf0]  ;;  %v5795_v44 = vld [vmem:[%s9256_s8 + $0xf4] sm:$0xf0]  ;;  %v4489_v29 = vor.u32 %v5851_v20, %v4488_v19 }
 0x28e   :  { %v2362_v30 = vpop.f32.mrf.mxu0  ;;  %v5966_v48 = vld [vmem:[%s9256_s8 + $0x654] sm:$0xf]  ;;  %v4677_v54 = vor.u32 %v5894_v38, %v4674_v41  ;;  %v5128_v21 = vld [vmem:[%s9256_s8 + $0x798] sm:$0xf] }
 0x28f   :  { %2620 = vmatpush.bf16.msra.mxu0 %v4165_v57  ;;  %2642 = vmatpush.bf16.msra.mxu2 %v4805_v58  ;;  %v4962_v49 = vld [vmem:[%s9256_s8 + $0x670] sm:$0xf0]  ;;  %v2363_v53 = vadd.f32 %v2362_v30, %v1057_v56  ;;  %v4265_v57 = vor.u32 %v5795_v44, %v4264_v42  ;;  %v4905_v58 = vor.u32 %v5955_v47, %v4904_v46  ;;  %v4168_v27 = vld [vmem:[%s9256_s8 + $0x18] sm:$0xf] }
 0x290   :  { %v5958_v4 = vld [vmem:[%s9256_s8 + $0x614] sm:$0xf]  ;;  %v5771_v30 = vld [vmem:[%s9256_s8 + $0x34] sm:$0xf0]  ;;  %v4397_v42 = vor.u32 %v5823_v36, %v4394_v31  ;;  %v5791_v31 = vld [vmem:[%s9256_s8 + $0xdc] sm:$0xf] }
 0x291   :  { %2632 = vmatpush.bf16.msra.mxu1 %v4453_v63  ;;  %2654 = vmatpush.bf16.msra.mxu3 %v5093_v0  ;;  %v4965_v0 = vor.u32 %v5966_v48, %v4962_v49  ;;  %v4930_v5 = vld [vmem:[%s9256_s8 + $0x630] sm:$0xf0]  ;;  %v5931_v33 = vld [vmem:[%s9256_s8 + $0x534] sm:$0xf0]  ;;  %v5815_v48 = vld [vmem:[%s9256_s8 + $0x19c] sm:$0xf] }
 0x292   :  { %2621 = vmatmul.bf16.vlgmr.msra.gmra.mxu0 %v7179_v43  ;;  %v4456_v56 = vld [vmem:[%s9256_s8 + $0x258] sm:$0xf]  ;;  %v4362_v49 = vld [vmem:[%s9256_s8 + $0x1b8] sm:$0xf0] }
 0x293   :  { %2665 = vmatpush.bf16.msrb.mxu0 %v4393_v60  ;;  %2643 = vmatpush.bf16.msra.mxu2 %v4773_v9  ;;  %v4232_v60 = vld [vmem:[%s9256_s8 + $0x98] sm:$0xf] }
 0x294   :  { %v6019_v9 = vld [vmem:[%s9256_s8 + $0x7f4] sm:$0xf0] }
 0x295   :  { %2633 = vmatpush.bf16.msra.mxu1 %v4421_v11  ;;  %2655 = vmatpush.bf16.msra.mxu3 %v5061_v12  ;;  %v2375_v55 = vpop.f32.mrf.mxu1  ;;  %v4873_v11 = vor.u32 %v5947_v3, %v4872_v2  ;;  %v4933_v12 = vor.u32 %v5958_v4, %v4930_v5  ;;  %v5161_v17 = vor.u32 %v6019_v9, %v5160_v8  ;;  %v5096_v38 = vld [vmem:[%s9256_s8 + $0x758] sm:$0xf]  ;;  %v5807_v5 = vld [vmem:[%s9256_s8 + $0x15c] sm:$0xf] }
 0x296   :  { %v8039_v62 = vadd.f32 %v2375_v55, %v2363_v53  ;;  %v2364_v63 = vpop.f32.mrf.mxu0  ;;  %v4776_v44 = vld [vmem:[%s9256_s8 + $0x4d8] sm:$0xf] }
 0x297   :  { %2666 = vmatpush.bf16.msrb.mxu0 %v4361_v10  ;;  %2644 = vmatpush.bf16.msra.mxu2 %v4741_v22  ;;  %v4233_v10 = vor.u32 %v5787_v61, %v4232_v60  ;;  %v6011_v22 = vld [vmem:[%s9256_s8 + $0x7b4] sm:$0xf0]  ;;  %v4650_v60 = vld [vmem:[%s9256_s8 + $0x3f8] sm:$0xf0]  ;;  %v4365_v63 = vor.u32 %v5815_v48, %v4362_v49 }
 0x298   :  { %2634 = vmatmul.bf16.vlgmr.msra.gmra.mxu1 %v7201_v59  ;;  %v5129_v35 = vor.u32 %v6011_v22, %v5128_v21  ;;  %v4424_v51 = vld [vmem:[%s9256_s8 + $0x218] sm:$0xf]  ;;  %v4298_v21 = vld [vmem:[%s9256_s8 + $0x138] sm:$0xf0] }
 0x299   :  { %2678 = vmatpush.bf16.msrb.mxu1 %v4649_v16  ;;  %2656 = vmatpush.bf16.msra.mxu3 %v5029_v26  ;;  %v4840_v16 = vld [vmem:[%s9256_s8 + $0x558] sm:$0xf]  ;;  %v4201_v26 = vor.u32 %v5779_v15, %v4200_v14  ;;  %v4333_v14 = vor.u32 %v5807_v5, %v4330_v7  ;;  %v5783_v49 = vld [vmem:[%s9256_s8 + $0x9c] sm:$0xf] }
 0x29a   :  { %v4841_v28 = vor.u32 %v5939_v18, %v4840_v16  ;;  %v5835_v53 = vld [vmem:[%s9256_s8 + $0x234] sm:$0xf0]  ;;  %v5799_v18 = vld [vmem:[%s9256_s8 + $0x11c] sm:$0xf] }
 0x29b   :  { %2667 = vmatpush.bf16.msrb.mxu0 %v4329_v24  ;;  %2645 = vmatpush.bf16.msra.mxu2 %v4709_v37  ;;  %v5843_v37 = vld [vmem:[%s9256_s8 + $0x274] sm:$0xf0] }
 0x29c   :  { %v4457_v46 = vor.u32 %v5843_v37, %v4456_v56  ;;  %v5995_v55 = vld [vmem:[%s9256_s8 + $0x734] sm:$0xf0]  ;;  %v4266_v56 = vld [vmem:[%s9256_s8 + $0xf8] sm:$0xf0] }
 0x29d   :  { %2679 = vmatpush.bf16.msrb.mxu1 %v4617_v32  ;;  %2657 = vmatpush.bf16.msra.mxu3 %v4997_v40  ;;  %v2377_v24 = vpop.f32.mrf.mxu1  ;;  %v4808_v32 = vld [vmem:[%s9256_s8 + $0x518] sm:$0xf]  ;;  %v4169_v40 = vor.u32 %v5771_v30, %v4168_v27  ;;  %v5871_v27 = vld [vmem:[%s9256_s8 + $0x35c] sm:$0xf] }
 0x29e   :  { %v4809_v41 = vor.u32 %v5931_v33, %v4808_v32  ;;  %v4744_v3 = vld [vmem:[%s9256_s8 + $0x498] sm:$0xf]  ;;  %v4301_v33 = vor.u32 %v5799_v18, %v4298_v21  ;;  %v6007_v18 = vld [vmem:[%s9256_s8 + $0x79c] sm:$0xf] }
 0x29f   :  { %2668 = vmatpush.bf16.msrb.mxu0 %v4297_v39  ;;  %2646 = vmatpush.bf16.msra.mxu2 %v4677_v54  ;;  %v8102_v34 = vpop.f32.mrf.mxu0  ;;  %v6003_v39 = vld [vmem:[%s9256_s8 + $0x774] sm:$0xf0] }
 0x2a0   :  { %v5097_v47 = vor.u32 %v6003_v39, %v5096_v38  ;;  %v5064_v54 = vld [vmem:[%s9256_s8 + $0x718] sm:$0xf]  ;;  %v5951_v38 = vld [vmem:[%s9256_s8 + $0x5dc] sm:$0xf] }
 0x2a1   :  { %2680 = vmatpush.bf16.msrb.mxu1 %v4585_v45  ;;  %2658 = vmatpush.bf16.msra.mxu3 %v4965_v0  ;;  %v5923_v45 = vld [vmem:[%s9256_s8 + $0x4f4] sm:$0xf0]  ;;  %v5065_v2 = vor.u32 %v5995_v55, %v5064_v54  ;;  %v4906_v39 = vld [vmem:[%s9256_s8 + $0x5f8] sm:$0xf0] }
 0x2a2   :  { %2647 = vmatmul.bf16.vlgmr.msra.gmra.mxu2 %v7241_v25  ;;  %v4777_v61 = vor.u32 %v5923_v45, %v4776_v44  ;;  %v5915_v4 = vld [vmem:[%s9256_s8 + $0x4b4] sm:$0xf0]  ;;  %v4554_v44 = vld [vmem:[%s9256_s8 + $0x338] sm:$0xf0]  ;;  %v4909_v48 = vor.u32 %v5951_v38, %v4906_v39 }
 0x2a3   :  { %2669 = vmatpush.bf16.msrb.mxu0 %v4265_v57  ;;  %2691 = vmatpush.bf16.msrb.mxu2 %v4905_v58  ;;  %v5887_v58 = vld [vmem:[%s9256_s8 + $0x3dc] sm:$0xf]  ;;  %v5032_v8 = vld [vmem:[%s9256_s8 + $0x6d8] sm:$0xf] }
 0x2a4   :  { %v8138_v52 = vpop.f32.mrf.mxu2  ;;  %v4653_v6 = vor.u32 %v5887_v58, %v4650_v60  ;;  %v5987_v9 = vld [vmem:[%s9256_s8 + $0x6f4] sm:$0xf0]  ;;  %v5943_v55 = vld [vmem:[%s9256_s8 + $0x59c] sm:$0xf] }
 0x2a5   :  { %2681 = vmatpush.bf16.msrb.mxu1 %v4553_v1  ;;  %2659 = vmatpush.bf16.msra.mxu3 %v4933_v12  ;;  %v8149_v57 = vpop.f32.mrf.mxu1  ;;  %v4425_v1 = vor.u32 %v5835_v53, %v4424_v51  ;;  %v4745_v12 = vor.u32 %v5915_v4, %v4744_v3  ;;  %v5033_v15 = vor.u32 %v5987_v9, %v5032_v8  ;;  %v4712_v16 = vld [vmem:[%s9256_s8 + $0x458] sm:$0xf]  ;;  %v4234_v51 = vld [vmem:[%s9256_s8 + $0xb8] sm:$0xf0] }
 0x2a6   :  { %v5000_v22 = vld [vmem:[%s9256_s8 + $0x698] sm:$0xf]  ;;  %v4874_v58 = vld [vmem:[%s9256_s8 + $0x5b8] sm:$0xf0] }
 0x2a7   :  { %2670 = vmatpush.bf16.msrb.mxu0 %v4233_v10  ;;  %2692 = vmatpush.bf16.msrb.mxu2 %v4873_v11  ;;  %v2416_v0 = vpop.f32.mrf.mxu0  ;;  %v5879_v10 = vld [vmem:[%s9256_s8 + $0x39c] sm:$0xf]  ;;  %v5979_v24 = vld [vmem:[%s9256_s8 + $0x6b4] sm:$0xf0]  ;;  %v4877_v7 = vor.u32 %v5943_v55, %v4874_v58 }
 0x2a8   :  { %2660 = vmatmul.bf16.vlgmr.msra.gmra.mxu3 %v7284_v50  ;;  %v4618_v11 = vld [vmem:[%s9256_s8 + $0x3b8] sm:$0xf0]  ;;  %v4680_v30 = vld [vmem:[%s9256_s8 + $0x418] sm:$0xf] }
 0x2a9   :  { %2682 = vmatpush.bf16.msrb.mxu1 %v4521_v13  ;;  %2704 = vmatpush.bf16.msrb.mxu3 %v5161_v17  ;;  %v5907_v17 = vld [vmem:[%s9256_s8 + $0x474] sm:$0xf0]  ;;  %v4621_v20 = vor.u32 %v5879_v10, %v4618_v11  ;;  %v5855_v0 = vld [vmem:[%s9256_s8 + $0x2dc] sm:$0xf] }
 0x2aa   :  { %v5899_v36 = vld [vmem:[%s9256_s8 + $0x434] sm:$0xf0]  ;;  %v6015_v3 = vld [vmem:[%s9256_s8 + $0x7dc] sm:$0xf] }
 0x2ab   :  { %2671 = vmatpush.bf16.msrb.mxu0 %v4201_v26  ;;  %2693 = vmatpush.bf16.msrb.mxu2 %v4841_v28  ;;  %v8182_v13 = vpop.f32.mrf.mxu3  ;;  %v4586_v28 = vld [vmem:[%s9256_s8 + $0x378] sm:$0xf0]  ;;  %v4681_v45 = vor.u32 %v5899_v36, %v4680_v30  ;;  %v4936_v60 = vld [vmem:[%s9256_s8 + $0x618] sm:$0xf] }
 0x2ac   :  { %v2390_v19 = vpop.f32.mrf.mxu2  ;;  %v4589_v37 = vor.u32 %v5871_v27, %v4586_v28  ;;  %v5162_v4 = vld [vmem:[%s9256_s8 + $0x7f8] sm:$0xf0]  ;;  %v6035_v36 = vld [vmem:[%s9258_s10 + $0x74] sm:$0xf0] }
 0x2ad   :  { %2683 = vmatpush.bf16.msrb.mxu1 %v4489_v29  ;;  %2705 = vmatpush.bf16.msrb.mxu3 %v5129_v35  ;;  %v2429_v26 = vpop.f32.mrf.mxu1  ;;  %v4713_v29 = vor.u32 %v5907_v17, %v4712_v16  ;;  %v5001_v35 = vor.u32 %v5979_v24, %v5000_v22  ;;  %v5775_v10 = vld [vmem:[%s9256_s8 + $0x5c] sm:$0xf] }
 0x2ae   :  { %v4202_v11 = vld [vmem:[%s9256_s8 + $0x78] sm:$0xf0] }
 0x2af   :  { %2672 = vmatpush.bf16.msrb.mxu0 %v4169_v40  ;;  %2694 = vmatpush.bf16.msrb.mxu2 %v4809_v41  ;;  %v8212_v32 = vpop.f32.mrf.mxu0  ;;  %v4968_v40 = vld [vmem:[%s9256_s8 + $0x658] sm:$0xf]  ;;  %v5847_v16 = vld [vmem:[%s9256_s8 + $0x29c] sm:$0xf]  ;;  %v4205_v21 = vor.u32 %v5775_v10, %v4202_v11 }
 0x2b0   :  { %v5971_v41 = vld [vmem:[%s9256_s8 + $0x674] sm:$0xf0]  ;;  %v4490_v17 = vld [vmem:[%s9256_s8 + $0x2b8] sm:$0xf0] }
 0x2b1   :  { %2684 = vmatpush.bf16.msrb.mxu1 %v4457_v46  ;;  %2706 = vmatpush.bf16.msrb.mxu3 %v5097_v47  ;;  %v4269_v47 = vor.u32 %v5791_v31, %v4266_v56  ;;  %v4969_v53 = vor.u32 %v5971_v41, %v4968_v40  ;;  %v5130_v19 = vld [vmem:[%s9256_s8 + $0x7b8] sm:$0xf0]  ;;  %v4493_v26 = vor.u32 %v5847_v16, %v4490_v17  ;;  %v6031_v10 = vld [vmem:[%s9258_s10 + $0x54] sm:$0xf0] }
 0x2b2   :  { %2673 = vmatmul.bf16.vlgmr.msrb.gmra.mxu0 %v7179_v43  ;;  %v5767_v22 = vld [vmem:[%s9256_s8 + $0x1c] sm:$0xf] }
 0x2b3   :  { %2717 = vmatpush.bf16.msra.mxu0 %v4397_v42  ;;  %2695 = vmatpush.bf16.msrb.mxu2 %v4777_v61  ;;  %v5863_v42 = vld [vmem:[%s9256_s8 + $0x31c] sm:$0xf]  ;;  %v2403_v46 = vpop.f32.mrf.mxu3 }
 0x2b4   :  { %v4557_v54 = vor.u32 %v5863_v42, %v4554_v44  ;;  %v4170_v27 = vld [vmem:[%s9256_s8 + $0x38] sm:$0xf0] }
 0x2b5   :  { %2685 = vmatpush.bf16.msrb.mxu1 %v4425_v1  ;;  %2707 = vmatpush.bf16.msrb.mxu3 %v5065_v2  ;;  %v8256_v61 = vpop.f32.mrf.mxu2  ;;  %v4522_v1 = vld [vmem:[%s9256_s8 + $0x2f8] sm:$0xf0]  ;;  %v8267_v2 = vpop.f32.mrf.mxu1  ;;  %v4173_v40 = vor.u32 %v5767_v22, %v4170_v27 }
 0x2b6   :  { %v4525_v9 = vor.u32 %v5855_v0, %v4522_v1  ;;  %v5927_v28 = vld [vmem:[%s9256_s8 + $0x51c] sm:$0xf] }
 0x2b7   :  { %2718 = vmatpush.bf16.msra.mxu0 %v4365_v63  ;;  %2696 = vmatpush.bf16.msrb.mxu2 %v4745_v12  ;;  %v5963_v63 = vld [vmem:[%s9256_s8 + $0x634] sm:$0xf0]  ;;  %v2468_v5 = vpop.f32.mrf.mxu0  ;;  %v5935_v12 = vld [vmem:[%s9256_s8 + $0x55c] sm:$0xf] }
 0x2b8   :  { %2686 = vmatmul.bf16.vlgmr.msrb.gmra.mxu1 %v7201_v59  ;;  %v4937_v8 = vor.u32 %v5963_v63, %v4936_v60  ;;  %v5839_v31 = vld [vmem:[%s9256_s8 + $0x25c] sm:$0xf]  ;;  %v5288_v60 = vld [vmem:[%s9258_s10 + $0xf0] sm:$0xf]  ;;  %v6051_v63 = vld [vmem:[%s9258_s10 + $0xf4] sm:$0xf0] }
 0x2b9   :  { %2730 = vmatpush.bf16.msra.mxu1 %v4653_v6  ;;  %2708 = vmatpush.bf16.msrb.mxu3 %v5033_v15  ;;  %v4237_v6 = vor.u32 %v5783_v49, %v4234_v51  ;;  %v4842_v15 = vld [vmem:[%s9256_s8 + $0x578] sm:$0xf0]  ;;  %v6033_v49 = vld [vmem:[%s9258_s10 + $0x64] sm:$0xf0] }
 0x2ba   :  { %v4845_v24 = vor.u32 %v5935_v12, %v4842_v15  ;;  %v5999_v38 = vld [vmem:[%s9256_s8 + $0x75c] sm:$0xf] }
 0x2bb   :  { %2719 = vmatpush.bf16.msra.mxu0 %v4333_v14  ;;  %2697 = vmatpush.bf16.msrb.mxu2 %v4713_v29  ;;  %v5165_v14 = vor.u32 %v6015_v3, %v5162_v4  ;;  %v4810_v29 = vld [vmem:[%s9256_s8 + $0x538] sm:$0xf0] }
 0x2bc   :  { %v5098_v39 = vld [vmem:[%s9256_s8 + $0x778] sm:$0xf0]  ;;  %v4813_v41 = vor.u32 %v5927_v28, %v4810_v29  ;;  %v5272_v28 = vld [vmem:[%s9258_s10 + $0xd0] sm:$0xf]  ;;  %v6047_v29 = vld [vmem:[%s9258_s10 + $0xd4] sm:$0xf0] }
 0x2bd   :  { %2731 = vmatpush.bf16.msra.mxu1 %v4621_v20  ;;  %2709 = vmatpush.bf16.msrb.mxu3 %v5001_v35  ;;  %v8300_v20 = vpop.f32.mrf.mxu3  ;;  %v2442_v30 = vpop.f32.mrf.mxu2  ;;  %v5224_v35 = vld [vmem:[%s9258_s10 + $0x70] sm:$0xf]  ;;  %v5919_v44 = vld [vmem:[%s9256_s8 + $0x4dc] sm:$0xf] }
 0x2be   :  { %v2481_v56 = vpop.f32.mrf.mxu1  ;;  %v5225_v42 = vor.u32 %v6035_v36, %v5224_v35  ;;  %v5831_v51 = vld [vmem:[%s9256_s8 + $0x21c] sm:$0xf] }
 0x2bf   :  { %2720 = vmatpush.bf16.msra.mxu0 %v4301_v33  ;;  %2698 = vmatpush.bf16.msrb.mxu2 %v4681_v45  ;;  %v5133_v33 = vor.u32 %v6007_v18, %v5130_v19  ;;  %v4778_v45 = vld [vmem:[%s9256_s8 + $0x4f8] sm:$0xf0] }
 0x2c0   :  { %v5066_v55 = vld [vmem:[%s9256_s8 + $0x738] sm:$0xf0]  ;;  %v4781_v0 = vor.u32 %v5919_v44, %v4778_v45 }
 0x2c1   :  { %2732 = vmatpush.bf16.msra.mxu1 %v4589_v37  ;;  %2710 = vmatpush.bf16.msrb.mxu3 %v4969_v53  ;;  %v4458_v37 = vld [vmem:[%s9256_s8 + $0x278] sm:$0xf0] }
 0x2c2   :  { %2699 = vmatmul.bf16.vlgmr.msrb.gmra.mxu2 %v7241_v25  ;;  %v4461_v46 = vor.u32 %v5839_v31, %v4458_v37  ;;  %v4426_v53 = vld [vmem:[%s9256_s8 + $0x238] sm:$0xf0] }
 0x2c3   :  { %2721 = vmatpush.bf16.msra.mxu0 %v4269_v47  ;;  %2743 = vmatpush.bf16.msra.mxu2 %v4909_v48  ;;  %v5101_v47 = vor.u32 %v5999_v38, %v5098_v39  ;;  %v5216_v48 = vld [vmem:[%s9258_s10 + $0x60] sm:$0xf]  ;;  %v4429_v4 = vor.u32 %v5831_v51, %v4426_v53  ;;  %v5983_v11 = vld [vmem:[%s9256_s8 + $0x6dc] sm:$0xf]  ;;  %v6027_v39 = vld [vmem:[%s9258_s10 + $0x34] sm:$0xf0] }
 0x2c4   :  { %v5217_v1 = vor.u32 %v6033_v49, %v5216_v48  ;;  %v5034_v12 = vld [vmem:[%s9256_s8 + $0x6f8] sm:$0xf0]  ;;  %v1058_v48 = vperm.slane %v7975_v23, 1 }
 0x2c5   :  { %2733 = vmatpush.bf16.msra.mxu1 %v4557_v54  ;;  %2711 = vmatpush.bf16.msrb.mxu3 %v4937_v8  ;;  %v5991_v54 = vld [vmem:[%s9256_s8 + $0x71c] sm:$0xf]  ;;  %v2455_v58 = vpop.f32.mrf.mxu3  ;;  %v8363_v3 = vpop.f32.mrf.mxu2  ;;  %v5208_v8 = vld [vmem:[%s9258_s10 + $0x50] sm:$0xf]  ;;  %v5037_v17 = vor.u32 %v5983_v11, %v5034_v12 }
 0x2c6   :  { %v5069_v5 = vor.u32 %v5991_v54, %v5066_v55  ;;  %v5209_v16 = vor.u32 %v6031_v10, %v5208_v8  ;;  %v5903_v18 = vld [vmem:[%s9256_s8 + $0x45c] sm:$0xf]  ;;  %v5184_v54 = vld [vmem:[%s9258_s10 + $0x20] sm:$0xf]  ;;  %v6025_v55 = vld [vmem:[%s9258_s10 + $0x24] sm:$0xf0] }
 0x2c7   :  { %2722 = vmatpush.bf16.msra.mxu0 %v4237_v6  ;;  %2744 = vmatpush.bf16.msra.mxu2 %v4877_v7  ;;  %v5911_v6 = vld [vmem:[%s9256_s8 + $0x49c] sm:$0xf]  ;;  %v6043_v8 = vld [vmem:[%s9258_s10 + $0xb4] sm:$0xf0] }
 0x2c8   :  { %2712 = vmatmul.bf16.vlgmr.msrb.gmra.mxu3 %v7284_v50  ;;  %v4746_v7 = vld [vmem:[%s9256_s8 + $0x4b8] sm:$0xf0] }
 0x2c9   :  { %2734 = vmatpush.bf16.msra.mxu1 %v4525_v9  ;;  %2756 = vmatpush.bf16.msra.mxu3 %v5165_v14  ;;  %v5289_v9 = vor.u32 %v6051_v63, %v5288_v60  ;;  %v5280_v14 = vld [vmem:[%s9258_s10 + $0xe0] sm:$0xf]  ;;  %v4749_v15 = vor.u32 %v5911_v6, %v4746_v7  ;;  %v4714_v19 = vld [vmem:[%s9256_s8 + $0x478] sm:$0xf0]  ;;  %v5256_v7 = vld [vmem:[%s9258_s10 + $0xb0] sm:$0xf] }
 0x2ca   :  { %v5002_v27 = vld [vmem:[%s9256_s8 + $0x6b8] sm:$0xf0]  ;;  %v4717_v35 = vor.u32 %v5903_v18, %v4714_v19  ;;  %v6023_v18 = vld [vmem:[%s9258_s10 + $0x14] sm:$0xf0] }
 0x2cb   :  { %2723 = vmatpush.bf16.msra.mxu0 %v4205_v21  ;;  %2745 = vmatpush.bf16.msra.mxu2 %v4845_v24  ;;  %v5200_v21 = vld [vmem:[%s9258_s10 + $0x40] sm:$0xf]  ;;  %v6029_v24 = vld [vmem:[%s9258_s10 + $0x44] sm:$0xf0]  ;;  %v5895_v36 = vld [vmem:[%s9256_s8 + $0x41c] sm:$0xf] }
 0x2cc   :  { %v5201_v31 = vor.u32 %v6029_v24, %v5200_v21  ;;  %v4682_v38 = vld [vmem:[%s9256_s8 + $0x438] sm:$0xf0]  ;;  %v5248_v21 = vld [vmem:[%s9258_s10 + $0xa0] sm:$0xf] }
 0x2cd   :  { %2735 = vmatpush.bf16.msra.mxu1 %v4493_v26  ;;  %2757 = vmatpush.bf16.msra.mxu3 %v5133_v33  ;;  %v5975_v26 = vld [vmem:[%s9256_s8 + $0x69c] sm:$0xf]  ;;  %v8415_v30 = vpop.f32.mrf.mxu3  ;;  %v2494_v56 = vpop.f32.mrf.mxu2  ;;  %v4685_v49 = vor.u32 %v5895_v36, %v4682_v38  ;;  %v5328_v38 = vld [vmem:[%s9258_s10 + $0x140] sm:$0xf] }
 0x2ce   :  { %v5005_v37 = vor.u32 %v5975_v26, %v5002_v27  ;;  %v5967_v44 = vld [vmem:[%s9256_s8 + $0x65c] sm:$0xf]  ;;  %v5408_v26 = vld [vmem:[%s9258_s10 + $0x1e0] sm:$0xf] }
 0x2cf   :  { %2724 = vmatpush.bf16.msra.mxu0 %v4173_v40  ;;  %2746 = vmatpush.bf16.msra.mxu2 %v4813_v41  ;;  %v8417_v33 = vpop.f32.mrf.mxu0  ;;  %v5273_v40 = vor.u32 %v6047_v29, %v5272_v28  ;;  %v5352_v41 = vld [vmem:[%s9258_s10 + $0x170] sm:$0xf]  ;;  %v4970_v45 = vld [vmem:[%s9256_s8 + $0x678] sm:$0xf0]  ;;  %v1059_v28 = vperm.slane %v7975_v23, 2 }
 0x2d0   :  { %v4973_v60 = vor.u32 %v5967_v44, %v4970_v45  ;;  %v4938_v6 = vld [vmem:[%s9256_s8 + $0x638] sm:$0xf0]  ;;  %v5400_v44 = vld [vmem:[%s9258_s10 + $0x1d0] sm:$0xf]  ;;  %v6079_v45 = vld [vmem:[%s9258_s10 + $0x1d4] sm:$0xf0] }
 0x2d1   :  { %2736 = vmatpush.bf16.msra.mxu1 %v4461_v46  ;;  %2758 = vmatpush.bf16.msra.mxu3 %v5101_v47  ;;  %v5264_v46 = vld [vmem:[%s9258_s10 + $0xc0] sm:$0xf]  ;;  %v6045_v47 = vld [vmem:[%s9258_s10 + $0xc4] sm:$0xf0] }
 0x2d2   :  { %2725 = vmatmul.bf16.vlgmr.msra.gmra.mxu0 %v7179_v43  ;;  %v6049_v43 = vld [vmem:[%s9258_s10 + $0xe4] sm:$0xf0]  ;;  %v5265_v63 = vor.u32 %v6045_v47, %v5264_v46 }
 0x2d3   :  { %3567 = vmatpush.bf16.msrb.mxu0 %v5225_v42  ;;  %2747 = vmatpush.bf16.msra.mxu2 %v4781_v0  ;;  %v5281_v22 = vor.u32 %v6049_v43, %v5280_v14  ;;  %v6067_v42 = vld [vmem:[%s9258_s10 + $0x174] sm:$0xf0]  ;;  %v5344_v0 = vld [vmem:[%s9258_s10 + $0x160] sm:$0xf]  ;;  %v5185_v14 = vor.u32 %v6025_v55, %v5184_v54 }
 0x2d4   :  { %v5353_v53 = vor.u32 %v6067_v42, %v5352_v41  ;;  %v5240_v41 = vld [vmem:[%s9258_s10 + $0x90] sm:$0xf]  ;;  %v6039_v42 = vld [vmem:[%s9258_s10 + $0x94] sm:$0xf0] }
 0x2d5   :  { %2737 = vmatpush.bf16.msra.mxu1 %v4429_v4  ;;  %2759 = vmatpush.bf16.msra.mxu3 %v5069_v5  ;;  %v8456_v58 = vpop.f32.mrf.mxu1  ;;  %v5959_v4 = vld [vmem:[%s9256_s8 + $0x61c] sm:$0xf]  ;;  %v2389_v5 = vadd.f32 %v8138_v52, %v8039_v62  ;;  %v2507_v10 = vpop.f32.mrf.mxu3  ;;  %v5416_v62 = vld [vmem:[%s9258_s10 + $0x1f0] sm:$0xf]  ;;  %v6083_v52 = vld [vmem:[%s9258_s10 + $0x1f4] sm:$0xf0]  ;;  %v5241_v55 = vor.u32 %v6039_v42, %v5240_v41 }
 0x2d6   :  { %v5417_v19 = vor.u32 %v6083_v52, %v5416_v62  ;;  %v6059_v54 = vld [vmem:[%s9258_s10 + $0x134] sm:$0xf0]  ;;  %v1060_v10 = vperm.slane %v7975_v23, 3  ;;  %v5464_v23 = vld [vmem:[%s9258_s10 + $0x250] sm:$0xf] }
 0x2d7   :  { %3568 = vmatpush.bf16.msrb.mxu0 %v5217_v1  ;;  %2748 = vmatpush.bf16.msra.mxu2 %v4749_v15  ;;  %v6065_v1 = vld [vmem:[%s9258_s10 + $0x164] sm:$0xf0]  ;;  %v2520_v11 = vpop.f32.mrf.mxu0  ;;  %v2402_v12 = vadd.f32 %v8182_v13, %v2389_v5  ;;  %v5336_v13 = vld [vmem:[%s9258_s10 + $0x150] sm:$0xf]  ;;  %v5392_v5 = vld [vmem:[%s9258_s10 + $0x1c0] sm:$0xf] }
 0x2d8   :  { %2738 = vmatmul.bf16.vlgmr.msra.gmra.mxu1 %v7201_v59  ;;  %v5192_v59 = vld [vmem:[%s9258_s10 + $0x30] sm:$0xf]  ;;  %v5345_v43 = vor.u32 %v6065_v1, %v5344_v0  ;;  %v5232_v0 = vld [vmem:[%s9258_s10 + $0x80] sm:$0xf]  ;;  %v2467_v1 = vadd.f32 %v8212_v32, %v1059_v28  ;;  %v6115_v32 = vld [vmem:[%s9258_s10 + $0x2f4] sm:$0xf0] }
 0x2d9   :  { %3580 = vmatpush.bf16.msrb.mxu1 %v5289_v9  ;;  %2760 = vmatpush.bf16.msra.mxu3 %v5037_v17  ;;  %v5193_v51 = vor.u32 %v6027_v39, %v5192_v59  ;;  %v2415_v9 = vadd.f32 %v8102_v34, %v1058_v48  ;;  %v4941_v34 = vor.u32 %v5959_v4, %v4938_v6  ;;  %v5176_v17 = vld [vmem:[%s9258_s10 + $0x10] sm:$0xf]  ;;  %v2769_v27 = vmul.f32 0.2, %v2402_v12  ;;  %v6061_v59 = vld [vmem:[%s9258_s10 + $0x144] sm:$0xf0] }
 0x2da   :  { %v5177_v29 = vor.u32 %v6023_v18, %v5176_v17  ;;  %v6037_v4 = vld [vmem:[%s9258_s10 + $0x84] sm:$0xf0]  ;;  %v5384_v17 = vld [vmem:[%s9258_s10 + $0x1b0] sm:$0xf]  ;;  %v6075_v18 = vld [vmem:[%s9258_s10 + $0x1b4] sm:$0xf0] }
 0x2db   :  { %3569 = vmatpush.bf16.msrb.mxu0 %v5209_v16  ;;  %2749 = vmatpush.bf16.msra.mxu2 %v4717_v35  ;;  %v2428_v15 = vadd.f32 %v8149_v57, %v2415_v9  ;;  %v5257_v16 = vor.u32 %v6043_v8, %v5256_v7  ;;  %v6063_v57 = vld [vmem:[%s9258_s10 + $0x154] sm:$0xf0]  ;;  %v5168_v35 = vld [vmem:[%s9258_s10] sm:$0xf]  ;;  %v2777_v46 = vmax.f32 %v2402_v12, %v2769_v27  ;;  %v6077_v6 = vld [vmem:[%s9258_s10 + $0x1c4] sm:$0xf0] }
 0x2dc   :  { %v5337_v36 = vor.u32 %v6063_v57, %v5336_v13  ;;  %v5544_v8 = vld [vmem:[%s9258_s10 + $0x2f0] sm:$0xf]  ;;  %v2480_v9 = vadd.f32 %v8267_v2, %v2467_v1  ;;  %v5233_v12 = vor.u32 %v6037_v4, %v5232_v0  ;;  %v6055_v27 = vld [vmem:[%s9258_s10 + $0x114] sm:$0xf0]  ;;  %v5296_v42 = vld [vmem:[%s9258_s10 + $0x100] sm:$0xf] }
 0x2dd   :  { %3581 = vmatpush.bf16.msrb.mxu1 %v5281_v22  ;;  %2761 = vmatpush.bf16.msra.mxu3 %v5005_v37  ;;  %v6041_v22 = vld [vmem:[%s9258_s10 + $0xa4] sm:$0xf0]  ;;  %v2441_v24 = vadd.f32 %v8256_v61, %v2428_v15  ;;  %v8571_v7 = vpack.c.bf16 %v2777_v46, %v2777_v46  ;;  %v5545_v13 = vor.u32 %v6115_v32, %v5544_v8  ;;  %v5440_v1 = vld [vmem:[%s9258_s10 + $0x220] sm:$0xf] }
 0x2de   :  { %v5249_v56 = vor.u32 %v6041_v22, %v5248_v21  ;;  %v6021_v37 = vld [vmem:[%s9258_s10 + $0x4] sm:$0xf0]  ;;  %v2519_v21 = vadd.f32 %v8417_v33, %v1060_v10  ;;  %v5608_v10 = vld [vmem:[%s9258_s10 + $0x370] sm:$0xf] }
 0x2df   :  { %3570 = vmatpush.bf16.msrb.mxu0 %v5201_v31  ;;  %2750 = vmatpush.bf16.msra.mxu2 %v4685_v49  ;;  %v2454_v61 = vadd.f32 %v8300_v20, %v2441_v24  ;;  %v2533_v31 = vpop.f32.mrf.mxu1  ;;  %v5480_v20 = vld [vmem:[%s9258_s10 + $0x270] sm:$0xf]  ;;  %v5169_v47 = vor.u32 %v6021_v37, %v5168_v35  ;;  %v5329_v49 = vor.u32 %v6061_v59, %v5328_v38  ;;  %v6057_v15 = vld [vmem:[%s9258_s10 + $0x124] sm:$0xf0]  ;;  %v6111_v37 = vld [vmem:[%s9258_s10 + $0x2d4] sm:$0xf0] }
 0x2e0   :  { %v2532_v28 = vadd.f32 %v8456_v58, %v2519_v21  ;;  %v6093_v35 = vld [vmem:[%s9258_s10 + $0x244] sm:$0xf0]  ;;  %v5528_v58 = vld [vmem:[%s9258_s10 + $0x2d0] sm:$0xf] }
 0x2e1   :  { %3582 = vmatpush.bf16.msrb.mxu1 %v5273_v40  ;;  %2762 = vmatpush.bf16.msra.mxu3 %v4973_v60  ;;  %v6099_v40 = vld [vmem:[%s9258_s10 + $0x274] sm:$0xf0]  ;;  %v2770_v48 = vmul.f32 0.2, %v2454_v61  ;;  %v5401_v60 = vor.u32 %v6079_v45, %v5400_v44  ;;  %v6053_v44 = vld [vmem:[%s9258_s10 + $0x104] sm:$0xf0] }
 0x2e2   :  { %2751 = vmatmul.bf16.vlgmr.msra.gmra.mxu2 %v7241_v25  ;;  %v6081_v25 = vld [vmem:[%s9258_s10 + $0x1e4] sm:$0xf0]  ;;  %v5448_v45 = vld [vmem:[%s9258_s10 + $0x230] sm:$0xf] }
 0x2e3   :  { %3571 = vmatpush.bf16.msrb.mxu0 %v5193_v51  ;;  %3593 = vmatpush.bf16.msrb.mxu2 %v5353_v53  ;;  %v5409_v39 = vor.u32 %v6081_v25, %v5408_v26  ;;  %v5481_v51 = vor.u32 %v6099_v40, %v5480_v20  ;;  %v5320_v53 = vld [vmem:[%s9258_s10 + $0x130] sm:$0xf]  ;;  %v2778_v2 = vmax.f32 %v2454_v61, %v2770_v48  ;;  %v5376_v61 = vld [vmem:[%s9258_s10 + $0x1a0] sm:$0xf]  ;;  %v6089_v4 = vld [vmem:[%s9258_s10 + $0x224] sm:$0xf0] }
 0x2e4   :  { %v5321_v11 = vor.u32 %v6059_v54, %v5320_v53  ;;  %v5385_v26 = vor.u32 %v6075_v18, %v5384_v17  ;;  %v5304_v25 = vld [vmem:[%s9258_s10 + $0x110] sm:$0xf]  ;;  %v5520_v53 = vld [vmem:[%s9258_s10 + $0x2c0] sm:$0xf]  ;;  %v6109_v54 = vld [vmem:[%s9258_s10 + $0x2c4] sm:$0xf0] }
 0x2e5   :  { %3583 = vmatpush.bf16.msrb.mxu1 %v5265_v63  ;;  %2763 = vmatpush.bf16.msra.mxu3 %v4941_v34  ;;  %v6097_v63 = vld [vmem:[%s9258_s10 + $0x264] sm:$0xf0]  ;;  %v2544_v62 = vpop.f32.mrf.mxu2  ;;  %v2493_v34 = vadd.f32 %v8363_v3, %v2480_v9  ;;  %v8618_v33 = vpack.c.bf16 %v2778_v2, %v2778_v2  ;;  %v5368_v48 = vld [vmem:[%s9258_s10 + $0x190] sm:$0xf]  ;;  %v5521_v9 = vor.u32 %v6109_v54, %v5520_v53  ;;  %v5600_v18 = vld [vmem:[%s9258_s10 + $0x360] sm:$0xf] }
 0x2e6   :  { %v6113_v3 = vld [vmem:[%s9258_s10 + $0x2e4] sm:$0xf0]  ;;  %v2545_v59 = vadd.f32 %v2544_v62, %v2532_v28  ;;  %v5512_v62 = vld [vmem:[%s9258_s10 + $0x2b0] sm:$0xf]  ;;  %v6030_v53 = vld [vmem:[%s9258_s10 + $0x54] sm:$0xf] }
 0x2e7   :  { %3572 = vmatpush.bf16.msrb.mxu0 %v5185_v14  ;;  %3594 = vmatpush.bf16.msrb.mxu2 %v5345_v43  ;;  %v5393_v14 = vor.u32 %v6077_v6, %v5392_v5  ;;  %v5312_v43 = vld [vmem:[%s9258_s10 + $0x120] sm:$0xf]  ;;  %v2506_v57 = vadd.f32 %v8415_v30, %v2493_v34  ;;  %v6069_v32 = vld [vmem:[%s9258_s10 + $0x184] sm:$0xf0]  ;;  %v5432_v2 = vld [vmem:[%s9258_s10 + $0x210] sm:$0xf] }
 0x2e8   :  { %2764 = vmatmul.bf16.vlgmr.msra.gmra.mxu3 %v7284_v50  ;;  %v5472_v50 = vld [vmem:[%s9258_s10 + $0x260] sm:$0xf]  ;;  %v5313_v22 = vor.u32 %v6057_v15, %v5312_v43  ;;  %v5441_v15 = vor.u32 %v6089_v4, %v5440_v1  ;;  %v5592_v28 = vld [vmem:[%s9258_s10 + $0x350] sm:$0xf]  ;;  %v6123_v1 = vld [vmem:[%s9258_s10 + $0x334] sm:$0xf0] }
 0x2e9   :  { %3584 = vmatpush.bf16.msrb.mxu1 %v5257_v16  ;;  %3606 = vmatpush.bf16.msrb.mxu3 %v5417_v19  ;;  %v5473_v52 = vor.u32 %v6097_v63, %v5472_v50  ;;  %v6095_v16 = vld [vmem:[%s9258_s10 + $0x254] sm:$0xf0]  ;;  %v5536_v19 = vld [vmem:[%s9258_s10 + $0x2e0] sm:$0xf]  ;;  %v2771_v38 = vmul.f32 0.2, %v2506_v57 }
 0x2ea   :  { %v5465_v24 = vor.u32 %v6095_v16, %v5464_v23  ;;  %v5456_v30 = vld [vmem:[%s9258_s10 + $0x240] sm:$0xf]  ;;  %v5537_v31 = vor.u32 %v6113_v3, %v5536_v19  ;;  %v6087_v16 = vld [vmem:[%s9258_s10 + $0x214] sm:$0xf0]  ;;  %v6105_v3 = vld [vmem:[%s9258_s10 + $0x2a4] sm:$0xf0] }
 0x2eb   :  { %3573 = vmatpush.bf16.msrb.mxu0 %v5177_v29  ;;  %3595 = vmatpush.bf16.msrb.mxu2 %v5337_v36  ;;  %v2557_v29 = vpop.f32.mrf.mxu3  ;;  %v6073_v36 = vld [vmem:[%s9258_s10 + $0x1a4] sm:$0xf0]  ;;  %v5457_v40 = vor.u32 %v6093_v35, %v5456_v30  ;;  %v5360_v5 = vld [vmem:[%s9258_s10 + $0x180] sm:$0xf]  ;;  %v5433_v21 = vor.u32 %v6087_v16, %v5432_v2  ;;  %v5226_v35 = vld [vmem:[%s9258_s10 + $0x78] sm:$0xf0] }
 0x2ec   :  { %v5377_v41 = vor.u32 %v6073_v36, %v5376_v61  ;;  %v2558_v46 = vadd.f32 %v2557_v29, %v2545_v59  ;;  %v5361_v23 = vor.u32 %v6069_v32, %v5360_v5  ;;  %v5504_v19 = vld [vmem:[%s9258_s10 + $0x2a0] sm:$0xf]  ;;  %v6127_v29 = vld [vmem:[%s9258_s10 + $0x354] sm:$0xf0]  ;;  %v5496_v61 = vld [vmem:[%s9258_s10 + $0x290] sm:$0xf] }
 0x2ed   :  { %3585 = vmatpush.bf16.msrb.mxu1 %v5249_v56  ;;  %3607 = vmatpush.bf16.msrb.mxu3 %v5409_v39  ;;  %v5305_v39 = vor.u32 %v6055_v27, %v5304_v25  ;;  %v2546_v20 = vpop.f32.mrf.mxu2  ;;  %v6034_v27 = vld [vmem:[%s9258_s10 + $0x74] sm:$0xf]  ;;  %v5505_v30 = vor.u32 %v6105_v3, %v5504_v19  ;;  %v6103_v36 = vld [vmem:[%s9258_s10 + $0x294] sm:$0xf0]  ;;  %v6048_v4 = vld [vmem:[%s9258_s10 + $0xe4] sm:$0xf] }
 0x2ee   :  { %v2772_v6 = vmul.f32 0.2, %v2558_v46  ;;  %v5229_v59 = vor.u32 %v6034_v27, %v5226_v35  ;;  %v5218_v20 = vld [vmem:[%s9258_s10 + $0x68] sm:$0xf0]  ;;  %v6028_v32 = vld [vmem:[%s9258_s10 + $0x44] sm:$0xf] }
 0x2ef   :  { %3574 = vmatpush.bf16.msrb.mxu0 %v5169_v47  ;;  %3596 = vmatpush.bf16.msrb.mxu2 %v5329_v49  ;;  %v8630_v56 = vpop.f32.mrf.mxu0  ;;  %v6091_v47 = vld [vmem:[%s9258_s10 + $0x234] sm:$0xf0]  ;;  %v5560_v3 = vld [vmem:[%s9258_s10 + $0x310] sm:$0xf] }
 0x2f0   :  { %v6071_v49 = vld [vmem:[%s9258_s10 + $0x194] sm:$0xf0]  ;;  %v5449_v50 = vor.u32 %v6091_v47, %v5448_v45  ;;  %v2780_v34 = vmax.f32 %v2558_v46, %v2772_v6  ;;  %v6125_v45 = vld [vmem:[%s9258_s10 + $0x344] sm:$0xf0]  ;;  %v6050_v46 = vld [vmem:[%s9258_s10 + $0xf4] sm:$0xf] }
 0x2f1   :  { %3586 = vmatpush.bf16.msrb.mxu1 %v5241_v55  ;;  %3608 = vmatpush.bf16.msrb.mxu3 %v5401_v60  ;;  %v5297_v55 = vor.u32 %v6053_v44, %v5296_v42  ;;  %v2779_v60 = vmax.f32 %v2506_v57, %v2771_v38  ;;  %v5369_v0 = vor.u32 %v6071_v49, %v5368_v48  ;;  %v6101_v42 = vld [vmem:[%s9258_s10 + $0x284] sm:$0xf0]  ;;  %v5584_v44 = vld [vmem:[%s9258_s10 + $0x340] sm:$0xf]  ;;  %v5290_v47 = vld [vmem:[%s9258_s10 + $0xf8] sm:$0xf0] }
 0x2f2   :  { %3575 = vmatmul.bf16.vlgmr.msrb.gmra.mxu0 %v8571_v7  ;;  %v8716_v25 = vpack.c.bf16 %v2780_v34, %v2780_v34  ;;  %v5585_v48 = vor.u32 %v6125_v45, %v5584_v44  ;;  %v6066_v44 = vld [vmem:[%s9258_s10 + $0x174] sm:$0xf]  ;;  %v5354_v45 = vld [vmem:[%s9258_s10 + $0x178] sm:$0xf0] }
 0x2f3   :  { %3619 = vmatpush.bf16.msra.mxu0 %v5481_v51  ;;  %3597 = vmatpush.bf16.msrb.mxu2 %v5321_v11  ;;  %v5529_v51 = vor.u32 %v6111_v37, %v5528_v58  ;;  %v2559_v8 = vpop.f32.mrf.mxu3  ;;  %v8689_v43 = vpack.c.bf16 %v2779_v60, %v2779_v60  ;;  %v8740_v58 = vld [vmem:[%s9257_s9] sm:$0xff]  ;;  %v5210_v60 = vld [vmem:[%s9258_s10 + $0x58] sm:$0xf0] }
 0x2f4   :  { %v1061_v37 = vperm.slane %v8740_v58, 4  ;;  %v5213_v8 = vor.u32 %v6030_v53, %v5210_v60  ;;  %v5664_v53 = vld [vmem:[%s9258_s10 + $0x3e0] sm:$0xf]  ;;  %v6040_v60 = vld [vmem:[%s9258_s10 + $0xa4] sm:$0xf] }
 0x2f5   :  { %3587 = vmatpush.bf16.msrb.mxu1 %v5233_v12  ;;  %3609 = vmatpush.bf16.msrb.mxu3 %v5393_v14  ;;  %v8663_v63 = vpop.f32.mrf.mxu1  ;;  %v6131_v12 = vld [vmem:[%s9258_s10 + $0x374] sm:$0xf0] }
 0x2f6   :  { %v5609_v14 = vor.u32 %v6131_v12, %v5608_v10  ;;  %v5202_v10 = vld [vmem:[%s9258_s10 + $0x48] sm:$0xf0]  ;;  %v6046_v12 = vld [vmem:[%s9258_s10 + $0xd4] sm:$0xf] }
 0x2f7   :  { %3620 = vmatpush.bf16.msra.mxu0 %v5473_v52  ;;  %3598 = vmatpush.bf16.msrb.mxu2 %v5313_v22  ;;  %v2572_v11 = vpop.f32.mrf.mxu0  ;;  %v6107_v52 = vld [vmem:[%s9258_s10 + $0x2b4] sm:$0xf0]  ;;  %v5205_v16 = vor.u32 %v6028_v32, %v5202_v10  ;;  %v5482_v32 = vld [vmem:[%s9258_s10 + $0x278] sm:$0xf0] }
 0x2f8   :  { %3588 = vmatmul.bf16.vlgmr.msrb.gmra.mxu1 %v8618_v33  ;;  %v5513_v17 = vor.u32 %v6107_v52, %v5512_v62  ;;  %v5568_v62 = vld [vmem:[%s9258_s10 + $0x320] sm:$0xf] }
 0x2f9   :  { %3632 = vmatpush.bf16.msra.mxu1 %v5545_v13  ;;  %3610 = vmatpush.bf16.msrb.mxu3 %v5385_v26  ;;  %v6129_v13 = vld [vmem:[%s9258_s10 + $0x364] sm:$0xf0] }
 0x2fa   :  { %v5601_v57 = vor.u32 %v6129_v13, %v5600_v18  ;;  %v6085_v26 = vld [vmem:[%s9258_s10 + $0x204] sm:$0xf0]  ;;  %v5194_v18 = vld [vmem:[%s9258_s10 + $0x38] sm:$0xf0] }
 0x2fb   :  { %3621 = vmatpush.bf16.msra.mxu0 %v5465_v24  ;;  %3599 = vmatpush.bf16.msrb.mxu2 %v5305_v39  ;;  %v5424_v24 = vld [vmem:[%s9258_s10 + $0x200] sm:$0xf]  ;;  %v6032_v39 = vld [vmem:[%s9258_s10 + $0x64] sm:$0xf] }
 0x2fc   :  { %v5425_v38 = vor.u32 %v6085_v26, %v5424_v24 }
 0x2fd   :  { %3633 = vmatpush.bf16.msra.mxu1 %v5537_v31  ;;  %3611 = vmatpush.bf16.msrb.mxu3 %v5377_v41  ;;  %v2585_v22 = vpop.f32.mrf.mxu1  ;;  %v5593_v31 = vor.u32 %v6127_v29, %v5592_v28  ;;  %v5488_v41 = vld [vmem:[%s9258_s10 + $0x280] sm:$0xf]  ;;  %v5186_v28 = vld [vmem:[%s9258_s10 + $0x28] sm:$0xf0] }
 0x2fe   :  { %v5489_v54 = vor.u32 %v6101_v42, %v5488_v41  ;;  %v5266_v22 = vld [vmem:[%s9258_s10 + $0xc8] sm:$0xf0] }
 0x2ff   :  { %3622 = vmatpush.bf16.msra.mxu0 %v5457_v40  ;;  %3600 = vmatpush.bf16.msrb.mxu2 %v5297_v55  ;;  %v5497_v40 = vor.u32 %v6103_v36, %v5496_v61  ;;  %v2571_v55 = vadd.f32 %v8630_v56, %v1061_v37  ;;  %v5282_v56 = vld [vmem:[%s9258_s10 + $0xe8] sm:$0xf0]  ;;  %v6042_v36 = vld [vmem:[%s9258_s10 + $0xb4] sm:$0xf]  ;;  %v6117_v37 = vld [vmem:[%s9258_s10 + $0x304] sm:$0xf0] }
 0x300   :  { %v5285_v11 = vor.u32 %v6048_v4, %v5282_v56  ;;  %v6020_v4 = vld [vmem:[%s9258_s10 + $0x4] sm:$0xf] }
 0x301   :  { %3634 = vmatpush.bf16.msra.mxu1 %v5529_v51  ;;  %3612 = vmatpush.bf16.msrb.mxu3 %v5369_v0  ;;  %v5221_v51 = vor.u32 %v6032_v39, %v5218_v20  ;;  %v5576_v0 = vld [vmem:[%s9258_s10 + $0x330] sm:$0xf]  ;;  %v2584_v6 = vadd.f32 %v8663_v63, %v2571_v55  ;;  %v6121_v63 = vld [vmem:[%s9258_s10 + $0x324] sm:$0xf0]  ;;  %v6064_v55 = vld [vmem:[%s9258_s10 + $0x164] sm:$0xf] }
 0x302   :  { %3601 = vmatmul.bf16.vlgmr.msrb.gmra.mxu2 %v8689_v43  ;;  %v5577_v5 = vor.u32 %v6123_v1, %v5576_v0  ;;  %v5672_v20 = vld [vmem:[%s9258_s10 + $0x3f0] sm:$0xf]  ;;  %v5346_v1 = vld [vmem:[%s9258_s10 + $0x168] sm:$0xf0] }
 0x303   :  { %3623 = vmatpush.bf16.msra.mxu0 %v5449_v50  ;;  %3645 = vmatpush.bf16.msra.mxu2 %v5609_v14  ;;  %v5293_v50 = vor.u32 %v6050_v46, %v5290_v47  ;;  %v5274_v14 = vld [vmem:[%s9258_s10 + $0xd8] sm:$0xf0]  ;;  %v6022_v47 = vld [vmem:[%s9258_s10 + $0x14] sm:$0xf]  ;;  %v5349_v56 = vor.u32 %v6064_v55, %v5346_v1 }
 0x304   :  { %v5277_v19 = vor.u32 %v6046_v12, %v5274_v14  ;;  %v5242_v12 = vld [vmem:[%s9258_s10 + $0x98] sm:$0xf0] }
 0x305   :  { %3635 = vmatpush.bf16.msra.mxu1 %v5521_v9  ;;  %3613 = vmatpush.bf16.msrb.mxu3 %v5361_v23  ;;  %v2596_v49 = vpop.f32.mrf.mxu2  ;;  %v5450_v1 = vld [vmem:[%s9258_s10 + $0x238] sm:$0xf0] }
 0x306   :  { %v2597_v9 = vadd.f32 %v2596_v49, %v2584_v6  ;;  %v5357_v49 = vor.u32 %v6066_v44, %v5354_v45  ;;  %v5170_v6 = vld [vmem:[%s9258_s10 + $0x8] sm:$0xf0] }
 0x307   :  { %3624 = vmatpush.bf16.msra.mxu0 %v5441_v15  ;;  %3646 = vmatpush.bf16.msra.mxu2 %v5601_v57  ;;  %v5569_v15 = vor.u32 %v6121_v63, %v5568_v62  ;;  %v6119_v57 = vld [vmem:[%s9258_s10 + $0x314] sm:$0xf0]  ;;  %v6062_v63 = vld [vmem:[%s9258_s10 + $0x154] sm:$0xf] }
 0x308   :  { %3614 = vmatmul.bf16.vlgmr.msrb.gmra.mxu3 %v8716_v25  ;;  %v5561_v24 = vor.u32 %v6119_v57, %v5560_v3  ;;  %v6143_v62 = vld [vmem:[%s9258_s10 + $0x3d4] sm:$0xf0]  ;;  %v5234_v3 = vld [vmem:[%s9258_s10 + $0x88] sm:$0xf0]  ;;  %v5648_v57 = vld [vmem:[%s9258_s10 + $0x3c0] sm:$0xf] }
 0x309   :  { %3636 = vmatpush.bf16.msra.mxu1 %v5513_v17  ;;  %v6026_v17 = vld [vmem:[%s9258_s10 + $0x34] sm:$0xf] }
 0x30a   :  { %v5197_v27 = vor.u32 %v6026_v17, %v5194_v18  ;;  %v5474_v18 = vld [vmem:[%s9258_s10 + $0x268] sm:$0xf0] }
 0x30b   :  { %3625 = vmatpush.bf16.msra.mxu0 %v5433_v21  ;;  %3647 = vmatpush.bf16.msra.mxu2 %v5593_v31  ;;  %v2609_v52 = vpop.f32.mrf.mxu3  ;;  %v6044_v21 = vld [vmem:[%s9258_s10 + $0xc4] sm:$0xf]  ;;  %v5552_v31 = vld [vmem:[%s9258_s10 + $0x300] sm:$0xf] }
 0x30c   :  { %v2610_v23 = vadd.f32 %v2609_v52, %v2597_v9  ;;  %v5269_v61 = vor.u32 %v6044_v21, %v5266_v22  ;;  %v5553_v39 = vor.u32 %v6117_v37, %v5552_v31  ;;  %v6038_v52 = vld [vmem:[%s9258_s10 + $0x94] sm:$0xf]  ;;  %v6141_v21 = vld [vmem:[%s9258_s10 + $0x3c4] sm:$0xf0]  ;;  %v6060_v22 = vld [vmem:[%s9258_s10 + $0x144] sm:$0xf] }
 0x30d   :  { %3637 = vmatpush.bf16.msra.mxu1 %v5505_v30  ;;  %v2598_v34 = vpop.f32.mrf.mxu2  ;;  %v6024_v30 = vld [vmem:[%s9258_s10 + $0x24] sm:$0xf]  ;;  %v6139_v31 = vld [vmem:[%s9258_s10 + $0x3b4] sm:$0xf0]  ;;  %v6058_v37 = vld [vmem:[%s9258_s10 + $0x134] sm:$0xf] }
 0x30e   :  { %v2773_v13 = vmul.f32 0.2, %v2610_v23  ;;  %v5189_v46 = vor.u32 %v6024_v30, %v5186_v28  ;;  %v5173_v34 = vor.u32 %v6020_v4, %v5170_v6  ;;  %v6114_v4 = vld [vmem:[%s9258_s10 + $0x2f4] sm:$0xf]  ;;  %v6135_v6 = vld [vmem:[%s9258_s10 + $0x394] sm:$0xf0] }
 0x30f   :  { %3626 = vmatpush.bf16.msra.mxu0 %v5425_v38  ;;  %3648 = vmatpush.bf16.msra.mxu2 %v5585_v48  ;;  %v8805_v2 = vpop.f32.mrf.mxu0  ;;  %v5178_v48 = vld [vmem:[%s9258_s10 + $0x18] sm:$0xf0] }
 0x310   :  { %v2781_v26 = vmax.f32 %v2610_v23, %v2773_v13  ;;  %v5245_v13 = vor.u32 %v6038_v52, %v5242_v12  ;;  %v6088_v12 = vld [vmem:[%s9258_s10 + $0x224] sm:$0xf] }
 0x311   :  { %3638 = vmatpush.bf16.msra.mxu1 %v5497_v40  ;;  %v6147_v40 = vld [vmem:[%s9258_s10 + $0x3f4] sm:$0xf0] }
 0x312   :  { %v8831_v29 = vpack.c.bf16 %v2781_v26, %v2781_v26  ;;  %v5673_v42 = vor.u32 %v6147_v40, %v5672_v20  ;;  %v5649_v26 = vor.u32 %v6141_v21, %v5648_v57  ;;  %v5322_v40 = vld [vmem:[%s9258_s10 + $0x138] sm:$0xf0]  ;;  %v5298_v57 = vld [vmem:[%s9258_s10 + $0x108] sm:$0xf0] }
 0x313   :  { %3671 = vmatpush.bf16.msrb.mxu0 %v5229_v59  ;;  %3649 = vmatpush.bf16.msra.mxu2 %v5577_v5  ;;  %v2611_v38 = vpop.f32.mrf.mxu3  ;;  %v5258_v59 = vld [vmem:[%s9258_s10 + $0xb8] sm:$0xf0]  ;;  %v5181_v5 = vor.u32 %v6022_v47, %v5178_v48  ;;  %v5458_v47 = vld [vmem:[%s9258_s10 + $0x248] sm:$0xf0] }
 0x314   :  { %3627 = vmatmul.bf16.vlgmr.msra.gmra.mxu0 %v8831_v29  ;;  %3658 = vmatpush.bf16.msra.mxu3 %v5673_v42  ;;  %v5325_v42 = vor.u32 %v6058_v37, %v5322_v40  ;;  %v5434_v37 = vld [vmem:[%s9258_s10 + $0x218] sm:$0xf0] }
 0x315   :  { %3639 = vmatpush.bf16.msra.mxu1 %v5489_v54  ;;  %v8833_v35 = vpop.f32.mrf.mxu1  ;;  %v6145_v54 = vld [vmem:[%s9258_s10 + $0x3e4] sm:$0xf0] }
 0x316   :  { %v5665_v0 = vor.u32 %v6145_v54, %v5664_v53 }
 0x317   :  { %3672 = vmatpush.bf16.msrb.mxu0 %v5221_v51  ;;  %3650 = vmatpush.bf16.msra.mxu2 %v5569_v15  ;;  %v2624_v41 = vpop.f32.mrf.mxu0  ;;  %v5261_v51 = vor.u32 %v6042_v36, %v5258_v59  ;;  %v5338_v15 = vld [vmem:[%s9258_s10 + $0x158] sm:$0xf0]  ;;  %v5640_v36 = vld [vmem:[%s9258_s10 + $0x3b0] sm:$0xf]  ;;  %v6094_v59 = vld [vmem:[%s9258_s10 + $0x254] sm:$0xf] }
 0x318   :  { %3659 = vmatpush.bf16.msra.mxu3 %v5665_v0  ;;  %v5341_v23 = vor.u32 %v6062_v63, %v5338_v15  ;;  %v5641_v20 = vor.u32 %v6139_v31, %v5640_v36  ;;  %v6090_v0 = vld [vmem:[%s9258_s10 + $0x234] sm:$0xf]  ;;  %v5410_v36 = vld [vmem:[%s9258_s10 + $0x1e8] sm:$0xf0] }
 0x319   :  { %3684 = vmatpush.bf16.msrb.mxu1 %v5293_v50  ;;  %v5250_v50 = vld [vmem:[%s9258_s10 + $0xa8] sm:$0xf0]  ;;  %v5453_v52 = vor.u32 %v6090_v0, %v5450_v1  ;;  %v6086_v31 = vld [vmem:[%s9258_s10 + $0x214] sm:$0xf]  ;;  %v1063_v0 = vperm.slane %v8740_v58, 6 }
 0x31a   :  { %v5253_v10 = vor.u32 %v6040_v60, %v5250_v50  ;;  %v5437_v40 = vor.u32 %v6086_v31, %v5434_v37  ;;  %v6128_v37 = vld [vmem:[%s9258_s10 + $0x364] sm:$0xf] }
 0x31b   :  { %3673 = vmatpush.bf16.msrb.mxu0 %v5213_v8  ;;  %3651 = vmatpush.bf16.msra.mxu2 %v5561_v24  ;;  %v6098_v8 = vld [vmem:[%s9258_s10 + $0x274] sm:$0xf]  ;;  %v1062_v24 = vperm.slane %v8740_v58, 5 }
 0x31c   :  { %v5485_v17 = vor.u32 %v6098_v8, %v5482_v32  ;;  %v6054_v8 = vld [vmem:[%s9258_s10 + $0x114] sm:$0xf] }
 0x31d   :  { %3685 = vmatpush.bf16.msrb.mxu1 %v5285_v11  ;;  %v2637_v9 = vpop.f32.mrf.mxu1  ;;  %v5656_v11 = vld [vmem:[%s9258_s10 + $0x3d0] sm:$0xf]  ;;  %v2623_v41 = vadd.f32 %v8805_v2, %v1062_v24  ;;  %v6137_v2 = vld [vmem:[%s9258_s10 + $0x3a4] sm:$0xf0]  ;;  %v6082_v24 = vld [vmem:[%s9258_s10 + $0x1f4] sm:$0xf] }
 0x31e   :  { %v5657_v14 = vor.u32 %v6143_v62, %v5656_v11  ;;  %v5546_v9 = vld [vmem:[%s9258_s10 + $0x2f8] sm:$0xf0] }
 0x31f   :  { %3674 = vmatpush.bf16.msrb.mxu0 %v5205_v16  ;;  %3652 = vmatpush.bf16.msra.mxu2 %v5553_v39  ;;  %v6096_v16 = vld [vmem:[%s9258_s10 + $0x264] sm:$0xf]  ;;  %v5466_v39 = vld [vmem:[%s9258_s10 + $0x258] sm:$0xf0]  ;;  %v2636_v44 = vadd.f32 %v8833_v35, %v2623_v41  ;;  %v5549_v15 = vor.u32 %v6114_v4, %v5546_v9  ;;  %v6078_v41 = vld [vmem:[%s9258_s10 + $0x1d4] sm:$0xf] }
 0x320   :  { %3660 = vmatpush.bf16.msra.mxu3 %v5657_v14  ;;  %v5477_v28 = vor.u32 %v6096_v16, %v5474_v18  ;;  %v5469_v45 = vor.u32 %v6094_v59, %v5466_v39  ;;  %v6056_v35 = vld [vmem:[%s9258_s10 + $0x124] sm:$0xf]  ;;  %v5306_v11 = vld [vmem:[%s9258_s10 + $0x118] sm:$0xf0]  ;;  %v5442_v14 = vld [vmem:[%s9258_s10 + $0x228] sm:$0xf0] }
 0x321   :  { %3686 = vmatpush.bf16.msrb.mxu1 %v5277_v19  ;;  %v6036_v19 = vld [vmem:[%s9258_s10 + $0x84] sm:$0xf]  ;;  %v5309_v62 = vor.u32 %v6054_v8, %v5306_v11  ;;  %v6110_v59 = vld [vmem:[%s9258_s10 + $0x2d4] sm:$0xf]  ;;  %v5530_v39 = vld [vmem:[%s9258_s10 + $0x2d8] sm:$0xf0] }
 0x322   :  { %v6052_v16 = vld [vmem:[%s9258_s10 + $0x104] sm:$0xf]  ;;  %v6102_v11 = vld [vmem:[%s9258_s10 + $0x294] sm:$0xf] }
 0x323   :  { %3675 = vmatpush.bf16.msrb.mxu0 %v5197_v27  ;;  %3697 = vmatpush.bf16.msrb.mxu2 %v5357_v49  ;;  %v5330_v27 = vld [vmem:[%s9258_s10 + $0x148] sm:$0xf0]  ;;  %v6104_v4 = vld [vmem:[%s9258_s10 + $0x2a4] sm:$0xf] }
 0x324   :  { %v5333_v30 = vor.u32 %v6060_v22, %v5330_v27  ;;  %3661 = vmatpush.bf16.msra.mxu3 %v5649_v26  ;;  %v5301_v22 = vor.u32 %v6052_v16, %v5298_v57  ;;  %v5418_v26 = vld [vmem:[%s9258_s10 + $0x1f8] sm:$0xf0]  ;;  %v5490_v16 = vld [vmem:[%s9258_s10 + $0x288] sm:$0xf0] }
 0x325   :  { %3687 = vmatpush.bf16.msrb.mxu1 %v5269_v61  ;;  %v5237_v61 = vor.u32 %v6036_v19, %v5234_v3  ;;  %v2648_v38 = vpop.f32.mrf.mxu2  ;;  %v5538_v19 = vld [vmem:[%s9258_s10 + $0x2e8] sm:$0xf0] }
 0x326   :  { %v2649_v48 = vadd.f32 %v2648_v38, %v2636_v44  ;;  %v6084_v44 = vld [vmem:[%s9258_s10 + $0x204] sm:$0xf] }
 0x327   :  { %3676 = vmatpush.bf16.msrb.mxu0 %v5189_v46  ;;  %3698 = vmatpush.bf16.msrb.mxu2 %v5349_v56  ;;  %v6092_v46 = vld [vmem:[%s9258_s10 + $0x244] sm:$0xf] }
 0x328   :  { %3662 = vmatpush.bf16.msra.mxu3 %v5641_v20  ;;  %v5461_v50 = vor.u32 %v6092_v46, %v5458_v47  ;;  %v5533_v46 = vor.u32 %v6110_v59, %v5530_v39 }
 0x329   :  { %3688 = vmatpush.bf16.msrb.mxu1 %v5261_v51  ;;  %v5314_v51 = vld [vmem:[%s9258_s10 + $0x128] sm:$0xf0] }
 0x32a   :  { %v5317_v54 = vor.u32 %v6056_v35, %v5314_v51 }
 0x32b   :  { %3677 = vmatpush.bf16.msrb.mxu0 %v5181_v5  ;;  %3699 = vmatpush.bf16.msrb.mxu2 %v5341_v23  ;;  %v2661_v53 = vpop.f32.mrf.mxu3  ;;  %v5624_v5 = vld [vmem:[%s9258_s10 + $0x390] sm:$0xf]  ;;  %v5616_v23 = vld [vmem:[%s9258_s10 + $0x380] sm:$0xf] }
 0x32c   :  { %v2662_v55 = vadd.f32 %v2661_v53, %v2649_v48  ;;  %v6076_v48 = vld [vmem:[%s9258_s10 + $0x1c4] sm:$0xf] }
 0x32d   :  { %3689 = vmatpush.bf16.msrb.mxu1 %v5253_v10  ;;  %v2650_v56 = vpop.f32.mrf.mxu2  ;;  %v5625_v10 = vor.u32 %v6135_v6, %v5624_v5  ;;  %v6074_v5 = vld [vmem:[%s9258_s10 + $0x1b4] sm:$0xf]  ;;  %v5386_v6 = vld [vmem:[%s9258_s10 + $0x1b8] sm:$0xf0] }
 0x32e   :  { %v2774_v32 = vmul.f32 0.2, %v2662_v55  ;;  %v5506_v56 = vld [vmem:[%s9258_s10 + $0x2a8] sm:$0xf0] }
 0x32f   :  { %3678 = vmatpush.bf16.msrb.mxu0 %v5173_v34  ;;  %3700 = vmatpush.bf16.msrb.mxu2 %v5333_v30  ;;  %v8978_v60 = vpop.f32.mrf.mxu0  ;;  %v6133_v34 = vld [vmem:[%s9258_s10 + $0x384] sm:$0xf0]  ;;  %v5445_v30 = vor.u32 %v6088_v12, %v5442_v14 }
 0x330   :  { %v2782_v63 = vmax.f32 %v2662_v55, %v2774_v32  ;;  %v5617_v3 = vor.u32 %v6133_v34, %v5616_v23  ;;  %v5514_v55 = vld [vmem:[%s9258_s10 + $0x2b8] sm:$0xf0]  ;;  %v5389_v32 = vor.u32 %v6074_v5, %v5386_v6  ;;  %v2675_v9 = vadd.f32 %v8978_v60, %v1063_v0  ;;  %v6116_v6 = vld [vmem:[%s9258_s10 + $0x304] sm:$0xf] }
 0x331   :  { %3690 = vmatpush.bf16.msrb.mxu1 %v5245_v13  ;;  %v6112_v13 = vld [vmem:[%s9258_s10 + $0x2e4] sm:$0xf] }
 0x332   :  { %3679 = vmatmul.bf16.vlgmr.msrb.gmra.mxu0 %v8571_v7  ;;  %v5632_v7 = vld [vmem:[%s9258_s10 + $0x3a0] sm:$0xf]  ;;  %v5541_v38 = vor.u32 %v6112_v13, %v5538_v19  ;;  %v5370_v13 = vld [vmem:[%s9258_s10 + $0x198] sm:$0xf0] }
 0x333   :  { %3723 = vmatpush.bf16.msra.mxu0 %v5485_v17  ;;  %3701 = vmatpush.bf16.msrb.mxu2 %v5325_v42  ;;  %v5633_v49 = vor.u32 %v6137_v2, %v5632_v7  ;;  %v9019_v17 = vpack.c.bf16 %v2782_v63, %v2782_v63  ;;  %v2663_v21 = vpop.f32.mrf.mxu3  ;;  %v5402_v42 = vld [vmem:[%s9258_s10 + $0x1d8] sm:$0xf0]  ;;  %v6108_v7 = vld [vmem:[%s9258_s10 + $0x2c4] sm:$0xf]  ;;  %v5522_v2 = vld [vmem:[%s9258_s10 + $0x2c8] sm:$0xf0] }
 0x334   :  { %v5405_v35 = vor.u32 %v6078_v41, %v5402_v42  ;;  %v5525_v53 = vor.u32 %v6108_v7, %v5522_v2  ;;  %v5498_v63 = vld [vmem:[%s9258_s10 + $0x298] sm:$0xf0]  ;;  %v6130_v21 = vld [vmem:[%s9258_s10 + $0x374] sm:$0xf]  ;;  %v1064_v2 = vperm.slane %v8740_v58, 7 }
 0x335   :  { %3691 = vmatpush.bf16.msrb.mxu1 %v5237_v61  ;;  %3663 = vmatpush.bf16.msra.mxu3 %v5633_v49  ;;  %v9021_v18 = vpop.f32.mrf.mxu1  ;;  %v6080_v61 = vld [vmem:[%s9258_s10 + $0x1e4] sm:$0xf]  ;;  %v5394_v49 = vld [vmem:[%s9258_s10 + $0x1c8] sm:$0xf0]  ;;  %v5501_v14 = vor.u32 %v6102_v11, %v5498_v63  ;;  %v5594_v41 = vld [vmem:[%s9258_s10 + $0x358] sm:$0xf0] }
 0x336   :  { %3640 = vmatmul.bf16.vlgmr.msra.gmra.mxu1 %v9019_v17  ;;  %v5413_v20 = vor.u32 %v6080_v61, %v5410_v36  ;;  %v5578_v7 = vld [vmem:[%s9258_s10 + $0x338] sm:$0xf0]  ;;  %v6118_v58 = vld [vmem:[%s9258_s10 + $0x314] sm:$0xf] }
 0x337   :  { %3724 = vmatpush.bf16.msra.mxu0 %v5477_v28  ;;  %3702 = vmatpush.bf16.msrb.mxu2 %v5317_v54  ;;  %v2676_v27 = vpop.f32.mrf.mxu0  ;;  %v5421_v28 = vor.u32 %v6082_v24, %v5418_v26  ;;  %v6106_v54 = vld [vmem:[%s9258_s10 + $0x2b4] sm:$0xf] }
 0x338   :  { %v5517_v1 = vor.u32 %v6106_v54, %v5514_v55  ;;  %v6068_v27 = vld [vmem:[%s9258_s10 + $0x184] sm:$0xf]  ;;  %v6146_v11 = vld [vmem:[%s9258_s10 + $0x3f4] sm:$0xf] }
 0x339   :  { %3664 = vmatpush.bf16.msra.mxu3 %v5625_v10  ;;  %3736 = vmatpush.bf16.msra.mxu1 %v5549_v15  ;;  %v5509_v10 = vor.u32 %v6104_v4, %v5506_v56  ;;  %v6100_v15 = vld [vmem:[%s9258_s10 + $0x284] sm:$0xf] }
 0x33a   :  { %v5493_v24 = vor.u32 %v6100_v15, %v5490_v16  ;;  %v5666_v15 = vld [vmem:[%s9258_s10 + $0x3e8] sm:$0xf0] }
 0x33b   :  { %3725 = vmatpush.bf16.msra.mxu0 %v5469_v45  ;;  %3703 = vmatpush.bf16.msrb.mxu2 %v5309_v62  ;;  %v5426_v45 = vld [vmem:[%s9258_s10 + $0x208] sm:$0xf0]  ;;  %v2688_v62 = vadd.f32 %v9021_v18, %v2675_v9  ;;  %v6070_v18 = vld [vmem:[%s9258_s10 + $0x194] sm:$0xf] }
 0x33c   :  { %v5429_v51 = vor.u32 %v6084_v44, %v5426_v45  ;;  %v6124_v45 = vld [vmem:[%s9258_s10 + $0x344] sm:$0xf] }
 0x33d   :  { %3665 = vmatpush.bf16.msra.mxu3 %v5617_v3  ;;  %3737 = vmatpush.bf16.msra.mxu1 %v5541_v38  ;;  %v2689_v47 = vpop.f32.mrf.mxu1  ;;  %v5373_v3 = vor.u32 %v6070_v18, %v5370_v13  ;;  %v5602_v38 = vld [vmem:[%s9258_s10 + $0x368] sm:$0xf0]  ;;  %v6142_v13 = vld [vmem:[%s9258_s10 + $0x3d4] sm:$0xf] }
 0x33e   :  { %v6122_v47 = vld [vmem:[%s9258_s10 + $0x334] sm:$0xf] }
 0x33f   :  { %3726 = vmatpush.bf16.msra.mxu0 %v5461_v50  ;;  %3704 = vmatpush.bf16.msrb.mxu2 %v5301_v22  ;;  %v5397_v50 = vor.u32 %v6076_v48, %v5394_v49  ;;  %v5610_v22 = vld [vmem:[%s9258_s10 + $0x378] sm:$0xf0]  ;;  %v6120_v48 = vld [vmem:[%s9258_s10 + $0x324] sm:$0xf]  ;;  %v5570_v49 = vld [vmem:[%s9258_s10 + $0x328] sm:$0xf0] }
 0x340   :  { %v5573_v54 = vor.u32 %v6120_v48, %v5570_v49 }
 0x341   :  { %3710 = vmatpush.bf16.msrb.mxu3 %v5421_v28  ;;  %3738 = vmatpush.bf16.msra.mxu1 %v5533_v46  ;;  %v5613_v28 = vor.u32 %v6130_v21, %v5610_v22  ;;  %v5586_v46 = vld [vmem:[%s9258_s10 + $0x348] sm:$0xf0]  ;;  %v6140_v21 = vld [vmem:[%s9258_s10 + $0x3c4] sm:$0xf] }
 0x342   :  { %v5650_v22 = vld [vmem:[%s9258_s10 + $0x3c8] sm:$0xf0] }
 0x343   :  { %3727 = vmatpush.bf16.msra.mxu0 %v5453_v52 }
 0x345   :  { %3711 = vmatpush.bf16.msrb.mxu3 %v5413_v20  ;;  %3739 = vmatpush.bf16.msra.mxu1 %v5525_v53  ;;  %v2700_v8 = vpop.f32.mrf.mxu2  ;;  %v5605_v20 = vor.u32 %v6128_v37, %v5602_v38  ;;  %v6134_v38 = vld [vmem:[%s9258_s10 + $0x394] sm:$0xf] }
 0x346   :  { %3692 = vmatmul.bf16.vlgmr.msrb.gmra.mxu1 %v8618_v33  ;;  %v5378_v33 = vld [vmem:[%s9258_s10 + $0x1a8] sm:$0xf0]  ;;  %v2701_v52 = vadd.f32 %v2700_v8, %v2688_v62  ;;  %v5674_v62 = vld [vmem:[%s9258_s10 + $0x3f8] sm:$0xf0] }
 0x347   :  { %3728 = vmatpush.bf16.msra.mxu0 %v5445_v30  ;;  %v5362_v30 = vld [vmem:[%s9258_s10 + $0x188] sm:$0xf0] }
 0x348   :  { %v5365_v61 = vor.u32 %v6068_v27, %v5362_v30  ;;  %v5554_v8 = vld [vmem:[%s9258_s10 + $0x308] sm:$0xf0]  ;;  %v5642_v27 = vld [vmem:[%s9258_s10 + $0x3b8] sm:$0xf0] }
 0x349   :  { %3712 = vmatpush.bf16.msrb.mxu3 %v5405_v35  ;;  %3740 = vmatpush.bf16.msra.mxu1 %v5517_v1  ;;  %v5581_v35 = vor.u32 %v6122_v47, %v5578_v7  ;;  %v9185_v1 = vld [vmem:[%s9259_s11] sm:$0x3]  ;;  %v5557_v63 = vor.u32 %v6116_v6, %v5554_v8 }
 0x34a   :  { %v2924_v49 = vperm.slane %v9185_v1, 1 }
 0x34b   :  { %3729 = vmatpush.bf16.msra.mxu0 %v5437_v40  ;;  %v2713_v12 = vpop.f32.mrf.mxu3  ;;  %v6126_v40 = vld [vmem:[%s9258_s10 + $0x354] sm:$0xf] }
 0x34c   :  { %v2714_v23 = vadd.f32 %v2713_v12, %v2701_v52  ;;  %v5597_v42 = vor.u32 %v6126_v40, %v5594_v41  ;;  %v6132_v41 = vld [vmem:[%s9258_s10 + $0x384] sm:$0xf] }
 0x34d   :  { %3713 = vmatpush.bf16.msrb.mxu3 %v5397_v50  ;;  %3741 = vmatpush.bf16.msra.mxu1 %v5509_v10  ;;  %v2702_v19 = vpop.f32.mrf.mxu2  ;;  %v5562_v50 = vld [vmem:[%s9258_s10 + $0x318] sm:$0xf0] }
 0x34e   :  { %v2775_v57 = vmul.f32 0.2, %v2714_v23  ;;  %v5658_v19 = vld [vmem:[%s9258_s10 + $0x3d8] sm:$0xf0] }
 0x34f   :  { %3730 = vmatpush.bf16.msra.mxu0 %v5429_v51  ;;  %v2726_v34 = vpop.f32.mrf.mxu0 }
 0x350   :  { %v2783_v26 = vmax.f32 %v2714_v23, %v2775_v57  ;;  %v2727_v53 = vadd.f32 %v2726_v34, %v1064_v2 }
 0x351   :  { %3714 = vmatpush.bf16.msrb.mxu3 %v5389_v32  ;;  %3742 = vmatpush.bf16.msra.mxu1 %v5501_v14  ;;  %v2923_v32 = vperm.slane %v9185_v1, 0  ;;  %v6144_v14 = vld [vmem:[%s9258_s10 + $0x3e4] sm:$0xf] }
 0x352   :  { %3731 = vmatmul.bf16.vlgmr.msra.gmra.mxu0 %v8831_v29  ;;  %v6072_v29 = vld [vmem:[%s9258_s10 + $0x1a4] sm:$0xf]  ;;  %v9140_v36 = vpack.c.bf16 %v2783_v26, %v2783_v26  ;;  %v5669_v18 = vor.u32 %v6144_v14, %v5666_v15  ;;  %v6138_v26 = vld [vmem:[%s9258_s10 + $0x3b4] sm:$0xf] }
 0x353   :  { %v5381_v60 = vor.u32 %v6072_v29, %v5378_v33  ;;  %v2715_v59 = vpop.f32.mrf.mxu3  ;;  %v5645_v30 = vor.u32 %v6138_v26, %v5642_v27 }
 0x354   :  { %3653 = vmatmul.bf16.vlgmr.msra.gmra.mxu2 %v9140_v36  ;;  %v5626_v59 = vld [vmem:[%s9258_s10 + $0x398] sm:$0xf0] }
 0x355   :  { %3715 = vmatpush.bf16.msrb.mxu3 %v5381_v60  ;;  %v2739_v31 = vpop.f32.mrf.mxu1  ;;  %3743 = vmatpush.bf16.msra.mxu1 %v5493_v24  ;;  %v5677_v60 = vor.u32 %v6146_v11, %v5674_v62  ;;  %v5653_v24 = vor.u32 %v6140_v21, %v5650_v22  ;;  %v5629_v40 = vor.u32 %v6134_v38, %v5626_v59 }
 0x356   :  { %3749 = vmatpush.bf16.msra.mxu2 %v5613_v28  ;;  %v2740_v55 = vadd.f32 %v2739_v31, %v2727_v53  ;;  %v6136_v28 = vld [vmem:[%s9258_s10 + $0x3a4] sm:$0xf] }
 0x357   :  { %v2728_v39 = vpop.f32.mrf.mxu0 }
 0x358   :  { %3744 = vmatmul.bf16.vlgmr.msra.gmra.mxu1 %v9019_v17  ;;  %v5589_v17 = vor.u32 %v6124_v45, %v5586_v46 }
 0x359   :  { %3716 = vmatpush.bf16.msrb.mxu3 %v5373_v3  ;;  %v5661_v3 = vor.u32 %v6142_v13, %v5658_v19 }
 0x35a   :  { %3750 = vmatpush.bf16.msra.mxu2 %v5605_v20 }
 0x35d   :  { %3717 = vmatpush.bf16.msrb.mxu3 %v5365_v61  ;;  %v2741_v44 = vpop.f32.mrf.mxu1  ;;  %v5634_v61 = vld [vmem:[%s9258_s10 + $0x3a8] sm:$0xf0] }
 0x35e   :  { %3751 = vmatpush.bf16.msra.mxu2 %v5597_v42  ;;  %v5637_v37 = vor.u32 %v6136_v28, %v5634_v61 }
 0x362   :  { %3752 = vmatpush.bf16.msra.mxu2 %v5589_v17 }
 0x364   :  { %3705 = vmatmul.bf16.vlgmr.msrb.gmra.mxu2 %v8689_v43  ;;  %v5565_v43 = vor.u32 %v6118_v58, %v5562_v50 }
 0x365   :  { %v2752_v51 = vpop.f32.mrf.mxu2 }
 0x366   :  { %3753 = vmatpush.bf16.msra.mxu2 %v5581_v35  ;;  %v2753_v0 = vadd.f32 %v2752_v51, %v2740_v55 }
 0x36a   :  { %3754 = vmatpush.bf16.msra.mxu2 %v5573_v54 }
 0x36b   :  { %v2765_v4 = vpop.f32.mrf.mxu3 }
 0x36c   :  { %v2766_v56 = vadd.f32 %v2765_v4, %v2753_v0 }
 0x36d   :  { %v2754_v9 = vpop.f32.mrf.mxu2 }
 0x36e   :  { %v2776_v10 = vmul.f32 0.2, %v2766_v56  ;;  %3755 = vmatpush.bf16.msra.mxu2 %v5565_v43 }
 0x36f   :  { %v3576_v5 = vpop.f32.mrf.mxu0 }
 0x370   :  { %v2784_v29 = vmax.f32 %v2766_v56, %v2776_v10  ;;  %v3577_v33 = vadd.f32 %v3576_v5, %v2923_v32 }
 0x372   :  { %v2792_v52 = vpack.c.bf16 %v2784_v29, %v2784_v29  ;;  %3756 = vmatpush.bf16.msra.mxu2 %v5557_v63 }
 0x373   :  { %v2767_v34 = vpop.f32.mrf.mxu3 }
 0x374   :  { %3666 = vmatmul.bf16.vlgmr.msra.gmra.mxu3 %v2792_v52 }
 0x375   :  { %v3589_v12 = vpop.f32.mrf.mxu1  ;;  %3762 = vmatpush.bf16.msra.mxu3 %v5677_v60  ;;  %3757 = vmatmul.bf16.vlgmr.msra.gmra.mxu2 %v9140_v36 }
 0x376   :  { %v3590_v23 = vadd.f32 %v3589_v12, %v3577_v33 }
 0x377   :  { %v3578_v16 = vpop.f32.mrf.mxu0 }
 0x379   :  { %3763 = vmatpush.bf16.msra.mxu3 %v5669_v18 }
 0x37d   :  { %v3591_v57 = vpop.f32.mrf.mxu1  ;;  %3764 = vmatpush.bf16.msra.mxu3 %v5661_v3 }
 0x381   :  { %3765 = vmatpush.bf16.msra.mxu3 %v5653_v24 }
 0x384   :  { %3718 = vmatmul.bf16.vlgmr.msrb.gmra.mxu3 %v8716_v25  ;;  %v5618_v25 = vld [vmem:[%s9258_s10 + $0x388] sm:$0xf0]  ;;  %s6185_s10 = smov [#allocation2]  }
 0x385   :  { %v3602_v36 = vpop.f32.mrf.mxu2  ;;  %3766 = vmatpush.bf16.msra.mxu3 %v5645_v30  ;;  %v5621_v44 = vor.u32 %v6132_v41, %v5618_v25  ;;  %s3784_s17 = sshll.u32 %s6185_s10, 4  ;;  %s3785_s17 = int_to_ptr.vmem [resolvable:$true] %s3784_s17 }
 0x386   :  { %v3603_v31 = vadd.f32 %v3602_v36, %v3590_v23 }
 0x389   :  { %3767 = vmatpush.bf16.msra.mxu3 %v5637_v37 }
 0x38b   :  { %v3615_v39 = vpop.f32.mrf.mxu3 }
 0x38c   :  { %v3616_v20 = vadd.f32 %v3615_v39, %v3603_v31 }
 0x38d   :  { %v3604_v42 = vpop.f32.mrf.mxu2  ;;  %3768 = vmatpush.bf16.msra.mxu3 %v5629_v40 }
 0x391   :  { %3769 = vmatpush.bf16.msra.mxu3 %v5621_v44  ;;  %v3628_v46 = vpop.f32.mrf.mxu0 }
 0x392   :  { %v3629_v17 = vadd.f32 %v3628_v46, %v3616_v20 }
 0x393   :  { %v3617_v45 = vpop.f32.mrf.mxu3 }
 0x394   :  { %3770 = vmatmul.bf16.vlgmr.msra.gmra.mxu3 %v2792_v52 }
 0x399   :  { %v3630_v47 = vpop.f32.mrf.mxu0 }
 0x3af   :  { %v3680_v7 = vpop.f32.mrf.mxu0 }
 0x3b0   :  { %v3681_v51 = vadd.f32 %v3680_v7, %v2924_v49 }
 0x3b3   :  { %v3641_v35 = vpop.f32.mrf.mxu1 }
 0x3b4   :  { %v3642_v8 = vadd.f32 %v3641_v35, %v3629_v17 }
 0x3b7   :  { %v3682_v2 = vpop.f32.mrf.mxu0 }
 0x3bb   :  { %v3643_v48 = vpop.f32.mrf.mxu1 }
 0x3c3   :  { %v3693_v54 = vpop.f32.mrf.mxu1 }
 0x3c4   :  { %v3694_v55 = vadd.f32 %v3693_v54, %v3681_v51 }
 0x3cb   :  { %v3695_v50 = vpop.f32.mrf.mxu1 }
 0x3cf   :  { %v3732_v53 = vpop.f32.mrf.mxu0 }
 0x3d5   :  { %v3745_v0 = vpop.f32.mrf.mxu1 }
 0x3d7   :  { %v3734_v58 = vpop.f32.mrf.mxu0  ;;  %v3654_v4 = vpop.f32.mrf.mxu2 }
 0x3d8   :  { %v3655_v32 = vadd.f32 %v3654_v4, %v3642_v8 }
 0x3dd   :  { %v3747_v43 = vpop.f32.mrf.mxu1 }
 0x3df   :  { %v3656_v56 = vpop.f32.mrf.mxu2 }
 0x3e7   :  { %v3706_v5 = vpop.f32.mrf.mxu2 }
 0x3e8   :  { %v3707_v29 = vadd.f32 %v3706_v5, %v3694_v55 }
 0x3ef   :  { %v3708_v6 = vpop.f32.mrf.mxu2 }
 0x3f7   :  { %v3667_v9 = vpop.f32.mrf.mxu3 }
 0x3f8   :  { %v3668_v10 = vadd.f32 %v3667_v9, %v3655_v32  ;;  %v3758_v11 = vpop.f32.mrf.mxu2 }
 0x3fa   :  { %6152 = vtanh.f32 %v3668_v10 }
 0x3ff   :  { %v3669_v62 = vpop.f32.mrf.mxu3 }
 0x400   :  { %v6153_v1 = vpop.eup %6152  ;;  %v3760_v63 = vpop.f32.mrf.mxu2 }
 0x401   :  { %3777 = vst [vmem:[#allocation2] sm:$0xff] %v6153_v1 }
 0x407   :  { %v3719_v33 = vpop.f32.mrf.mxu3 }
 0x408   :  { %v3720_v60 = vadd.f32 %v3719_v33, %v3707_v29 }
 0x40a   :  { %v3733_v52 = vadd.f32 %v3732_v53, %v3720_v60 }
 0x40c   :  { %v3746_v14 = vadd.f32 %v3745_v0, %v3733_v52 }
 0x40e   :  { %v3759_v15 = vadd.f32 %v3758_v11, %v3746_v14 }
 0x40f   :  { %v3721_v12 = vpop.f32.mrf.mxu3 }
 0x417   :  { %v3771_v23 = vpop.f32.mrf.mxu3 }
 0x418   :  { %v3772_v34 = vadd.f32 %v3771_v23, %v3759_v15 }
 0x41a   :  { %6154 = vtanh.f32 %v3772_v34 }
 0x41f   :  { %v3773_v16 = vpop.f32.mrf.mxu3 }
 0x420   :  { %v6155_v18 = vpop.eup %6154 }
 0x421   :  { %3778 = vst [vmem:[#allocation2 + $0x8] sm:$0xff] %v6155_v18 }
 0x422   :  { %3789 = dma.vmem_to_hbm [thread:$0]  %s3785_s17, 256, %s3787_s20, [#allocation3]  }
 0x423   :  { %6181 = dma.done.wait [#allocation3], 256  }
 0x424   :  { %6182 = vsyncadd [#allocation3], 4294967040 }
 0x425   :  { %3794 = vsyncpa [#allocation3], 1 }

</bundles_post_ra>
